<compile_context>
chip_gen: v6e
topology: v6e:2x2x1
jax: 0.10.0
libtpu: 0.0.40
codegen_flags: <defaults>
</compile_context>

<pallas_src>
import functools
import math

import jax
import jax.numpy as jnp
from jax import lax
from jax.experimental import pallas as pl
from jax.experimental.pallas import tpu as pltpu


def _swap01(t):
    """(a, b, d) -> (b, a, d): lane-preserving swap of the two major dims."""
    if hasattr(pltpu, "einshape"):
        return pltpu.einshape("abd->bad", t)
    return jnp.swapaxes(t, 0, 1)


def _vmem_limit_bytes():
    """Generation-aware VMEM budget (v7x has 64 MiB physical VMEM, v5e/v6e 128)."""
    cap = 128 * 1024 * 1024
    try:
        info = pltpu.get_tpu_info()
        cap = int(getattr(info, "vmem_capacity_bytes", cap))
    except Exception:
        pass
    return max(16 * 1024 * 1024, min(48 * 1024 * 1024, cap - 16 * 1024 * 1024))


# --------------------------------------------------------------------------- #
# Stage 1: K/V projection (hoisted out of the per-query-tile attention kernel)
# --------------------------------------------------------------------------- #
def _kv_proj_kernel(mem_ref, wk_ref, bk_ref, wv_ref, bv_ref, k_ref, v_ref,
                    *, h, d_k):
    mem = mem_ref[0]                                                # (k_tile, D)
    k = jnp.dot(mem, wk_ref[...], preferred_element_type=jnp.float32) + bk_ref[...]
    v = jnp.dot(mem, wv_ref[...], preferred_element_type=jnp.float32) + bv_ref[...]
    tk = k.shape[0]
    # Head split done once here (instead of once per (query tile, key tile)).
    k_ref[0] = _swap01(k.reshape(tk, h, d_k)).astype(k_ref.dtype)   # (h, k_tile, d_k)
    v_ref[0] = _swap01(v.reshape(tk, h, d_k)).astype(v_ref.dtype)


def _kv_projection(mem, wk, bk, wv, bv, *, h, d_k, k_tile, mxu_dtype, vmem_limit):
    B, TK, D = mem.shape
    hdk = h * d_k
    n_kt = TK // k_tile
    act_bytes = jnp.dtype(mxu_dtype).itemsize

    flops = 4 * B * TK * D * hdk
    bytes_accessed = (B * TK * D * act_bytes
                      + 2 * D * hdk * act_bytes + 2 * hdk * 4
                      + 2 * B * h * TK * d_k * act_bytes)

    kernel = functools.partial(_kv_proj_kernel, h=h, d_k=d_k)
    kv_shape = jax.ShapeDtypeStruct((B, h, TK, d_k), mxu_dtype)
    return pl.pallas_call(
        kernel,
        out_shape=(kv_shape, kv_shape),
        grid=(B, n_kt),
        in_specs=[
            pl.BlockSpec((1, k_tile, D), lambda b, ki: (b, ki, 0)),   # memory
            pl.BlockSpec((D, hdk), lambda b, ki: (0, 0)),             # W_k
            pl.BlockSpec((1, hdk), lambda b, ki: (0, 0)),             # b_k
            pl.BlockSpec((D, hdk), lambda b, ki: (0, 0)),             # W_v
            pl.BlockSpec((1, hdk), lambda b, ki: (0, 0)),             # b_v
        ],
        out_specs=(
            pl.BlockSpec((1, h, k_tile, d_k), lambda b, ki: (b, 0, ki, 0)),
            pl.BlockSpec((1, h, k_tile, d_k), lambda b, ki: (b, 0, ki, 0)),
        ),
        compiler_params=pltpu.CompilerParams(
            dimension_semantics=("parallel", "parallel"),
            vmem_limit_bytes=vmem_limit),
        cost_estimate=pl.CostEstimate(flops=int(flops), transcendentals=0,
                                      bytes_accessed=int(bytes_accessed)),
    )(mem, wk, bk, wv, bv)


# --------------------------------------------------------------------------- #
# Stage 2: flash-style cross attention with fused Q / output projections
# --------------------------------------------------------------------------- #
def _flash_attn_kernel(x_ref, k_ref, v_ref, mask_ref,
                       wq_ref, bq_ref, wo_ref, bo_ref,
                       out_ref, q_scr, m_scr, l_scr, acc_scr,
                       *, h, d_k, mxu_dtype):
    ki = pl.program_id(2)
    use_approx = jnp.dtype(mxu_dtype) != jnp.dtype(jnp.float32)

    @pl.when(ki == 0)
    def _init():
        # Q projection once per (batch, query tile); 1/sqrt(d_k) is already
        # folded into W_q / b_q at parameter-prep time.
        x = x_ref[0]                                                # (q_tile, D)
        q = jnp.dot(x, wq_ref[...], preferred_element_type=jnp.float32) + bq_ref[...]
        tq = q.shape[0]
        q_scr[...] = _swap01(q.reshape(tq, h, d_k)).astype(mxu_dtype)  # (h, q_tile, d_k)
        m_scr[...] = jnp.full_like(m_scr, -jnp.inf)
        l_scr[...] = jnp.zeros_like(l_scr)
        acc_scr[...] = jnp.zeros_like(acc_scr)

    kh = k_ref[0]                     # (h, k_tile, d_k) - already head-split
    vh = v_ref[0]                     # (h, k_tile, d_k)
    mask = mask_ref[0, 0]             # (1, k_tile) additive mask (f32)

    # scores[h, q, k] = sum_d q[h, q, d] * k[h, k, d]   (scale pre-folded)
    s = lax.dot_general(q_scr[...], kh, (((2,), (2,)), ((0,), (0,))),
                        preferred_element_type=jnp.float32)         # (h, q_tile, k_tile)
    s = s + mask                                                    # broadcast over h, q

    # Online (flash) softmax update in f32.
    m_prev = m_scr[...]
    m_new = jnp.maximum(m_prev, jnp.max(s, axis=-1, keepdims=True))
    alpha = jnp.exp(m_prev - m_new)
    p = jnp.exp(s - m_new)
    l_scr[...] = alpha * l_scr[...] + jnp.sum(p, axis=-1, keepdims=True)
    acc_scr[...] = alpha * acc_scr[...] + lax.dot_general(
        p.astype(mxu_dtype), vh, (((2,), (1,)), ((0,), (0,))),
        preferred_element_type=jnp.float32)                         # (h, q_tile, d_k)
    m_scr[...] = m_new

    @pl.when(ki == pl.num_programs(2) - 1)
    def _finalize():
        # Deferred normalization (EUP reciprocal) + output projection done as a
        # per-head batched matmul + cross-head sum: no head-merge relayout.
        ctx = acc_scr[...] * pl.reciprocal(l_scr[...], approx=use_approx)
        ctx = ctx.astype(mxu_dtype)                                 # (h, q_tile, d_k)
        out_h = lax.dot_general(ctx, wo_ref[...], (((2,), (1,)), ((0,), (0,))),
                                preferred_element_type=jnp.float32)  # (h, q_tile, D)
        out = jnp.sum(out_h, axis=0) + bo_ref[...]                  # (q_tile, D)
        out_ref[0] = out.astype(out_ref.dtype)


def mha_cross_att(x, memory, memory_mask, params, *, h, d_k,
                  mxu_dtype=jnp.bfloat16, q_tile=None, k_tile=None):
    B, TQ, D = x.shape
    _, TK, _ = memory.shape
    hdk = h * d_k
    out_dtype = x.dtype

    wq, bq, wkv, bkv, wo, bo = params
    scale = 1.0 / math.sqrt(d_k)

    # ---- parameter prep (free, outside the kernels) --------------------------
    wq_p = (wq * scale).astype(mxu_dtype)                  # score scale folded in
    bq_p = (bq * scale).reshape(1, hdk).astype(jnp.float32)
    wk_p = wkv[:, :hdk].astype(mxu_dtype)
    wv_p = wkv[:, hdk:].astype(mxu_dtype)
    bk_p = bkv[:hdk].reshape(1, hdk).astype(jnp.float32)
    bv_p = bkv[hdk:].reshape(1, hdk).astype(jnp.float32)
    wo_h = wo.reshape(h, d_k, D).astype(mxu_dtype)         # head-split out-proj weight
    bo_p = bo.reshape(1, D).astype(jnp.float32)

    # Streamed activations travel HBM->VMEM in the MXU dtype.
    x_c = x.astype(mxu_dtype)
    mem_c = memory.astype(mxu_dtype)
    mask_c = memory_mask.reshape(B, 1, 1, TK).astype(jnp.float32)

    # ---- tile selection -------------------------------------------------------
    if k_tile is None:
        if TK <= 512:
            k_tile = TK
        else:
            k_tile = next((t for t in (512, 256, 128) if TK % t == 0), TK)
    assert TK % k_tile == 0, "k_tile must divide TK"
    assert k_tile == TK or k_tile % 128 == 0, "k_tile must be TK or a multiple of 128"
    n_kt = TK // k_tile

    if q_tile is None:
        if TQ > 256:
            q_tile = 256                       # 256-aligned M for the 256-wide MXUs
        elif B == 1 and TQ >= 16 and TQ % 16 == 0:
            q_tile = TQ // 2                   # keep both v7x TensorCores busy
        else:
            q_tile = TQ
    n_q = -(-TQ // q_tile)
    TQp = n_q * q_tile
    assert q_tile % 8 == 0 or q_tile == TQp
    if TQp != TQ:
        x_c = jnp.pad(x_c, ((0, 0), (0, TQp - TQ), (0, 0)))

    vmem_limit = _vmem_limit_bytes()
    act_bytes = jnp.dtype(mxu_dtype).itemsize

    # ---- stage 1: K/V projection (computed once, head-split layout) ----------
    kh, vh = _kv_projection(mem_c, wk_p, bk_p, wv_p, bv_p, h=h, d_k=d_k,
                            k_tile=k_tile, mxu_dtype=mxu_dtype,
                            vmem_limit=vmem_limit)

    # ---- stage 2: flash cross-attention + fused projections -------------------
    kernel = functools.partial(_flash_attn_kernel, h=h, d_k=d_k, mxu_dtype=mxu_dtype)

    flops = (2 * B * TQp * D * hdk             # Q projection
             + 4 * B * h * TQp * TK * d_k      # scores + PV
             + 2 * B * TQp * hdk * D)          # output projection
    transcendentals = B * h * TQp * (TK + n_kt + 1)
    bytes_accessed = (B * TQp * D * act_bytes
                      + 2 * n_q * B * h * TK * d_k * act_bytes   # K,V re-read per q tile
                      + n_q * B * TK * 4                         # mask
                      + (D * hdk + h * d_k * D) * act_bytes + (hdk + D) * 4
                      + B * TQp * D * jnp.dtype(out_dtype).itemsize)

    out = pl.pallas_call(
        kernel,
        out_shape=jax.ShapeDtypeStruct((B, TQp, D), out_dtype),
        grid=(B, n_q, n_kt),
        in_specs=[
            pl.BlockSpec((1, q_tile, D), lambda b, qi, ki: (b, qi, 0)),          # x
            pl.BlockSpec((1, h, k_tile, d_k), lambda b, qi, ki: (b, 0, ki, 0)),  # K
            pl.BlockSpec((1, h, k_tile, d_k), lambda b, qi, ki: (b, 0, ki, 0)),  # V
            pl.BlockSpec((1, 1, 1, k_tile), lambda b, qi, ki: (b, 0, 0, ki)),    # mask
            pl.BlockSpec((D, hdk), lambda b, qi, ki: (0, 0)),                    # W_q
            pl.BlockSpec((1, hdk), lambda b, qi, ki: (0, 0)),                    # b_q
            pl.BlockSpec((h, d_k, D), lambda b, qi, ki: (0, 0, 0)),              # W_out
            pl.BlockSpec((1, D), lambda b, qi, ki: (0, 0)),                      # b_out
        ],
        out_specs=pl.BlockSpec((1, q_tile, D), lambda b, qi, ki: (b, qi, 0)),
        scratch_shapes=[
            pltpu.VMEM((h, q_tile, d_k), mxu_dtype),     # q (head-split, pre-scaled)
            pltpu.VMEM((h, q_tile, 1), jnp.float32),     # running max
            pltpu.VMEM((h, q_tile, 1), jnp.float32),     # running denominator
            pltpu.VMEM((h, q_tile, d_k), jnp.float32),   # unnormalized context
        ],
        compiler_params=pltpu.CompilerParams(
            dimension_semantics=("parallel", "parallel", "arbitrary"),
            vmem_limit_bytes=vmem_limit),
        cost_estimate=pl.CostEstimate(flops=int(flops),
                                      transcendentals=int(transcendentals),
                                      bytes_accessed=int(bytes_accessed)),
    )(x_c, kh, vh, mask_c, wq_p, bq_p, wo_h, bo_p)

    return out[:, :TQ, :] if TQp != TQ else out


# --------------------------------------------------------------------------- #
# Pure-JAX reference mirroring the PyTorch forward
# --------------------------------------------------------------------------- #
def mha_cross_att_ref(x, memory, memory_mask, params, *, h, d_k):
    wq, bq, wkv, bkv, wo, bo = params
    B, TQ, D = x.shape
    TK = memory.shape[1]
    hdk = h * d_k

    q = x @ wq + bq
    kv = memory @ wkv + bkv
    k, v = kv[..., :hdk], kv[..., hdk:]

    def split_heads(t, T):
        return t.reshape(B, T, h, d_k).transpose(0, 2, 1, 3)

    qh, kh, vh = split_heads(q, TQ), split_heads(k, TK), split_heads(v, TK)
    scores = jnp.einsum('bhqd,bhkd->bhqk', qh, kh) / math.sqrt(d_k)
    scores = scores + memory_mask
    attn = jax.nn.softmax(scores, axis=-1)
    ctx = jnp.einsum('bhqk,bhkd->bhqd', attn, vh)
    ctx = ctx.transpose(0, 2, 1, 3).reshape(B, TQ, hdk)
    return ctx @ wo + bo


if __name__ == "__main__":
    # Small shapes consistent with the module (n_feat = h * d_k); TK chosen so
    # the flash TK axis and multi-tile query grid are both exercised.
    B, TQ, TK = 2, 16, 256
    H, DK = 4, 8
    D = H * DK  # 32

    key = jax.random.PRNGKey(0)
    ks = jax.random.split(key, 8)

    x = jax.random.normal(ks[0], (B, TQ, D), dtype=jnp.float32)
    memory = jax.random.normal(ks[1], (B, TK, D), dtype=jnp.float32)
    # Additive mask: batch 1 only attends to the first 200 memory positions
    # (the masked tail crosses a key-tile boundary in the tiled run).
    keep = jnp.arange(TK)[None, :] < jnp.array([TK, 200])[:, None]
    memory_mask = jnp.where(keep, 0.0, -1e9).astype(jnp.float32).reshape(B, 1, 1, TK)

    scale = 0.1
    params = (
        jax.random.normal(ks[2], (D, H * DK), dtype=jnp.float32) * scale,       # W_q
        jax.random.normal(ks[3], (H * DK,), dtype=jnp.float32) * scale,         # b_q
        jax.random.normal(ks[4], (D, 2 * H * DK), dtype=jnp.float32) * scale,   # W_kv
        jax.random.normal(ks[5], (2 * H * DK,), dtype=jnp.float32) * scale,     # b_kv
        jax.random.normal(ks[6], (H * DK, D), dtype=jnp.float32) * scale,       # W_out
        jax.random.normal(ks[7], (D,), dtype=jnp.float32) * scale,              # b_out
    )

    ref = mha_cross_att_ref(x, memory, memory_mask, params, h=H, d_k=DK)

    # f32 MXU path on a multi-tile grid (2 query tiles x 2 key tiles): exact check.
    out_f32 = jax.block_until_ready(
        mha_cross_att(x, memory, memory_mask, params, h=H, d_k=DK,
                      mxu_dtype=jnp.float32, q_tile=8, k_tile=128))
    assert out_f32.shape == (B, TQ, D)
    assert jnp.allclose(out_f32, ref, atol=3e-4, rtol=3e-4), "f32 path mismatch vs reference"

    # bf16 MXU path (default tiles): looser tolerance for bf16 operand rounding.
    out_bf16 = jax.block_until_ready(
        mha_cross_att(x, memory, memory_mask, params, h=H, d_k=DK))
    assert out_bf16.shape == (B, TQ, D)
    assert jnp.allclose(out_bf16, ref, atol=2e-2, rtol=2e-2), "bf16 path mismatch vs reference"

    print("KERNEL_OK")
</pallas_src>

<mosaic_0001>
module attributes {stable_mosaic.version = 11 : i64} {
  func.func @_kv_proj_kernel(%arg0: i32, %arg1: i32, %arg2: memref<1x128x32xf32, #tpu.memory_space<vmem>>, %arg3: memref<32x32xf32, #tpu.memory_space<vmem>>, %arg4: memref<1x32xf32, #tpu.memory_space<vmem>>, %arg5: memref<32x32xf32, #tpu.memory_space<vmem>>, %arg6: memref<1x32xf32, #tpu.memory_space<vmem>>, %arg7: memref<1x4x128x8xf32, #tpu.memory_space<vmem>>, %arg8: memref<1x4x128x8xf32, #tpu.memory_space<vmem>>) attributes {dimension_semantics = [#tpu.dimension_semantics<parallel>, #tpu.dimension_semantics<parallel>], iteration_bounds = array<i64: 2, 2>, scalar_prefetch = 0 : i64, scratch_operands = 0 : i64, tpu.core_type = #tpu.core_type<tc>, window_params = [{transform_indices = @transform_0, window_bounds = array<i64: 1, 128, 32>}, {pipeline_mode = #tpu.pipeline_mode<synchronous>, transform_indices = @transform_1, window_bounds = array<i64: 32, 32>}, {pipeline_mode = #tpu.pipeline_mode<synchronous>, transform_indices = @transform_2, window_bounds = array<i64: 1, 32>}, {pipeline_mode = #tpu.pipeline_mode<synchronous>, transform_indices = @transform_3, window_bounds = array<i64: 32, 32>}, {pipeline_mode = #tpu.pipeline_mode<synchronous>, transform_indices = @transform_4, window_bounds = array<i64: 1, 32>}, {transform_indices = @transform_5, window_bounds = array<i64: 1, 4, 128, 8>}, {transform_indices = @transform_6, window_bounds = array<i64: 1, 4, 128, 8>}]} {
    %c0 = arith.constant 0 : index
    %c0_0 = arith.constant 0 : index
    %c0_1 = arith.constant 0 : index
    %0 = vector.load %arg2[%c0, %c0_0, %c0_1] : memref<1x128x32xf32, #tpu.memory_space<vmem>>, vector<1x128x32xf32>
    %1 = vector.shape_cast %0 : vector<1x128x32xf32> to vector<128x32xf32>
    %c0_2 = arith.constant 0 : index
    %c0_3 = arith.constant 0 : index
    %2 = vector.load %arg3[%c0_2, %c0_3] : memref<32x32xf32, #tpu.memory_space<vmem>>, vector<32x32xf32>
    %cst = arith.constant dense<0.000000e+00> : vector<128x32xf32>
    %3 = tpu.matmul %1, %2, %cst {dimension_numbers = #tpu.dot_dimension_numbers<[1], [0], [0], [1], [0, 0, 1, 1], [], []>} : vector<128x32xf32>, vector<32x32xf32>, vector<128x32xf32> -> vector<128x32xf32>
    %c0_4 = arith.constant 0 : index
    %c0_5 = arith.constant 0 : index
    %4 = vector.load %arg4[%c0_4, %c0_5] : memref<1x32xf32, #tpu.memory_space<vmem>>, vector<1x32xf32>
    %5 = vector.broadcast %4 : vector<1x32xf32> to vector<128x32xf32>
    %6 = arith.addf %3, %5 : vector<128x32xf32>
    %c0_6 = arith.constant 0 : index
    %c0_7 = arith.constant 0 : index
    %7 = vector.load %arg5[%c0_6, %c0_7] : memref<32x32xf32, #tpu.memory_space<vmem>>, vector<32x32xf32>
    %cst_8 = arith.constant dense<0.000000e+00> : vector<128x32xf32>
    %8 = tpu.matmul %1, %7, %cst_8 {dimension_numbers = #tpu.dot_dimension_numbers<[1], [0], [0], [1], [0, 0, 1, 1], [], []>} : vector<128x32xf32>, vector<32x32xf32>, vector<128x32xf32> -> vector<128x32xf32>
    %c0_9 = arith.constant 0 : index
    %c0_10 = arith.constant 0 : index
    %9 = vector.load %arg6[%c0_9, %c0_10] : memref<1x32xf32, #tpu.memory_space<vmem>>, vector<1x32xf32>
    %10 = vector.broadcast %9 : vector<1x32xf32> to vector<128x32xf32>
    %11 = arith.addf %8, %10 : vector<128x32xf32>
    %12 = vector.shape_cast %6 : vector<128x32xf32> to vector<128x4x8xf32>
    %13 = tpu.transpose %12, [1, 0, 2] : vector<128x4x8xf32> -> vector<4x128x8xf32>
    %c0_11 = arith.constant 0 : index
    %c0_12 = arith.constant 0 : index
    %c0_13 = arith.constant 0 : index
    %c0_14 = arith.constant 0 : index
    %14 = vector.load %arg7[%c0_11, %c0_12, %c0_13, %c0_14] : memref<1x4x128x8xf32, #tpu.memory_space<vmem>>, vector<1x4x128x8xf32>
    %15 = vector.shape_cast %14 : vector<1x4x128x8xf32> to vector<4x128x8xf32>
    %16 = vector.shape_cast %13 : vector<4x128x8xf32> to vector<1x4x128x8xf32>
    tpu.vector_store %arg7[%c0_11, %c0_12, %c0_13, %c0_14], %16 {strides = array<i32>} : memref<1x4x128x8xf32, #tpu.memory_space<vmem>>, vector<1x4x128x8xf32>,
    %17 = vector.shape_cast %11 : vector<128x32xf32> to vector<128x4x8xf32>
    %18 = tpu.transpose %17, [1, 0, 2] : vector<128x4x8xf32> -> vector<4x128x8xf32>
    %c0_15 = arith.constant 0 : index
    %c0_16 = arith.constant 0 : index
    %c0_17 = arith.constant 0 : index
    %c0_18 = arith.constant 0 : index
    %19 = vector.load %arg8[%c0_15, %c0_16, %c0_17, %c0_18] : memref<1x4x128x8xf32, #tpu.memory_space<vmem>>, vector<1x4x128x8xf32>
    %20 = vector.shape_cast %19 : vector<1x4x128x8xf32> to vector<4x128x8xf32>
    %21 = vector.shape_cast %18 : vector<4x128x8xf32> to vector<1x4x128x8xf32>
    tpu.vector_store %arg8[%c0_15, %c0_16, %c0_17, %c0_18], %21 {strides = array<i32>} : memref<1x4x128x8xf32, #tpu.memory_space<vmem>>, vector<1x4x128x8xf32>,
    return
  }
  func.func @transform_0(%arg0: i32, %arg1: i32) -> (i32, i32, i32) {
    %c0_i32 = arith.constant 0 : i32
    %c0_i32_0 = arith.constant 0 : i32
    return %arg0, %arg1, %c0_i32 : i32, i32, i32
  }
  func.func @transform_1(%arg0: i32, %arg1: i32) -> (i32, i32) {
    %c0_i32 = arith.constant 0 : i32
    %c0_i32_0 = arith.constant 0 : i32
    %c0_i32_1 = arith.constant 0 : i32
    return %c0_i32, %c0_i32_0 : i32, i32
  }
  func.func @transform_2(%arg0: i32, %arg1: i32) -> (i32, i32) {
    %c0_i32 = arith.constant 0 : i32
    %c0_i32_0 = arith.constant 0 : i32
    %c0_i32_1 = arith.constant 0 : i32
    return %c0_i32, %c0_i32_0 : i32, i32
  }
  func.func @transform_3(%arg0: i32, %arg1: i32) -> (i32, i32) {
    %c0_i32 = arith.constant 0 : i32
    %c0_i32_0 = arith.constant 0 : i32
    %c0_i32_1 = arith.constant 0 : i32
    return %c0_i32, %c0_i32_0 : i32, i32
  }
  func.func @transform_4(%arg0: i32, %arg1: i32) -> (i32, i32) {
    %c0_i32 = arith.constant 0 : i32
    %c0_i32_0 = arith.constant 0 : i32
    %c0_i32_1 = arith.constant 0 : i32
    return %c0_i32, %c0_i32_0 : i32, i32
  }
  func.func @transform_5(%arg0: i32, %arg1: i32) -> (i32, i32, i32, i32) {
    %c0_i32 = arith.constant 0 : i32
    %c0_i32_0 = arith.constant 0 : i32
    %c0_i32_1 = arith.constant 0 : i32
    return %arg0, %c0_i32, %arg1, %c0_i32_0 : i32, i32, i32, i32
  }
  func.func @transform_6(%arg0: i32, %arg1: i32) -> (i32, i32, i32, i32) {
    %c0_i32 = arith.constant 0 : i32
    %c0_i32_0 = arith.constant 0 : i32
    %c0_i32_1 = arith.constant 0 : i32
    return %arg0, %c0_i32, %arg1, %c0_i32_0 : i32, i32, i32, i32
  }
}

</mosaic_0001>

<bundles_post_ra>
// kernel: tpu_custom_call.1
= control target key start
LH: loop header
LB: loop body
LE: loop exit
PB: predicated region body
PF: predicated region fallthrough
CT: control target
= control target key end

     0   :  { %s6540_s21 = smov 0   ;;  %s6542_s22 = smov 0   ;;  %s8260_s0 = inlined_call_operand.vmem [shape: f32[2,256,32], index: 0, kind: input, shape index: {}]   ;;  %s8261_s1 = inlined_call_operand.vmem [shape: f32[32,32], index: 1, kind: input, shape index: {}]   ;;  %s8262_s2 = inlined_call_operand.vmem [shape: f32[1,32], index: 2, kind: input, shape index: {}]   ;;  %s8263_s3 = inlined_call_operand.vmem [shape: f32[32,32], index: 3, kind: input, shape index: {}]   ;;  %s8264_s4 = inlined_call_operand.vmem [shape: f32[1,32], index: 4, kind: input, shape index: {}]   ;;  %s8265_s5 = inlined_call_operand.vmem [shape: f32[2,4,256,8], index: 5, kind: output, shape index: {0}]   ;;  %s8266_s6 = inlined_call_operand.vmem [shape: f32[2,4,256,8], index: 6, kind: output, shape index: {1}]  }
   0x1   :  { %s6544_s23 = smov 0   ;;  %s6546_s24 = smov 0  }
   0x2   :  { %s6548_s25 = smov 0   ;;  %s6550_s26 = smov 0  }
   0x3   :  { %s6552_s27 = smov 0  }
   0x4 LB: > { %s26_s28 = sadd.s32 1, %s6490_s25  ;;  %s29_s29 = sadd.s32 1, %s6494_s26  ;;  %s6498_s27 = sphi %s6552_s27, %s17_s27   ;;  %s6494_s26 = sphi %s6550_s26, %s8273_s26   ;;  %s6490_s25 = sphi %s6548_s25, %s8272_s25   ;;  %s6486_s24 = sphi %s6546_s24, %s8271_s24   ;;  %s6482_s23 = sphi %s6544_s23, %s8270_s23   ;;  %s6478_s22 = sphi %s6542_s22, %s8269_s22   ;;  %s6474_s21 = sphi %s6540_s21, %s8268_s21  }
   0x5   : > { %p27_p0 = scmp.ge.s32.totalorder %s26_s28, 2  ;;  %s6161_s30 = sadd.s32 4294967295, %s6498_s27  }
   0x6   : > { %p160_p1 = scmp.ne.s32.totalorder %s6478_s22, %s6474_s21  ;;  %p161_p2 = scmp.eq.s32.totalorder %s6161_s30, 3 }
   0x7   : > { %s8275_s28 = smov (%p27_p0, %s26_s28), 0  ;;  %s8277_s29 = smov (!%p27_p0, %s29_s29), %s6494_s26 }
   0x8   : > { %s146_s7 = ssub.s32 %s6490_s25, %s8275_s28  ;;  %p31_p3 = scmp.ge.s32.totalorder %s8277_s29, 2 }
   0x9   : > { %p6165_p4 = scmp.ge.s32.totalorder %s6498_s27, 1  ;;  %p6584_p5 = por %p161_p2, %p160_p1 }
   0xa   : > { %p238_p6 = scmp.lt.s32.totalorder %s6498_s27, 5  ;;  %s8279_s29 = smov (%p31_p3, %s8277_s29), 0 }
   0xb   : > { %s145_s9 = ssub.s32 %s6494_s26, %s8279_s29  ;;  %s150_s11 = sadd.s32 1, %s6478_s22 }
   0xc   : > { %p239_p7 = pnand %p6165_p4, %p238_p6  ;;  %s147_s10 = sor.u32 %s146_s7, %s145_s9 }
   0xd   : > { %p148_p8 = scmp.eq.s32.totalorder %s147_s10, 0  ;;  %s6603_s17 = sshll.u32 (!%p239_p7), %s6482_s23, 4 }
   0xe   : > { %242 = sbr.rel (%p239_p7) target bundleno = 715 (0x2cb), region = 40  ;;  %p276_p9 = scmp.lt.s32.totalorder (!%p239_p7), %s6486_s24, 1 }
   0xf   : > { %s6595_s12 = scalar_select %p148_p8, %s6478_s22, %s150_s11  }
  0x10   : > { %p278_p10 = scmp.lt.s32.totalorder (!%p239_p7), %s6603_s17, 31  ;;  %s6500_s13 = smov (!%p239_p7), 112  }
  0x11   : > { %s6501_s14 = smov (!%p239_p7), 120   ;;  %s266_s19 = sand.u32 (!%p239_p7), 1, %s6474_s21  }
  0x12   : > { %s6953_s21 = sshll.u32 (!%p239_p7), %s266_s19, 9 }
  0x13   : > { %v306_v0 = vld [vmem:[%s8261_s1 + $0x18] sm:$0xff]  ;;  %v305_v1 = vld [vmem:[%s8261_s1 + $0x10] sm:$0xff]  ;;  %v304_v4 = vld [vmem:[%s8261_s1 + $0x8] sm:$0xff]  ;;  %s277_s23 = scalar_select %p276_p9, %s6486_s24, 1  ;;  %vm314_vm0 = vcmask 261120   ;;  %vm3000_vm1 = vcmask 64512  }
  0x14   : > { %6319 = vmatprep.subr.mxu0 %v306_v0  ;;  %v511_v2 = vld [vmem:[%s8263_s3 + $0x18] sm:$0xff]  ;;  %v510_v3 = vld [vmem:[%s8263_s3 + $0x10] sm:$0xff]  ;;  %s279_s10 = scalar_select %p278_p10, %s6603_s17, 31  ;;  %v509_v5 = vld [vmem:[%s8263_s3 + $0x8] sm:$0xff] }
  0x15   : > { %6320 = vmatpush3.msra.mxu0 %v306_v0  ;;  %6351 = vmatprep.subr.mxu1 %v511_v2  ;;  %v303_v6 = vld [vmem:[%s8261_s1] sm:$0xff]  ;;  %s6169_s16 = sshll.u32 %s277_s23, 5  ;;  %s6972_s20 = scalar_lea.vmem [#allocation2], %s6953_s21 }
  0x16   : > { %6321 = vmatprep.subr.mxu0 %v305_v1  ;;  %6352 = vmatpush3.msra.mxu1 %v511_v2  ;;  %s281_s18 = sadd.s32 %s6169_s16, %s279_s10  ;;  %v508_v7 = vld [vmem:[%s8263_s3] sm:$0xff]  ;;  %s6272_s7 = sshll.u32 (%p6584_p5), %s6486_s24, 7 }
  0x17   : > { %6322 = vmatpush3.msra.mxu0 %v305_v1  ;;  %6353 = vmatprep.subr.mxu1 %v510_v3  ;;  %s6170_s30 = sshll.u32 %s281_s18, 3  ;;  %v6683_v24 = vld [vmem:[%s8262_s2] ss:$0 sm:$0xff]  ;;  %s6502_s18 = smov 104  }
  0x18   : > { %6323 = vmatprep.subr.mxu0 %v304_v4  ;;  %6354 = vmatpush3.msra.mxu1 %v510_v3  ;;  %s6630_s11 = scalar_lea.vmem %s8260_s0, %s6170_s30  ;;  %v6695_v28 = vld [vmem:[%s8264_s4] ss:$0 sm:$0xff]  ;;  %s7059_s30 = scalar_lea.vmem [#allocation3], %s6953_s21 }
  0x19   : > { %6324 = vmatpush3.msra.mxu0 %v304_v4  ;;  %6355 = vmatprep.subr.mxu1 %v509_v5  ;;  %v287_v8 = vld [vmem:[%s6630_s11] sm:$0xff]  ;;  %v288_v9 = vld [vmem:[%s6630_s11 + $0x8] sm:$0xff]  ;;  %v289_v10 = vld [vmem:[%s6630_s11 + $0x10] sm:$0xff]  ;;  %v6503_v4 = vmov 1983009808   ;;  %s5478_s9 = sadd.s32 (%p6584_p5), %s6272_s7, %s6603_s17 }
  0x1a   : > { %6325 = vmatprep.subr.mxu0 %v303_v6  ;;  %6356 = vmatpush3.msra.mxu1 %v509_v5  ;;  %v290_v11 = vld [vmem:[%s6630_s11 + $0x18] sm:$0xff]  ;;  %v291_v12 = vld [vmem:[%s6630_s11 + $0x20] sm:$0xff]  ;;  %v292_v13 = vld [vmem:[%s6630_s11 + $0x28] sm:$0xff]  ;;  %v827_v5 = vunpack.c.l.s4 %v6503_v4 }
  0x1b   : > { %6326 = vmatpush3.msra.mxu0 %v303_v6  ;;  %6357 = vmatprep.subr.mxu1 %v508_v7  ;;  %v293_v14 = vld [vmem:[%s6630_s11 + $0x30] sm:$0xff]  ;;  %v294_v15 = vld [vmem:[%s6630_s11 + $0x38] sm:$0xff]  ;;  %v295_v16 = vld [vmem:[%s6630_s11 + $0x40] sm:$0xff]  ;;  %v829_v6 = vlaneseq }
  0x1c   : > { %6327 = vmatprep.mubr.msk.f32.mxu0 %vm314_vm0, %v287_v8  ;;  %6358 = vmatpush3.msra.mxu1 %v508_v7  ;;  %v296_v17 = vld [vmem:[%s6630_s11 + $0x48] sm:$0xff]  ;;  %v297_v18 = vld [vmem:[%s6630_s11 + $0x50] sm:$0xff]  ;;  %v298_v19 = vld [vmem:[%s6630_s11 + $0x58] sm:$0xff] }
  0x1d   : > { %6328 = vmatmul.mubr.msk.f32.vlgmr.msra.gmra.mxu0 %vm314_vm0, %v288_v9  ;;  %6359 = vmatprep.mubr.msk.f32.mxu1 %vm314_vm0, %v287_v8  ;;  %v299_v20 = vld [vmem:[%s6630_s11 + $0x60] sm:$0xff]  ;;  %v300_v21 = vld [vmem:[%s6630_s11 + $0x68] sm:$0xff]  ;;  %v301_v22 = vld [vmem:[%s6630_s11 + $0x70] sm:$0xff] }
  0x1e   : > { %6360 = vmatmul.mubr.msk.f32.vlgmr.msra.gmra.mxu1 %vm314_vm0, %v288_v9  ;;  %6330 = vmatprep.mubr.msk.f32.mxu0 %vm314_vm0, %v289_v10  ;;  %v302_v23 = vld [vmem:[%s6630_s11 + $0x78] sm:$0xff]  ;;  %v6504_v9 = vmov 1934713408   ;;  %s6273_s11 = sshll.u32 (%p6584_p5), %s5478_s9, 3 }
  0x1f   : > { %6362 = vmatprep.mubr.msk.f32.mxu1 %vm314_vm0, %v289_v10  ;;  %v859_v10 = vunpack.c.l.s4 %v6504_v9 }
  0x21   : > { %6331 = vmatmul.mubr.msk.f32.gmra.mxu0 %vm314_vm0, %v290_v11 }
  0x22   : > { %6363 = vmatmul.mubr.msk.f32.gmra.mxu1 %vm314_vm0, %v290_v11  ;;  %6333 = vmatprep.mubr.msk.f32.mxu0 %vm314_vm0, %v291_v12  ;;  %v828_v11 = vunpack.c.0.s8 %v827_v5 }
  0x23   : > { %6365 = vmatprep.mubr.msk.f32.mxu1 %vm314_vm0, %v291_v12  ;;  %v830_v12 = vshrl.u32 %v829_v6, 7 }
  0x25   : > { %6334 = vmatmul.mubr.msk.f32.gmra.mxu0 %vm314_vm0, %v292_v13 }
  0x26   : > { %6366 = vmatmul.mubr.msk.f32.gmra.mxu1 %vm314_vm0, %v292_v13  ;;  %6336 = vmatprep.mubr.msk.f32.mxu0 %vm314_vm0, %v293_v14 }
  0x27   : > { %6368 = vmatprep.mubr.msk.f32.mxu1 %vm314_vm0, %v293_v14 }
  0x29   : > { %6337 = vmatmul.mubr.msk.f32.gmra.mxu0 %vm314_vm0, %v294_v15 }
  0x2a   : > { %6369 = vmatmul.mubr.msk.f32.gmra.mxu1 %vm314_vm0, %v294_v15  ;;  %6339 = vmatprep.mubr.msk.f32.mxu0 %vm314_vm0, %v295_v16 }
  0x2b   : > { %6371 = vmatprep.mubr.msk.f32.mxu1 %vm314_vm0, %v295_v16 }
  0x2d   : > { %6340 = vmatmul.mubr.msk.f32.gmra.mxu0 %vm314_vm0, %v296_v17 }
  0x2e   : > { %6372 = vmatmul.mubr.msk.f32.gmra.mxu1 %vm314_vm0, %v296_v17  ;;  %6342 = vmatprep.mubr.msk.f32.mxu0 %vm314_vm0, %v297_v18  ;;  %v860_v17 = vunpack.c.0.s8 %v859_v10 }
  0x2f   : > { %6374 = vmatprep.mubr.msk.f32.mxu1 %vm314_vm0, %v297_v18  ;;  %v6870_v18 = vsub.s32 %v828_v11, %v830_v12 }
  0x31   : > { %6343 = vmatmul.mubr.msk.f32.gmra.mxu0 %vm314_vm0, %v298_v19 }
  0x32   : > { %6375 = vmatmul.mubr.msk.f32.gmra.mxu1 %vm314_vm0, %v298_v19  ;;  %6345 = vmatprep.mubr.msk.f32.mxu0 %vm314_vm0, %v299_v20 }
  0x33   : > { %6377 = vmatprep.mubr.msk.f32.mxu1 %vm314_vm0, %v299_v20 }
  0x35   : > { %6346 = vmatmul.mubr.msk.f32.gmra.mxu0 %vm314_vm0, %v300_v21 }
  0x36   : > { %6378 = vmatmul.mubr.msk.f32.gmra.mxu1 %vm314_vm0, %v300_v21  ;;  %6348 = vmatprep.mubr.msk.f32.mxu0 %vm314_vm0, %v301_v22 }
  0x37   : > { %6380 = vmatprep.mubr.msk.f32.mxu1 %vm314_vm0, %v301_v22 }
  0x39   : > { %6349 = vmatmul.mubr.msk.f32.gmra.mxu0 %vm314_vm0, %v302_v23 }
  0x3a   : > { %6381 = vmatmul.mubr.msk.f32.gmra.mxu1 %vm314_vm0, %v302_v23 }
  0xdd   : > { %v6329_v25 = vpop.f32.mrf.mxu0 }
  0xde   : > { %v6686_v26 = vadd.f32 %v6329_v25, %v6683_v24  ;;  %v6361_v30 = vpop.f32.mrf.mxu1 }
  0xdf   : > { %v429_v27 = vpop.f32.mrf.mxu0  ;;  %v6701_v31 = vadd.f32 %v6361_v30, %v6695_v28 }
  0xe0   : > { %730 = vrot.lane.b32.xlu1 %v6686_v26, %s6500_s13  ;;  %682 = vrot.lane.b32.xlu0 %v6686_v26, %s6501_s14  ;;  %v6698_v29 = vadd.f32 %v6683_v24, %v429_v27  ;;  %v585_v32 = vpop.f32.mrf.mxu1 }
  0xe1   : > { %v6716_v33 = vadd.f32 %v6695_v28, %v585_v32  ;;  %v6332_v34 = vpop.f32.mrf.mxu0 }
  0xe2   : > { %v6719_v35 = vadd.f32 %v6332_v34, %v6683_v24  ;;  %v6364_v38 = vpop.f32.mrf.mxu1 }
  0xe3   : > { %v439_v36 = vpop.f32.mrf.mxu0  ;;  %v6737_v39 = vadd.f32 %v6364_v38, %v6695_v28 }
  0xe4   : > { %778 = vrot.lane.b32.xlu1 %v6686_v26, %s6502_s18  ;;  %680 = vrot.lane.b32.xlu0 %v6698_v29, %s6501_s14  ;;  %v6734_v37 = vadd.f32 %v6683_v24, %v439_v36  ;;  %v595_v40 = vpop.f32.mrf.mxu1 }
  0xe5   : > { %v6748_v41 = vadd.f32 %v6695_v28, %v595_v40  ;;  %v6335_v42 = vpop.f32.mrf.mxu0  ;;  %v6880_v40 = vsub.s32 %v860_v17, %v830_v12 }
  0xe6   : > { %v6763_v44 = vadd.f32 %v6335_v42, %v6683_v24  ;;  %v6367_v46 = vpop.f32.mrf.mxu1 }
  0xe7   : > { %v449_v43 = vpop.f32.mrf.mxu0  ;;  %v6781_v48 = vadd.f32 %v6367_v46, %v6695_v28 }
  0xe8   : > { %3083 = vrot.lane.b32.xlu1 %v6701_v31, %s6501_s14  ;;  %728 = vrot.lane.b32.xlu0 %v6698_v29, %s6500_s13  ;;  %v6766_v45 = vadd.f32 %v6683_v24, %v449_v43  ;;  %v605_v47 = vpop.f32.mrf.mxu1 }
  0xe9   : > { %v6784_v49 = vadd.f32 %v6695_v28, %v605_v47  ;;  %v6338_v50 = vpop.f32.mrf.mxu0 }
  0xea   : > { %v6799_v52 = vadd.f32 %v6338_v50, %v6683_v24  ;;  %v6370_v54 = vpop.f32.mrf.mxu1 }
  0xeb   : > { %v459_v51 = vpop.f32.mrf.mxu0  ;;  %v6817_v56 = vadd.f32 %v6370_v54, %v6695_v28 }
  0xec   : > { %3131 = vrot.lane.b32.xlu1 %v6701_v31, %s6500_s13  ;;  %776 = vrot.lane.b32.xlu0 %v6698_v29, %s6502_s18  ;;  %v6802_v53 = vadd.f32 %v6683_v24, %v459_v51  ;;  %v615_v55 = vpop.f32.mrf.mxu1 }
  0xed   : > { %v6820_v57 = vadd.f32 %v6695_v28, %v615_v55  ;;  %v6341_v58 = vpop.f32.mrf.mxu0 }
  0xee   : > { %v6835_v60 = vadd.f32 %v6341_v58, %v6683_v24  ;;  %v6373_v62 = vpop.f32.mrf.mxu1 }
  0xef   : > { %v469_v59 = vpop.f32.mrf.mxu0  ;;  %v6853_v0 = vadd.f32 %v6373_v62, %v6695_v28 }
  0xf0   : > { %3179 = vrot.lane.b32.xlu1 %v6701_v31, %s6502_s18  ;;  %3081 = vrot.lane.b32.xlu0 %v6716_v33, %s6501_s14  ;;  %v6838_v61 = vadd.f32 %v6683_v24, %v469_v59  ;;  %v625_v63 = vpop.f32.mrf.mxu1 }
  0xf1   : > { %v6856_v1 = vadd.f32 %v6695_v28, %v625_v63  ;;  %v6344_v2 = vpop.f32.mrf.mxu0 }
  0xf2   : > { %v6376_v3 = vpop.f32.mrf.mxu1  ;;  %v6875_v23 = vadd.f32 %v6344_v2, %v6683_v24 }
  0xf3   : > { %v479_v7 = vpop.f32.mrf.mxu0 }
  0xf4   : > { %686 = vrot.lane.b32.xlu1 %v6719_v35, %s6501_s14  ;;  %3129 = vrot.lane.b32.xlu0 %v6716_v33, %s6500_s13  ;;  %v635_v8 = vpop.f32.mrf.mxu1  ;;  %v6878_v25 = vadd.f32 %v6683_v24, %v479_v7 }
  0xf5   : > { %v6347_v13 = vpop.f32.mrf.mxu0  ;;  %v6896_v54 = vadd.f32 %v6695_v28, %v635_v8 }
  0xf6   : > { %v6379_v14 = vpop.f32.mrf.mxu1  ;;  %v6899_v55 = vadd.f32 %v6347_v13, %v6683_v24 }
  0xf7   : > { %v489_v21 = vpop.f32.mrf.mxu0  ;;  %v6905_v59 = vadd.f32 %v6379_v14, %v6695_v28 }
  0xf8   : > { %734 = vrot.lane.b32.xlu1 %v6719_v35, %s6500_s13  ;;  %3177 = vrot.lane.b32.xlu0 %v6716_v33, %s6502_s18  ;;  %v645_v22 = vpop.f32.mrf.mxu1  ;;  %v6902_v58 = vadd.f32 %v6683_v24, %v489_v21 }
  0xf9   : > { %v6350_v36 = vpop.f32.mrf.mxu0  ;;  %v6914_v8 = vadd.f32 %v6695_v28, %v645_v22 }
  0xfa   : > { %v6382_v38 = vpop.f32.mrf.mxu1  ;;  %v6923_v14 = vadd.f32 %v6350_v36, %v6683_v24 }
  0xfb   : > { %v499_v4 = vpop.f32.mrf.mxu0 }
  0xfc   : > { %782 = vrot.lane.b32.xlu1 %v6719_v35, %s6502_s18  ;;  %732 = vrot.lane.b32.xlu0 %v6734_v37, %s6500_s13  ;;  %v655_v5 = vpop.f32.mrf.mxu1 }
  0xfd   : > { %v6932_v17 = vadd.f32 %v6695_v28, %v655_v5 }
 0x100   : > { %3087 = vrot.lane.b32.xlu1 %v6737_v39, %s6501_s14  ;;  %780 = vrot.lane.b32.xlu0 %v6734_v37, %s6502_s18 }
 0x104   : > { %3135 = vrot.lane.b32.xlu1 %v6737_v39, %s6500_s13  ;;  %3085 = vrot.lane.b32.xlu0 %v6748_v41, %s6501_s14 }
 0x108   : > { %3183 = vrot.lane.b32.xlu1 %v6737_v39, %s6502_s18  ;;  %3133 = vrot.lane.b32.xlu0 %v6748_v41, %s6500_s13 }
 0x10c   : > { %684 = vrot.lane.b32.xlu1 %v6734_v37, %s6501_s14  ;;  %3181 = vrot.lane.b32.xlu0 %v6748_v41, %s6502_s18 }
 0x110   : > { %690 = vrot.lane.b32.xlu1 %v6763_v44, %s6501_s14  ;;  %688 = vrot.lane.b32.xlu0 %v6766_v45, %s6501_s14 }
 0x114   : > { %738 = vrot.lane.b32.xlu1 %v6763_v44, %s6500_s13  ;;  %736 = vrot.lane.b32.xlu0 %v6766_v45, %s6500_s13 }
 0x118   : > { %786 = vrot.lane.b32.xlu1 %v6763_v44, %s6502_s18  ;;  %784 = vrot.lane.b32.xlu0 %v6766_v45, %s6502_s18 }
 0x11c   : > { %3091 = vrot.lane.b32.xlu1 %v6781_v48, %s6501_s14  ;;  %3089 = vrot.lane.b32.xlu0 %v6784_v49, %s6501_s14 }
 0x120   : > { %3139 = vrot.lane.b32.xlu1 %v6781_v48, %s6500_s13  ;;  %3137 = vrot.lane.b32.xlu0 %v6784_v49, %s6500_s13 }
 0x124   : > { %3187 = vrot.lane.b32.xlu1 %v6781_v48, %s6502_s18  ;;  %3185 = vrot.lane.b32.xlu0 %v6784_v49, %s6502_s18 }
 0x128   : > { %694 = vrot.lane.b32.xlu1 %v6799_v52, %s6501_s14  ;;  %692 = vrot.lane.b32.xlu0 %v6802_v53, %s6501_s14 }
 0x12c   : > { %742 = vrot.lane.b32.xlu1 %v6799_v52, %s6500_s13  ;;  %740 = vrot.lane.b32.xlu0 %v6802_v53, %s6500_s13 }
 0x130   : > { %790 = vrot.lane.b32.xlu1 %v6799_v52, %s6502_s18  ;;  %788 = vrot.lane.b32.xlu0 %v6802_v53, %s6502_s18 }
 0x134   : > { %3095 = vrot.lane.b32.xlu1 %v6817_v56, %s6501_s14  ;;  %3093 = vrot.lane.b32.xlu0 %v6820_v57, %s6501_s14 }
 0x138   : > { %3143 = vrot.lane.b32.xlu1 %v6817_v56, %s6500_s13  ;;  %3141 = vrot.lane.b32.xlu0 %v6820_v57, %s6500_s13 }
 0x13c   : > { %3191 = vrot.lane.b32.xlu1 %v6817_v56, %s6502_s18  ;;  %3189 = vrot.lane.b32.xlu0 %v6820_v57, %s6502_s18 }
 0x140   : > { %698 = vrot.lane.b32.xlu1 %v6835_v60, %s6501_s14  ;;  %696 = vrot.lane.b32.xlu0 %v6838_v61, %s6501_s14 }
 0x144   : > { %746 = vrot.lane.b32.xlu1 %v6835_v60, %s6500_s13  ;;  %744 = vrot.lane.b32.xlu0 %v6838_v61, %s6500_s13 }
 0x148   : > { %794 = vrot.lane.b32.xlu1 %v6835_v60, %s6502_s18  ;;  %792 = vrot.lane.b32.xlu0 %v6838_v61, %s6502_s18 }
 0x14c   : > { %3099 = vrot.lane.b32.xlu1 %v6853_v0, %s6501_s14  ;;  %3097 = vrot.lane.b32.xlu0 %v6856_v1, %s6501_s14 }
 0x150   : > { %3147 = vrot.lane.b32.xlu1 %v6853_v0, %s6500_s13  ;;  %3145 = vrot.lane.b32.xlu0 %v6856_v1, %s6500_s13 }
 0x152   : > { %v731_v15 = vpop.permute.xlu1 %730  ;;  %v683_v16 = vpop.permute.xlu0 %682 }
 0x153   : > { %v892_v19 = vcombine.low %v6686_v26, %v731_v15  ;;  %v893_v20 = vcombine.high %v6686_v26, %v731_v15  ;;  %v6887_v26 = vadd.f32 %v6376_v3, %v6695_v28  ;;  %v6926_v15 = vadd.f32 %v6683_v24, %v499_v4 }
 0x154   : > { %3195 = vrot.lane.b32.xlu1 %v6853_v0, %s6502_s18  ;;  %3193 = vrot.lane.b32.xlu0 %v6856_v1, %s6502_s18 }
 0x155   : > { %v900_v42 = vrot.slane %v892_v19, %v6870_v18  ;;  %v907_v43 = vrot.slane %v893_v20, %v6870_v18 }
 0x156   : > { %v779_v27 = vpop.permute.xlu1 %778  ;;  %v681_v30 = vpop.permute.xlu0 %680 }
 0x157   : > { %v908_v32 = vcombine.low %v683_v16, %v779_v27  ;;  %v909_v34 = vcombine.high %v683_v16, %v779_v27  ;;  %v6929_v16 = vadd.f32 %v6382_v38, %v6695_v28 }
 0x158   : > { %702 = vrot.lane.b32.xlu1 %v6875_v23, %s6501_s14  ;;  %700 = vrot.lane.b32.xlu0 %v6878_v25, %s6501_s14 }
 0x159   : > { %v916_v46 = vrot.slane %v908_v32, %v6870_v18  ;;  %v923_v47 = vrot.slane %v909_v34, %v6870_v18 }
 0x15a   : > { %v6893_v50 = vpop.permute.xlu1 %3083  ;;  %v729_v51 = vpop.permute.xlu0 %728 }
 0x15b   : > { %v924_v62 = vcombine.low %v900_v42, %v916_v46  ;;  %v925_v63 = vcombine.high %v900_v42, %v916_v46  ;;  %v940_v2 = vcombine.low %v907_v43, %v923_v47  ;;  %v941_v3 = vcombine.high %v907_v43, %v923_v47 }
 0x15c   : > { %v824_v6 = vcombine.low %v6698_v29, %v729_v51  ;;  %v825_v7 = vcombine.high %v6698_v29, %v729_v51  ;;  %750 = vrot.lane.b32.xlu1 %v6875_v23, %s6500_s13  ;;  %748 = vrot.lane.b32.xlu0 %v6878_v25, %s6500_s13 }
 0x15d   : > { %v932_v9 = vrot.slane %v924_v62, %v6880_v40  ;;  %v939_v10 = vrot.slane %v925_v63, %v6880_v40  ;;  %v948_v11 = vrot.slane %v940_v2, %v6880_v40  ;;  %v955_v12 = vrot.slane %v941_v3, %v6880_v40 }
 0x15e   : > { %v6920_v29 = vpop.permute.xlu1 %3131  ;;  %v777_v13 = vpop.permute.xlu0 %776  ;;  %v832_v27 = vrot.slane %v824_v6, %v6870_v18  ;;  %v839_v32 = vrot.slane %v825_v7, %v6870_v18 }
 0x15f   : > { %v1980_v19 = vcombine.low %v932_v9, %v939_v10  ;;  %v6207_v20 = vcombine.high %v932_v9, %v939_v10  ;;  %v1996_v21 = vcombine.low %v948_v11, %v955_v12  ;;  %v6208_v22 = vcombine.high %v948_v11, %v955_v12 }
 0x160   : > { %v840_v34 = vcombine.low %v681_v30, %v777_v13  ;;  %v841_v36 = vcombine.high %v681_v30, %v777_v13  ;;  %798 = vrot.lane.b32.xlu1 %v6875_v23, %s6502_s18  ;;  %796 = vrot.lane.b32.xlu0 %v6878_v25, %s6502_s18  ;;  %v3293_v43 = vcombine.low %v6701_v31, %v6920_v29 }
 0x161   : > { %v1987_v24 = vrot.slane %v1980_v19, %v6870_v18  ;;  %v1995_v38 = vrot.slane %v6207_v20, %v6870_v18  ;;  %v2003_v28 = vrot.slane %v1996_v21, %v6870_v18  ;;  %v2011_v42 = vrot.slane %v6208_v22, %v6870_v18 }
 0x162   : > { %v3294_v30 = vcombine.high %v6701_v31, %v6920_v29  ;;  %v848_v46 = vrot.slane %v840_v34, %v6870_v18  ;;  %v855_v47 = vrot.slane %v841_v36, %v6870_v18  ;;  %v3180_v51 = vpop.permute.xlu1 %3179  ;;  %v6951_v62 = vpop.permute.xlu0 %3081 }
 0x163   : > { %v2012_v63 = vcombine.low %v1987_v24, %v1995_v38  ;;  %v2013_v2 = vcombine.high %v1987_v24, %v1995_v38  ;;  %v2028_v3 = vcombine.low %v2003_v28, %v2011_v42  ;;  %v2029_v4 = vcombine.high %v2003_v28, %v2011_v42 }
 0x164   : > { %v856_v5 = vcombine.low %v832_v27, %v848_v46  ;;  %v857_v6 = vcombine.high %v832_v27, %v848_v46  ;;  %v872_v7 = vcombine.low %v839_v32, %v855_v47  ;;  %v873_v9 = vcombine.high %v839_v32, %v855_v47  ;;  %3103 = vrot.lane.b32.xlu1 %v6887_v26, %s6501_s14 }
 0x165   : > { %v2020_v31 = vrot.slane %v2012_v63, %v6880_v40  ;;  %v2027_v10 = vrot.slane %v2013_v2, %v6880_v40  ;;  %v2036_v11 = vrot.slane %v2028_v3, %v6880_v40  ;;  %v2043_v12 = vrot.slane %v2029_v4, %v6880_v40  ;;  %3101 = vrot.lane.b32.xlu0 %v6896_v54, %s6501_s14 }
 0x166   : > { %v864_v29 = vrot.slane %v856_v5, %v6880_v40  ;;  %v871_v13 = vrot.slane %v857_v6, %v6880_v40  ;;  %v880_v19 = vrot.slane %v872_v7, %v6880_v40  ;;  %v887_v20 = vrot.slane %v873_v9, %v6880_v40  ;;  %v6967_v21 = vpop.permute.xlu1 %686  ;;  %v3130_v42 = vpop.permute.xlu0 %3129 }
 0x167   : > { %v2044_v22 = vcombine.low %v2020_v31, %v2036_v11  ;;  %v2045_v27 = vcombine.high %v2020_v31, %v2036_v11  ;;  %v2046_v32 = vcombine.low %v2027_v10, %v2043_v12  ;;  %v2047_v34 = vcombine.high %v2027_v10, %v2043_v12 }
 0x168   : > { %v1912_v36 = vcombine.low %v864_v29, %v871_v13  ;;  %v6205_v24 = vcombine.high %v864_v29, %v871_v13  ;;  %v1928_v38 = vcombine.low %v880_v19, %v887_v20  ;;  %v6206_v28 = vcombine.high %v880_v19, %v887_v20  ;;  %3151 = vrot.lane.b32.xlu1 %v6887_v26, %s6500_s13 }
 0x169   : > { %3002 = vst.msk [vmem:[%s6972_s20 + $0x8] sm:$0xff] %vm3000_vm1, %v2044_v22  ;;  %3018 = vst.msk [vmem:[%s6972_s20 + $0x88] sm:$0xff] %vm3000_vm1, %v2045_v27  ;;  %v3301_v46 = vrot.slane %v3293_v43, %v6870_v18  ;;  %v3308_v47 = vrot.slane %v3294_v30, %v6870_v18  ;;  %v3309_v63 = vcombine.low %v6893_v50, %v3180_v51  ;;  %3149 = vrot.lane.b32.xlu0 %v6896_v54, %s6500_s13 }
 0x16a   : > { %3034 = vst.msk [vmem:[%s6972_s20 + $0x108] sm:$0xff] %vm3000_vm1, %v2046_v32  ;;  %3050 = vst.msk [vmem:[%s6972_s20 + $0x188] sm:$0xff] %vm3000_vm1, %v2047_v34  ;;  %v3310_v2 = vcombine.high %v6893_v50, %v3180_v51  ;;  %v1919_v3 = vrot.slane %v1912_v36, %v6870_v18  ;;  %v1927_v4 = vrot.slane %v6205_v24, %v6870_v18  ;;  %v6992_v7 = vpop.permute.xlu1 %734 }
 0x16b   : > { %v1935_v5 = vrot.slane %v1928_v38, %v6870_v18  ;;  %v1943_v6 = vrot.slane %v6206_v28, %v6870_v18  ;;  %v3317_v43 = vrot.slane %v3309_v63, %v6870_v18  ;;  %v3225_v9 = vcombine.low %v6716_v33, %v3130_v42  ;;  %v3178_v38 = vpop.permute.xlu0 %3177 }
 0x16c   : > { %v3324_v30 = vrot.slane %v3310_v2, %v6870_v18  ;;  %v3226_v50 = vcombine.high %v6716_v33, %v3130_v42  ;;  %v1944_v51 = vcombine.low %v1919_v3, %v1927_v4  ;;  %v1945_v31 = vcombine.high %v1919_v3, %v1927_v4  ;;  %3199 = vrot.lane.b32.xlu1 %v6887_v26, %s6502_s18 }
 0x16d   : > { %v1960_v10 = vcombine.low %v1935_v5, %v1943_v6  ;;  %v1961_v11 = vcombine.high %v1935_v5, %v1943_v6  ;;  %v3325_v12 = vcombine.low %v3301_v46, %v3317_v43  ;;  %v3326_v29 = vcombine.high %v3301_v46, %v3317_v43  ;;  %3197 = vrot.lane.b32.xlu0 %v6896_v54, %s6502_s18 }
 0x16e   : > { %v3341_v13 = vcombine.low %v3308_v47, %v3324_v30  ;;  %v3342_v19 = vcombine.high %v3308_v47, %v3324_v30  ;;  %v1952_v20 = vrot.slane %v1944_v51, %v6880_v40  ;;  %v1959_v22 = vrot.slane %v1945_v31, %v6880_v40  ;;  %v7010_v28 = vpop.permute.xlu1 %782 }
 0x16f   : > { %v1968_v33 = vrot.slane %v1960_v10, %v6880_v40  ;;  %v1975_v27 = vrot.slane %v1961_v11, %v6880_v40  ;;  %v3333_v32 = vrot.slane %v3325_v12, %v6880_v40  ;;  %v3340_v34 = vrot.slane %v3326_v29, %v6880_v40 }
 0x170   : > { %v3349_v36 = vrot.slane %v3341_v13, %v6880_v40  ;;  %v3356_v24 = vrot.slane %v3342_v19, %v6880_v40  ;;  %706 = vrot.lane.b32.xlu1 %v6899_v55, %s6501_s14  ;;  %v3233_v6 = vrot.slane %v3225_v9, %v6870_v18  ;;  %v3240_v43 = vrot.slane %v3226_v50, %v6870_v18 }
 0x171   : > { %v1976_v42 = vcombine.low %v1952_v20, %v1968_v33  ;;  %v1977_v46 = vcombine.high %v1952_v20, %v1968_v33  ;;  %v1978_v47 = vcombine.low %v1959_v22, %v1975_v27  ;;  %v1979_v63 = vcombine.high %v1959_v22, %v1975_v27  ;;  %704 = vrot.lane.b32.xlu0 %v6902_v58, %s6501_s14 }
 0x172   : > { %v4381_v2 = vcombine.low %v3333_v32, %v3340_v34  ;;  %v6239_v3 = vcombine.high %v3333_v32, %v3340_v34  ;;  %v4397_v4 = vcombine.low %v3349_v36, %v3356_v24  ;;  %v6240_v5 = vcombine.high %v3349_v36, %v3356_v24  ;;  %v7040_v33 = vpop.permute.xlu1 %3087 }
 0x173   : > { %3001 = vst.msk [vmem:[%s6972_s20] sm:$0xff] %vm3000_vm1, %v1976_v42  ;;  %3017 = vst.msk [vmem:[%s6972_s20 + $0x80] sm:$0xff] %vm3000_vm1, %v1977_v46  ;;  %v3241_v30 = vcombine.low %v6951_v62, %v3178_v38  ;;  %v3242_v51 = vcombine.high %v6951_v62, %v3178_v38  ;;  %v1028_v29 = vcombine.low %v6719_v35, %v6992_v7 }
 0x174   : > { %3033 = vst.msk [vmem:[%s6972_s20 + $0x100] sm:$0xff] %vm3000_vm1, %v1978_v47  ;;  %3049 = vst.msk [vmem:[%s6972_s20 + $0x180] sm:$0xff] %vm3000_vm1, %v1979_v63  ;;  %v4388_v31 = vrot.slane %v4381_v2, %v6870_v18  ;;  %v4396_v10 = vrot.slane %v6239_v3, %v6870_v18  ;;  %v4404_v11 = vrot.slane %v4397_v4, %v6870_v18  ;;  %754 = vrot.lane.b32.xlu1 %v6899_v55, %s6500_s13 }
 0x175   : > { %v4412_v12 = vrot.slane %v6240_v5, %v6870_v18  ;;  %v1029_v9 = vcombine.high %v6719_v35, %v6992_v7  ;;  %v3249_v50 = vrot.slane %v3241_v30, %v6870_v18  ;;  %v3256_v13 = vrot.slane %v3242_v51, %v6870_v18  ;;  %752 = vrot.lane.b32.xlu0 %v6902_v58, %s6500_s13 }
 0x176   : > { %v4413_v62 = vcombine.low %v4388_v31, %v4396_v10  ;;  %v4414_v19 = vcombine.high %v4388_v31, %v4396_v10  ;;  %v7056_v31 = vpop.permute.xlu0 %732  ;;  %v1036_v10 = vrot.slane %v1028_v29, %v6870_v18 }
 0x177   : > { %v4429_v20 = vcombine.low %v4404_v11, %v4412_v12  ;;  %v4430_v22 = vcombine.high %v4404_v11, %v4412_v12  ;;  %v3257_v27 = vcombine.low %v3233_v6, %v3249_v50  ;;  %v3258_v32 = vcombine.high %v3233_v6, %v3249_v50 }
 0x178   : > { %v3273_v34 = vcombine.low %v3240_v43, %v3256_v13  ;;  %v3274_v35 = vcombine.high %v3240_v43, %v3256_v13  ;;  %v4421_v7 = vrot.slane %v4413_v62, %v6880_v40  ;;  %v4428_v36 = vrot.slane %v4414_v19, %v6880_v40  ;;  %802 = vrot.lane.b32.xlu1 %v6899_v55, %s6502_s18  ;;  %v3136_v13 = vpop.permute.xlu1 %3135 }
 0x179   : > { %v4437_v24 = vrot.slane %v4429_v20, %v6880_v40  ;;  %v4444_v38 = vrot.slane %v4430_v22, %v6880_v40  ;;  %v3265_v42 = vrot.slane %v3257_v27, %v6880_v40  ;;  %v3272_v46 = vrot.slane %v3258_v32, %v6880_v40  ;;  %800 = vrot.lane.b32.xlu0 %v6902_v58, %s6502_s18 }
 0x17a   : > { %v3281_v47 = vrot.slane %v3273_v34, %v6880_v40  ;;  %v3288_v63 = vrot.slane %v3274_v35, %v6880_v40  ;;  %v1043_v11 = vrot.slane %v1029_v9, %v6870_v18  ;;  %v1044_v12 = vcombine.low %v6967_v21, %v7010_v28 }
 0x17b   : > { %v4445_v2 = vcombine.low %v4421_v7, %v4437_v24  ;;  %v4446_v3 = vcombine.high %v4421_v7, %v4437_v24  ;;  %v4447_v4 = vcombine.low %v4428_v36, %v4444_v38  ;;  %v4448_v5 = vcombine.high %v4428_v36, %v4444_v38 }
 0x17c   : > { %v4313_v6 = vcombine.low %v3265_v42, %v3272_v46  ;;  %v6237_v43 = vcombine.high %v3265_v42, %v3272_v46  ;;  %v4329_v30 = vcombine.low %v3281_v47, %v3288_v63  ;;  %v6238_v51 = vcombine.high %v3281_v47, %v3288_v63  ;;  %3107 = vrot.lane.b32.xlu1 %v6905_v59, %s6501_s14 }
 0x17d   : > { %5402 = vst.msk [vmem:[%s7059_s30 + $0x8] sm:$0xff] %vm3000_vm1, %v4445_v2  ;;  %5418 = vst.msk [vmem:[%s7059_s30 + $0x88] sm:$0xff] %vm3000_vm1, %v4446_v3  ;;  %v1045_v50 = vcombine.high %v6967_v21, %v7010_v28  ;;  %v1052_v29 = vrot.slane %v1044_v12, %v6870_v18  ;;  %v960_v27 = vcombine.low %v6734_v37, %v7056_v31  ;;  %3105 = vrot.lane.b32.xlu0 %v6914_v8, %s6501_s14  ;;  %v7093_v2 = vpop.permute.xlu0 %780 }
 0x17e   : > { %5434 = vst.msk [vmem:[%s7059_s30 + $0x108] sm:$0xff] %vm3000_vm1, %v4447_v4  ;;  %5450 = vst.msk [vmem:[%s7059_s30 + $0x188] sm:$0xff] %vm3000_vm1, %v4448_v5  ;;  %v4320_v62 = vrot.slane %v4313_v6, %v6870_v18  ;;  %v4328_v19 = vrot.slane %v6237_v43, %v6870_v18  ;;  %v4336_v20 = vrot.slane %v4329_v30, %v6870_v18  ;;  %v3184_v43 = vpop.permute.xlu1 %3183 }
 0x17f   : > { %v4344_v22 = vrot.slane %v6238_v51, %v6870_v18  ;;  %v1059_v9 = vrot.slane %v1045_v50, %v6870_v18  ;;  %v961_v21 = vcombine.high %v6734_v37, %v7056_v31  ;;  %v1060_v7 = vcombine.low %v1036_v10, %v1052_v29 }
 0x180   : > { %v4345_v28 = vcombine.low %v4320_v62, %v4328_v19  ;;  %v4346_v32 = vcombine.high %v4320_v62, %v4328_v19  ;;  %v1061_v36 = vcombine.high %v1036_v10, %v1052_v29  ;;  %3155 = vrot.lane.b32.xlu1 %v6905_v59, %s6500_s13  ;;  %v3445_v29 = vcombine.low %v7040_v33, %v3184_v43 }
 0x181   : > { %v4361_v34 = vcombine.low %v4336_v20, %v4344_v22  ;;  %v4362_v35 = vcombine.high %v4336_v20, %v4344_v22  ;;  %v1076_v24 = vcombine.low %v1043_v11, %v1059_v9  ;;  %v1077_v38 = vcombine.high %v1043_v11, %v1059_v9  ;;  %3153 = vrot.lane.b32.xlu0 %v6914_v8, %s6500_s13 }
 0x182   : > { %v4353_v42 = vrot.slane %v4345_v28, %v6880_v40  ;;  %v4360_v46 = vrot.slane %v4346_v32, %v6880_v40  ;;  %v1068_v3 = vrot.slane %v1060_v7, %v6880_v40  ;;  %v1075_v4 = vrot.slane %v1061_v36, %v6880_v40  ;;  %v7125_v7 = vpop.permute.xlu0 %3085 }
 0x183   : > { %v4369_v47 = vrot.slane %v4361_v34, %v6880_v40  ;;  %v4376_v63 = vrot.slane %v4362_v35, %v6880_v40  ;;  %v1084_v5 = vrot.slane %v1076_v24, %v6880_v40  ;;  %v1091_v6 = vrot.slane %v1077_v38, %v6880_v40 }
 0x184   : > { %v2116_v12 = vcombine.low %v1068_v3, %v1075_v4  ;;  %v6211_v50 = vcombine.high %v1068_v3, %v1075_v4  ;;  %v3429_v20 = vcombine.low %v6737_v39, %v3136_v13  ;;  %v3430_v22 = vcombine.high %v6737_v39, %v3136_v13  ;;  %3203 = vrot.lane.b32.xlu1 %v6905_v59, %s6502_s18 }
 0x185   : > { %v4377_v30 = vcombine.low %v4353_v42, %v4369_v47  ;;  %v4378_v51 = vcombine.high %v4353_v42, %v4369_v47  ;;  %v4379_v10 = vcombine.low %v4360_v46, %v4376_v63  ;;  %v4380_v11 = vcombine.high %v4360_v46, %v4376_v63  ;;  %3201 = vrot.lane.b32.xlu0 %v6914_v8, %s6502_s18 }
 0x186   : > { %v2132_v62 = vcombine.low %v1084_v5, %v1091_v6  ;;  %v6212_v19 = vcombine.high %v1084_v5, %v1091_v6  ;;  %v3446_v9 = vcombine.high %v7040_v33, %v3184_v43  ;;  %v2123_v28 = vrot.slane %v2116_v12, %v6870_v18 }
 0x187   : > { %5401 = vst.msk [vmem:[%s7059_s30] sm:$0xff] %vm3000_vm1, %v4377_v30  ;;  %5417 = vst.msk [vmem:[%s7059_s30 + $0x80] sm:$0xff] %vm3000_vm1, %v4378_v51  ;;  %v2131_v32 = vrot.slane %v6211_v50, %v6870_v18  ;;  %v3437_v39 = vrot.slane %v3429_v20, %v6870_v18  ;;  %v3444_v13 = vrot.slane %v3430_v22, %v6870_v18  ;;  %v685_v51 = vpop.permute.xlu1 %684 }
 0x188   : > { %5433 = vst.msk [vmem:[%s7059_s30 + $0x100] sm:$0xff] %vm3000_vm1, %v4379_v10  ;;  %5449 = vst.msk [vmem:[%s7059_s30 + $0x180] sm:$0xff] %vm3000_vm1, %v4380_v11  ;;  %v2139_v34 = vrot.slane %v2132_v62, %v6870_v18  ;;  %v2147_v35 = vrot.slane %v6212_v19, %v6870_v18  ;;  %v3453_v33 = vrot.slane %v3445_v29, %v6870_v18  ;;  %710 = vrot.lane.b32.xlu1 %v6923_v14, %s6501_s14 }
 0x189   : > { %v3460_v36 = vrot.slane %v3446_v9, %v6870_v18  ;;  %v2148_v24 = vcombine.low %v2123_v28, %v2131_v32  ;;  %v2149_v38 = vcombine.high %v2123_v28, %v2131_v32  ;;  %708 = vrot.lane.b32.xlu0 %v6926_v15, %s6501_s14 }
 0x18a   : > { %v2164_v42 = vcombine.low %v2139_v34, %v2147_v35  ;;  %v2165_v46 = vcombine.high %v2139_v34, %v2147_v35  ;;  %v3461_v47 = vcombine.low %v3437_v39, %v3453_v33  ;;  %v3462_v63 = vcombine.high %v3437_v39, %v3453_v33  ;;  %v3134_v34 = vpop.permute.xlu0 %3133 }
 0x18b   : > { %v3477_v3 = vcombine.low %v3444_v13, %v3460_v36  ;;  %v3478_v4 = vcombine.high %v3444_v13, %v3460_v36  ;;  %v2156_v5 = vrot.slane %v2148_v24, %v6880_v40  ;;  %v2163_v6 = vrot.slane %v2149_v38, %v6880_v40 }
 0x18c   : > { %v2172_v43 = vrot.slane %v2164_v42, %v6880_v40  ;;  %v2179_v30 = vrot.slane %v2165_v46, %v6880_v40  ;;  %v3469_v10 = vrot.slane %v3461_v47, %v6880_v40  ;;  %v3476_v11 = vrot.slane %v3462_v63, %v6880_v40  ;;  %758 = vrot.lane.b32.xlu1 %v6923_v14, %s6500_s13 }
 0x18d   : > { %v3485_v12 = vrot.slane %v3477_v3, %v6880_v40  ;;  %v3492_v50 = vrot.slane %v3478_v4, %v6880_v40  ;;  %v968_v35 = vrot.slane %v960_v27, %v6870_v18  ;;  %v975_v39 = vrot.slane %v961_v21, %v6870_v18  ;;  %756 = vrot.lane.b32.xlu0 %v6926_v15, %s6500_s13 }
 0x18e   : > { %v2180_v62 = vcombine.low %v2156_v5, %v2172_v43  ;;  %v2181_v19 = vcombine.high %v2156_v5, %v2172_v43  ;;  %v2182_v20 = vcombine.low %v2163_v6, %v2179_v30  ;;  %v2183_v22 = vcombine.high %v2163_v6, %v2179_v30 }
 0x18f   : > { %v4517_v29 = vcombine.low %v3469_v10, %v3476_v11  ;;  %v6243_v9 = vcombine.high %v3469_v10, %v3476_v11  ;;  %v4533_v28 = vcombine.low %v3485_v12, %v3492_v50  ;;  %v6244_v32 = vcombine.high %v3485_v12, %v3492_v50  ;;  %v3182_v11 = vpop.permute.xlu0 %3181 }
 0x190   : > { %3004 = vst.msk [vmem:[%s6972_s20 + $0x18] sm:$0xff] %vm3000_vm1, %v2180_v62  ;;  %3020 = vst.msk [vmem:[%s6972_s20 + $0x98] sm:$0xff] %vm3000_vm1, %v2181_v19  ;;  %v976_v13 = vcombine.low %v685_v51, %v7093_v2  ;;  %v977_v33 = vcombine.high %v685_v51, %v7093_v2  ;;  %v3361_v42 = vcombine.low %v6748_v41, %v3134_v34  ;;  %v7171_v2 = vpop.permute.xlu1 %690  ;;  %806 = vrot.lane.b32.xlu1 %v6923_v14, %s6502_s18 }
 0x191   : > { %3036 = vst.msk [vmem:[%s6972_s20 + $0x118] sm:$0xff] %vm3000_vm1, %v2182_v20  ;;  %3052 = vst.msk [vmem:[%s6972_s20 + $0x198] sm:$0xff] %vm3000_vm1, %v2183_v22  ;;  %v4524_v36 = vrot.slane %v4517_v29, %v6870_v18  ;;  %v4532_v24 = vrot.slane %v6243_v9, %v6870_v18  ;;  %v4540_v38 = vrot.slane %v4533_v28, %v6870_v18  ;;  %804 = vrot.lane.b32.xlu0 %v6926_v15, %s6502_s18 }
 0x192   : > { %v4548_v27 = vrot.slane %v6244_v32, %v6870_v18  ;;  %v3362_v37 = vcombine.high %v6748_v41, %v3134_v34  ;;  %v984_v31 = vrot.slane %v976_v13, %v6870_v18  ;;  %v991_v21 = vrot.slane %v977_v33, %v6870_v18 }
 0x193   : > { %v4549_v46 = vcombine.low %v4524_v36, %v4532_v24  ;;  %v4550_v47 = vcombine.high %v4524_v36, %v4532_v24  ;;  %v3369_v13 = vrot.slane %v3361_v42, %v6870_v18  ;;  %v3377_v36 = vcombine.low %v7125_v7, %v3182_v11 }
 0x194   : > { %v4565_v63 = vcombine.low %v4540_v38, %v4548_v27  ;;  %v4566_v3 = vcombine.high %v4540_v38, %v4548_v27  ;;  %v992_v4 = vcombine.low %v968_v35, %v984_v31  ;;  %v993_v5 = vcombine.high %v968_v35, %v984_v31  ;;  %3111 = vrot.lane.b32.xlu1 %v6929_v16, %s6501_s14 }
 0x195   : > { %v1008_v6 = vcombine.low %v975_v39, %v991_v21  ;;  %v1009_v43 = vcombine.high %v975_v39, %v991_v21  ;;  %v4557_v41 = vrot.slane %v4549_v46, %v6880_v40  ;;  %v4564_v30 = vrot.slane %v4550_v47, %v6880_v40  ;;  %v739_v39 = vpop.permute.xlu1 %738  ;;  %3109 = vrot.lane.b32.xlu0 %v6932_v17, %s6501_s14 }
 0x196   : > { %v4573_v51 = vrot.slane %v4565_v63, %v6880_v40  ;;  %v4580_v10 = vrot.slane %v4566_v3, %v6880_v40  ;;  %v1000_v12 = vrot.slane %v992_v4, %v6880_v40  ;;  %v1007_v50 = vrot.slane %v993_v5, %v6880_v40  ;;  %v7207_v63 = vpop.permute.xlu0 %688 }
 0x197   : > { %v1016_v62 = vrot.slane %v1008_v6, %v6880_v40  ;;  %v1023_v19 = vrot.slane %v1009_v43, %v6880_v40  ;;  %v3376_v33 = vrot.slane %v3362_v37, %v6870_v18  ;;  %v3378_v24 = vcombine.high %v7125_v7, %v3182_v11 }
 0x198   : > { %v4581_v20 = vcombine.low %v4557_v41, %v4573_v51  ;;  %v4582_v22 = vcombine.high %v4557_v41, %v4573_v51  ;;  %v4583_v29 = vcombine.low %v4564_v30, %v4580_v10  ;;  %v4584_v9 = vcombine.high %v4564_v30, %v4580_v10  ;;  %3159 = vrot.lane.b32.xlu1 %v6929_v16, %s6500_s13 }
 0x199   : > { %v2048_v28 = vcombine.low %v1000_v12, %v1007_v50  ;;  %v6209_v32 = vcombine.high %v1000_v12, %v1007_v50  ;;  %v2064_v34 = vcombine.low %v1016_v62, %v1023_v19  ;;  %v6210_v35 = vcombine.high %v1016_v62, %v1023_v19  ;;  %3157 = vrot.lane.b32.xlu0 %v6932_v17, %s6500_s13  ;;  %v787_v12 = vpop.permute.xlu1 %786  ;;  %s7981_s13 = scalar_lea.vmem (%p6584_p5), %s8265_s5, %s6273_s11 }
 0x19a   : > { %5404 = vst.msk [vmem:[%s7059_s30 + $0x18] sm:$0xff] %vm3000_vm1, %v4581_v20  ;;  %5420 = vst.msk [vmem:[%s7059_s30 + $0x98] sm:$0xff] %vm3000_vm1, %v4582_v22  ;;  %v3385_v46 = vrot.slane %v3377_v36, %v6870_v18  ;;  %v3392_v47 = vrot.slane %v3378_v24, %v6870_v18  ;;  %v1164_v42 = vcombine.low %v6763_v44, %v739_v39 }
 0x19b   : > { %5436 = vst.msk [vmem:[%s7059_s30 + $0x118] sm:$0xff] %vm3000_vm1, %v4583_v29  ;;  %5452 = vst.msk [vmem:[%s7059_s30 + $0x198] sm:$0xff] %vm3000_vm1, %v4584_v9  ;;  %v2055_v38 = vrot.slane %v2048_v28, %v6870_v18  ;;  %v2063_v27 = vrot.slane %v6209_v32, %v6870_v18  ;;  %v2071_v31 = vrot.slane %v2064_v34, %v6870_v18 }
 0x19c   : > { %v2079_v21 = vrot.slane %v6210_v35, %v6870_v18  ;;  %v1165_v37 = vcombine.high %v6763_v44, %v739_v39  ;;  %v3393_v6 = vcombine.low %v3369_v13, %v3385_v46  ;;  %v3394_v43 = vcombine.high %v3369_v13, %v3385_v46  ;;  %3207 = vrot.lane.b32.xlu1 %v6929_v16, %s6502_s18  ;;  %v737_v13 = vpop.permute.xlu0 %736 }
 0x19d   : > { %v2080_v7 = vcombine.low %v2055_v38, %v2063_v27  ;;  %v2081_v3 = vcombine.high %v2055_v38, %v2063_v27  ;;  %v3409_v41 = vcombine.low %v3376_v33, %v3392_v47  ;;  %v3410_v30 = vcombine.high %v3376_v33, %v3392_v47  ;;  %3205 = vrot.lane.b32.xlu0 %v6932_v17, %s6502_s18 }
 0x19e   : > { %v2096_v4 = vcombine.low %v2071_v31, %v2079_v21  ;;  %v2097_v5 = vcombine.high %v2071_v31, %v2079_v21  ;;  %v3401_v50 = vrot.slane %v3393_v6, %v6880_v40  ;;  %v3408_v62 = vrot.slane %v3394_v43, %v6880_v40 }
 0x19f   : > { %v2088_v51 = vrot.slane %v2080_v7, %v6880_v40  ;;  %v2095_v10 = vrot.slane %v2081_v3, %v6880_v40  ;;  %v3417_v19 = vrot.slane %v3409_v41, %v6880_v40  ;;  %v3424_v20 = vrot.slane %v3410_v30, %v6880_v40  ;;  %v7247_v3 = vpop.permute.xlu1 %3091 }
 0x1a0   : > { %v2104_v44 = vrot.slane %v2096_v4, %v6880_v40  ;;  %v2111_v11 = vrot.slane %v2097_v5, %v6880_v40  ;;  %v4449_v32 = vcombine.low %v3401_v50, %v3408_v62  ;;  %v6241_v34 = vcombine.high %v3401_v50, %v3408_v62 }
 0x1a1   : > { %v4465_v35 = vcombine.low %v3417_v19, %v3424_v20  ;;  %v6242_v39 = vcombine.high %v3417_v19, %v3424_v20  ;;  %v1172_v33 = vrot.slane %v1164_v42, %v6870_v18  ;;  %v1179_v36 = vrot.slane %v1165_v37, %v6870_v18 }
 0x1a2   : > { %v2112_v22 = vcombine.low %v2088_v51, %v2104_v44  ;;  %v2113_v29 = vcombine.high %v2088_v51, %v2104_v44  ;;  %v2114_v9 = vcombine.low %v2095_v10, %v2111_v11  ;;  %v2115_v28 = vcombine.high %v2095_v10, %v2111_v11 }
 0x1a3   : > { %v1180_v24 = vcombine.low %v7171_v2, %v787_v12  ;;  %v1181_v38 = vcombine.high %v7171_v2, %v787_v12  ;;  %v4456_v27 = vrot.slane %v4449_v32, %v6870_v18  ;;  %v4464_v31 = vrot.slane %v6241_v34, %v6870_v18  ;;  %v785_v12 = vpop.permute.xlu0 %784 }
 0x1a4   : > { %3003 = vst.msk [vmem:[%s6972_s20 + $0x10] sm:$0xff] %vm3000_vm1, %v2112_v22  ;;  %3019 = vst.msk [vmem:[%s6972_s20 + $0x90] sm:$0xff] %vm3000_vm1, %v2113_v29  ;;  %v4472_v21 = vrot.slane %v4465_v35, %v6870_v18  ;;  %v4480_v46 = vrot.slane %v6242_v39, %v6870_v18  ;;  %v1096_v47 = vcombine.low %v6766_v45, %v737_v13 }
 0x1a5   : > { %3035 = vst.msk [vmem:[%s6972_s20 + $0x110] sm:$0xff] %vm3000_vm1, %v2114_v9  ;;  %3051 = vst.msk [vmem:[%s6972_s20 + $0x190] sm:$0xff] %vm3000_vm1, %v2115_v28  ;;  %v1097_v7 = vcombine.high %v6766_v45, %v737_v13  ;;  %v1188_v42 = vrot.slane %v1180_v24, %v6870_v18  ;;  %v1195_v37 = vrot.slane %v1181_v38, %v6870_v18  ;;  %v3140_v13 = vpop.permute.xlu1 %3139 }
 0x1a6   : > { %v4481_v4 = vcombine.low %v4456_v27, %v4464_v31  ;;  %v4482_v2 = vcombine.high %v4456_v27, %v4464_v31  ;;  %v4497_v5 = vcombine.low %v4472_v21, %v4480_v46  ;;  %v4498_v6 = vcombine.high %v4472_v21, %v4480_v46 }
 0x1a7   : > { %v1196_v43 = vcombine.low %v1172_v33, %v1188_v42  ;;  %v1197_v41 = vcombine.high %v1172_v33, %v1188_v42  ;;  %v1212_v30 = vcombine.low %v1179_v36, %v1195_v37  ;;  %v1213_v51 = vcombine.high %v1179_v36, %v1195_v37 }
 0x1a8   : > { %v4489_v10 = vrot.slane %v4481_v4, %v6880_v40  ;;  %v4496_v44 = vrot.slane %v4482_v2, %v6880_v40  ;;  %v4505_v45 = vrot.slane %v4497_v5, %v6880_v40  ;;  %v4512_v11 = vrot.slane %v4498_v6, %v6880_v40  ;;  %v7275_v4 = vpop.permute.xlu0 %3089 }
 0x1a9   : > { %v1204_v50 = vrot.slane %v1196_v43, %v6880_v40  ;;  %v1211_v62 = vrot.slane %v1197_v41, %v6880_v40  ;;  %v1220_v19 = vrot.slane %v1212_v30, %v6880_v40  ;;  %v1227_v20 = vrot.slane %v1213_v51, %v6880_v40 }
 0x1aa   : > { %v4513_v22 = vcombine.low %v4489_v10, %v4505_v45  ;;  %v4514_v29 = vcombine.high %v4489_v10, %v4505_v45  ;;  %v4515_v9 = vcombine.low %v4496_v44, %v4512_v11  ;;  %v4516_v28 = vcombine.high %v4496_v44, %v4512_v11 }
 0x1ab   : > { %v2252_v32 = vcombine.low %v1204_v50, %v1211_v62  ;;  %v6215_v34 = vcombine.high %v1204_v50, %v1211_v62  ;;  %v2268_v35 = vcombine.low %v1220_v19, %v1227_v20  ;;  %v6216_v39 = vcombine.high %v1220_v19, %v1227_v20 }
 0x1ac   : > { %5403 = vst.msk [vmem:[%s7059_s30 + $0x10] sm:$0xff] %vm3000_vm1, %v4513_v22  ;;  %5419 = vst.msk [vmem:[%s7059_s30 + $0x90] sm:$0xff] %vm3000_vm1, %v4514_v29  ;;  %v1104_v33 = vrot.slane %v1096_v47, %v6870_v18  ;;  %v1111_v36 = vrot.slane %v1097_v7, %v6870_v18  ;;  %v1112_v24 = vcombine.low %v7207_v63, %v785_v12 }
 0x1ad   : > { %5435 = vst.msk [vmem:[%s7059_s30 + $0x110] sm:$0xff] %vm3000_vm1, %v4515_v9  ;;  %5451 = vst.msk [vmem:[%s7059_s30 + $0x190] sm:$0xff] %vm3000_vm1, %v4516_v28  ;;  %v1113_v38 = vcombine.high %v7207_v63, %v785_v12  ;;  %v2259_v27 = vrot.slane %v2252_v32, %v6870_v18  ;;  %v2267_v31 = vrot.slane %v6215_v34, %v6870_v18  ;;  %v3188_v12 = vpop.permute.xlu1 %3187 }
 0x1ae   : > { %v2275_v21 = vrot.slane %v2268_v35, %v6870_v18  ;;  %v2283_v46 = vrot.slane %v6216_v39, %v6870_v18  ;;  %v1120_v42 = vrot.slane %v1112_v24, %v6870_v18  ;;  %v3565_v47 = vcombine.low %v6781_v48, %v3140_v13  ;;  %v3138_v39 = vpop.permute.xlu0 %3137 }
 0x1af   : > { %v1127_v37 = vrot.slane %v1113_v38, %v6870_v18  ;;  %v3566_v7 = vcombine.high %v6781_v48, %v3140_v13  ;;  %v2284_v2 = vcombine.low %v2259_v27, %v2267_v31  ;;  %v2285_v63 = vcombine.high %v2259_v27, %v2267_v31 }
 0x1b0   : > { %v2300_v5 = vcombine.low %v2275_v21, %v2283_v46  ;;  %v2301_v6 = vcombine.high %v2275_v21, %v2283_v46  ;;  %v1128_v43 = vcombine.low %v1104_v33, %v1120_v42  ;;  %v1129_v41 = vcombine.high %v1104_v33, %v1120_v42 }
 0x1b1   : > { %v1144_v30 = vcombine.low %v1111_v36, %v1127_v37  ;;  %v1145_v51 = vcombine.high %v1111_v36, %v1127_v37  ;;  %v2292_v10 = vrot.slane %v2284_v2, %v6880_v40  ;;  %v2299_v44 = vrot.slane %v2285_v63, %v6880_v40 }
 0x1b2   : > { %v2308_v45 = vrot.slane %v2300_v5, %v6880_v40  ;;  %v2315_v11 = vrot.slane %v2301_v6, %v6880_v40  ;;  %v1136_v48 = vrot.slane %v1128_v43, %v6880_v40  ;;  %v1143_v50 = vrot.slane %v1129_v41, %v6880_v40 }
 0x1b3   : > { %v1152_v62 = vrot.slane %v1144_v30, %v6880_v40  ;;  %v1159_v19 = vrot.slane %v1145_v51, %v6880_v40  ;;  %v3573_v13 = vrot.slane %v3565_v47, %v6870_v18  ;;  %v3580_v33 = vrot.slane %v3566_v7, %v6870_v18  ;;  %v7307_v7 = vpop.permute.xlu1 %694 }
 0x1b4   : > { %v2316_v20 = vcombine.low %v2292_v10, %v2308_v45  ;;  %v2317_v22 = vcombine.high %v2292_v10, %v2308_v45  ;;  %v2318_v29 = vcombine.low %v2299_v44, %v2315_v11  ;;  %v2319_v9 = vcombine.high %v2299_v44, %v2315_v11  ;;  %v3186_v45 = vpop.permute.xlu0 %3185 }
 0x1b5   : > { %v2184_v28 = vcombine.low %v1136_v48, %v1143_v50  ;;  %v6213_v32 = vcombine.high %v1136_v48, %v1143_v50  ;;  %v2200_v34 = vcombine.low %v1152_v62, %v1159_v19  ;;  %v6214_v35 = vcombine.high %v1152_v62, %v1159_v19 }
 0x1b6   : > { %3006 = vst.msk [vmem:[%s6972_s20 + $0x28] sm:$0xff] %vm3000_vm1, %v2316_v20  ;;  %3022 = vst.msk [vmem:[%s6972_s20 + $0xa8] sm:$0xff] %vm3000_vm1, %v2317_v22  ;;  %v3581_v36 = vcombine.low %v7247_v3, %v3188_v12  ;;  %v3582_v24 = vcombine.high %v7247_v3, %v3188_v12  ;;  %v3497_v46 = vcombine.low %v6784_v49, %v3138_v39 }
 0x1b7   : > { %3038 = vst.msk [vmem:[%s6972_s20 + $0x128] sm:$0xff] %vm3000_vm1, %v2318_v29  ;;  %3054 = vst.msk [vmem:[%s6972_s20 + $0x1a8] sm:$0xff] %vm3000_vm1, %v2319_v9  ;;  %v2191_v38 = vrot.slane %v2184_v28, %v6870_v18  ;;  %v2199_v27 = vrot.slane %v6213_v32, %v6870_v18  ;;  %v2207_v31 = vrot.slane %v2200_v34, %v6870_v18  ;;  %v743_v34 = vpop.permute.xlu1 %742 }
 0x1b8   : > { %v2215_v21 = vrot.slane %v6214_v35, %v6870_v18  ;;  %v3498_v42 = vcombine.high %v6784_v49, %v3138_v39  ;;  %v3589_v37 = vrot.slane %v3581_v36, %v6870_v18  ;;  %v3596_v47 = vrot.slane %v3582_v24, %v6870_v18 }
 0x1b9   : > { %v2216_v2 = vcombine.low %v2191_v38, %v2199_v27  ;;  %v2217_v3 = vcombine.high %v2191_v38, %v2199_v27  ;;  %v3505_v35 = vrot.slane %v3497_v46, %v6870_v18  ;;  %v1300_v46 = vcombine.low %v6799_v52, %v743_v34 }
 0x1ba   : > { %v2232_v63 = vcombine.low %v2207_v31, %v2215_v21  ;;  %v2233_v5 = vcombine.high %v2207_v31, %v2215_v21  ;;  %v3597_v6 = vcombine.low %v3573_v13, %v3589_v37  ;;  %v3598_v43 = vcombine.high %v3573_v13, %v3589_v37  ;;  %v7335_v37 = vpop.permute.xlu0 %692 }
 0x1bb   : > { %v3613_v41 = vcombine.low %v3580_v33, %v3596_v47  ;;  %v3614_v30 = vcombine.high %v3580_v33, %v3596_v47  ;;  %v2224_v51 = vrot.slane %v2216_v2, %v6880_v40  ;;  %v2231_v10 = vrot.slane %v2217_v3, %v6880_v40 }
 0x1bc   : > { %v2240_v49 = vrot.slane %v2232_v63, %v6880_v40  ;;  %v2247_v44 = vrot.slane %v2233_v5, %v6880_v40  ;;  %v3605_v11 = vrot.slane %v3597_v6, %v6880_v40  ;;  %v3612_v12 = vrot.slane %v3598_v43, %v6880_v40 }
 0x1bd   : > { %v3621_v48 = vrot.slane %v3613_v41, %v6880_v40  ;;  %v3628_v50 = vrot.slane %v3614_v30, %v6880_v40  ;;  %v3512_v39 = vrot.slane %v3498_v42, %v6870_v18  ;;  %v3513_v13 = vcombine.low %v7275_v4, %v3186_v45 }
 0x1be   : > { %v2248_v62 = vcombine.low %v2224_v51, %v2240_v49  ;;  %v2249_v19 = vcombine.high %v2224_v51, %v2240_v49  ;;  %v2250_v20 = vcombine.low %v2231_v10, %v2247_v44  ;;  %v2251_v22 = vcombine.high %v2231_v10, %v2247_v44  ;;  %v791_v49 = vpop.permute.xlu1 %790 }
 0x1bf   : > { %v4653_v29 = vcombine.low %v3605_v11, %v3612_v12  ;;  %v6247_v9 = vcombine.high %v3605_v11, %v3612_v12  ;;  %v4669_v28 = vcombine.low %v3621_v48, %v3628_v50  ;;  %v6248_v32 = vcombine.high %v3621_v48, %v3628_v50 }
 0x1c0   : > { %3005 = vst.msk [vmem:[%s6972_s20 + $0x20] sm:$0xff] %vm3000_vm1, %v2248_v62  ;;  %3021 = vst.msk [vmem:[%s6972_s20 + $0xa0] sm:$0xff] %vm3000_vm1, %v2249_v19  ;;  %v3514_v33 = vcombine.high %v7275_v4, %v3186_v45  ;;  %v3521_v31 = vrot.slane %v3513_v13, %v6870_v18  ;;  %v1301_v42 = vcombine.high %v6799_v52, %v743_v34 }
 0x1c1   : > { %3037 = vst.msk [vmem:[%s6972_s20 + $0x120] sm:$0xff] %vm3000_vm1, %v2250_v20  ;;  %3053 = vst.msk [vmem:[%s6972_s20 + $0x1a0] sm:$0xff] %vm3000_vm1, %v2251_v22  ;;  %v4660_v36 = vrot.slane %v4653_v29, %v6870_v18  ;;  %v4668_v24 = vrot.slane %v6247_v9, %v6870_v18  ;;  %v4676_v38 = vrot.slane %v4669_v28, %v6870_v18  ;;  %v741_v9 = vpop.permute.xlu0 %740 }
 0x1c2   : > { %v4684_v27 = vrot.slane %v6248_v32, %v6870_v18  ;;  %v3528_v21 = vrot.slane %v3514_v33, %v6870_v18  ;;  %v3529_v63 = vcombine.low %v3505_v35, %v3521_v31  ;;  %v3530_v5 = vcombine.high %v3505_v35, %v3521_v31 }
 0x1c3   : > { %v4685_v47 = vcombine.low %v4660_v36, %v4668_v24  ;;  %v4686_v4 = vcombine.high %v4660_v36, %v4668_v24  ;;  %v1308_v28 = vrot.slane %v1300_v46, %v6870_v18  ;;  %v1315_v32 = vrot.slane %v1301_v42, %v6870_v18 }
 0x1c4   : > { %v4701_v2 = vcombine.low %v4676_v38, %v4684_v27  ;;  %v4702_v3 = vcombine.high %v4676_v38, %v4684_v27  ;;  %v3545_v6 = vcombine.low %v3512_v39, %v3528_v21  ;;  %v3546_v43 = vcombine.high %v3512_v39, %v3528_v21  ;;  %v7367_v21 = vpop.permute.xlu1 %3095 }
 0x1c5   : > { %v4693_v41 = vrot.slane %v4685_v47, %v6880_v40  ;;  %v4700_v30 = vrot.slane %v4686_v4, %v6880_v40  ;;  %v3537_v52 = vrot.slane %v3529_v63, %v6880_v40  ;;  %v3544_v44 = vrot.slane %v3530_v5, %v6880_v40 }
 0x1c6   : > { %v4709_v51 = vrot.slane %v4701_v2, %v6880_v40  ;;  %v4716_v10 = vrot.slane %v4702_v3, %v6880_v40  ;;  %v3553_v45 = vrot.slane %v3545_v6, %v6880_v40  ;;  %v3560_v11 = vrot.slane %v3546_v43, %v6880_v40 }
 0x1c7   : > { %v4585_v19 = vcombine.low %v3537_v52, %v3544_v44  ;;  %v6245_v20 = vcombine.high %v3537_v52, %v3544_v44  ;;  %v1316_v34 = vcombine.low %v7307_v7, %v791_v49  ;;  %v1317_v35 = vcombine.high %v7307_v7, %v791_v49 }
 0x1c8   : > { %v4717_v12 = vcombine.low %v4693_v41, %v4709_v51  ;;  %v4718_v48 = vcombine.high %v4693_v41, %v4709_v51  ;;  %v4719_v50 = vcombine.low %v4700_v30, %v4716_v10  ;;  %v4720_v62 = vcombine.high %v4700_v30, %v4716_v10  ;;  %v789_v41 = vpop.permute.xlu0 %788 }
 0x1c9   : > { %v4601_v22 = vcombine.low %v3553_v45, %v3560_v11  ;;  %v6246_v29 = vcombine.high %v3553_v45, %v3560_v11  ;;  %v4592_v39 = vrot.slane %v4585_v19, %v6870_v18  ;;  %v4600_v13 = vrot.slane %v6245_v20, %v6870_v18  ;;  %v3144_v19 = vpop.permute.xlu1 %3143 }
 0x1ca   : > { %5406 = vst.msk [vmem:[%s7059_s30 + $0x28] sm:$0xff] %vm3000_vm1, %v4717_v12  ;;  %5422 = vst.msk [vmem:[%s7059_s30 + $0xa8] sm:$0xff] %vm3000_vm1, %v4718_v48  ;;  %v1232_v24 = vcombine.low %v6802_v53, %v741_v9  ;;  %v1233_v38 = vcombine.high %v6802_v53, %v741_v9  ;;  %v1324_v27 = vrot.slane %v1316_v34, %v6870_v18 }
 0x1cb   : > { %5438 = vst.msk [vmem:[%s7059_s30 + $0x128] sm:$0xff] %vm3000_vm1, %v4719_v50  ;;  %5454 = vst.msk [vmem:[%s7059_s30 + $0x1a8] sm:$0xff] %vm3000_vm1, %v4720_v62  ;;  %v4608_v33 = vrot.slane %v4601_v22, %v6870_v18  ;;  %v4616_v36 = vrot.slane %v6246_v29, %v6870_v18  ;;  %v1331_v31 = vrot.slane %v1317_v35, %v6870_v18 }
 0x1cc   : > { %v4617_v46 = vcombine.low %v4592_v39, %v4600_v13  ;;  %v4618_v7 = vcombine.high %v4592_v39, %v4600_v13  ;;  %v1332_v4 = vcombine.low %v1308_v28, %v1324_v27  ;;  %v1333_v2 = vcombine.high %v1308_v28, %v1324_v27 }
 0x1cd   : > { %v4633_v42 = vcombine.low %v4608_v33, %v4616_v36  ;;  %v4634_v47 = vcombine.high %v4608_v33, %v4616_v36  ;;  %v1348_v3 = vcombine.low %v1315_v32, %v1331_v31  ;;  %v1349_v63 = vcombine.high %v1315_v32, %v1331_v31  ;;  %v7395_v33 = vpop.permute.xlu0 %3093 }
 0x1ce   : > { %v4625_v5 = vrot.slane %v4617_v46, %v6880_v40  ;;  %v4632_v6 = vrot.slane %v4618_v7, %v6880_v40  ;;  %v1340_v30 = vrot.slane %v1332_v4, %v6880_v40  ;;  %v1347_v51 = vrot.slane %v1333_v2, %v6880_v40 }
 0x1cf   : > { %v4641_v53 = vrot.slane %v4633_v42, %v6880_v40  ;;  %v4648_v43 = vrot.slane %v4634_v47, %v6880_v40  ;;  %v1356_v10 = vrot.slane %v1348_v3, %v6880_v40  ;;  %v1363_v49 = vrot.slane %v1349_v63, %v6880_v40 }
 0x1d0   : > { %v2388_v12 = vcombine.low %v1340_v30, %v1347_v51  ;;  %v6219_v48 = vcombine.high %v1340_v30, %v1347_v51  ;;  %v1240_v20 = vrot.slane %v1232_v24, %v6870_v18  ;;  %v1247_v22 = vrot.slane %v1233_v38, %v6870_v18 }
 0x1d1   : > { %v4649_v52 = vcombine.low %v4625_v5, %v4641_v53  ;;  %v4650_v44 = vcombine.high %v4625_v5, %v4641_v53  ;;  %v4651_v45 = vcombine.low %v4632_v6, %v4648_v43  ;;  %v4652_v11 = vcombine.high %v4632_v6, %v4648_v43  ;;  %v3192_v5 = vpop.permute.xlu1 %3191 }
 0x1d2   : > { %v2404_v50 = vcombine.low %v1356_v10, %v1363_v49  ;;  %v6220_v62 = vcombine.high %v1356_v10, %v1363_v49  ;;  %v1248_v29 = vcombine.low %v7335_v37, %v789_v41  ;;  %v1249_v9 = vcombine.high %v7335_v37, %v789_v41 }
 0x1d3   : > { %5405 = vst.msk [vmem:[%s7059_s30 + $0x20] sm:$0xff] %vm3000_vm1, %v4649_v52  ;;  %5421 = vst.msk [vmem:[%s7059_s30 + $0xa0] sm:$0xff] %vm3000_vm1, %v4650_v44  ;;  %v2395_v28 = vrot.slane %v2388_v12, %v6870_v18  ;;  %v2403_v32 = vrot.slane %v6219_v48, %v6870_v18  ;;  %v3701_v36 = vcombine.low %v6817_v56, %v3144_v19 }
 0x1d4   : > { %5437 = vst.msk [vmem:[%s7059_s30 + $0x120] sm:$0xff] %vm3000_vm1, %v4651_v45  ;;  %5453 = vst.msk [vmem:[%s7059_s30 + $0x1a0] sm:$0xff] %vm3000_vm1, %v4652_v11  ;;  %v2411_v34 = vrot.slane %v2404_v50, %v6870_v18  ;;  %v2419_v35 = vrot.slane %v6220_v62, %v6870_v18  ;;  %v1256_v39 = vrot.slane %v1248_v29, %v6870_v18  ;;  %v3142_v11 = vpop.permute.xlu0 %3141 }
 0x1d5   : > { %v1263_v13 = vrot.slane %v1249_v9, %v6870_v18  ;;  %v3702_v24 = vcombine.high %v6817_v56, %v3144_v19  ;;  %v2420_v38 = vcombine.low %v2395_v28, %v2403_v32  ;;  %v2421_v37 = vcombine.high %v2395_v28, %v2403_v32 }
 0x1d6   : > { %v2436_v27 = vcombine.low %v2411_v34, %v2419_v35  ;;  %v2437_v31 = vcombine.high %v2411_v34, %v2419_v35  ;;  %v1264_v46 = vcombine.low %v1240_v20, %v1256_v39  ;;  %v1265_v7 = vcombine.high %v1240_v20, %v1256_v39  ;;  %v7427_v35 = vpop.permute.xlu1 %698 }
 0x1d7   : > { %v1280_v42 = vcombine.low %v1247_v22, %v1263_v13  ;;  %v1281_v47 = vcombine.high %v1247_v22, %v1263_v13  ;;  %v2428_v4 = vrot.slane %v2420_v38, %v6880_v40  ;;  %v2435_v2 = vrot.slane %v2421_v37, %v6880_v40 }
 0x1d8   : > { %v2444_v3 = vrot.slane %v2436_v27, %v6880_v40  ;;  %v2451_v63 = vrot.slane %v2437_v31, %v6880_v40  ;;  %v1272_v56 = vrot.slane %v1264_v46, %v6880_v40  ;;  %v1279_v6 = vrot.slane %v1265_v7, %v6880_v40 }
 0x1d9   : > { %v1288_v53 = vrot.slane %v1280_v42, %v6880_v40  ;;  %v1295_v43 = vrot.slane %v1281_v47, %v6880_v40  ;;  %v3709_v12 = vrot.slane %v3701_v36, %v6870_v18  ;;  %v3716_v48 = vrot.slane %v3702_v24, %v6870_v18  ;;  %v3190_v42 = vpop.permute.xlu0 %3189 }
 0x1da   : > { %v2452_v41 = vcombine.low %v2428_v4, %v2444_v3  ;;  %v2453_v30 = vcombine.high %v2428_v4, %v2444_v3  ;;  %v2454_v51 = vcombine.low %v2435_v2, %v2451_v63  ;;  %v2455_v10 = vcombine.high %v2435_v2, %v2451_v63 }
 0x1db   : > { %v2320_v49 = vcombine.low %v1272_v56, %v1279_v6  ;;  %v6217_v52 = vcombine.high %v1272_v56, %v1279_v6  ;;  %v2336_v44 = vcombine.low %v1288_v53, %v1295_v43  ;;  %v6218_v45 = vcombine.high %v1288_v53, %v1295_v43 }
 0x1dc   : > { %3008 = vst.msk [vmem:[%s6972_s20 + $0x38] sm:$0xff] %vm3000_vm1, %v2452_v41  ;;  %3024 = vst.msk [vmem:[%s6972_s20 + $0xb8] sm:$0xff] %vm3000_vm1, %v2453_v30  ;;  %v3717_v50 = vcombine.low %v7367_v21, %v3192_v5  ;;  %v3718_v62 = vcombine.high %v7367_v21, %v3192_v5  ;;  %v3633_v9 = vcombine.low %v6820_v57, %v3142_v11 }
 0x1dd   : > { %3040 = vst.msk [vmem:[%s6972_s20 + $0x138] sm:$0xff] %vm3000_vm1, %v2454_v51  ;;  %3056 = vst.msk [vmem:[%s6972_s20 + $0x1b8] sm:$0xff] %vm3000_vm1, %v2455_v10  ;;  %v2327_v19 = vrot.slane %v2320_v49, %v6870_v18  ;;  %v2335_v20 = vrot.slane %v6217_v52, %v6870_v18  ;;  %v2343_v22 = vrot.slane %v2336_v44, %v6870_v18  ;;  %v747_v51 = vpop.permute.xlu1 %746 }
 0x1de   : > { %v2351_v29 = vrot.slane %v6218_v45, %v6870_v18  ;;  %v3634_v28 = vcombine.high %v6820_v57, %v3142_v11  ;;  %v3725_v32 = vrot.slane %v3717_v50, %v6870_v18  ;;  %v3732_v34 = vrot.slane %v3718_v62, %v6870_v18 }
 0x1df   : > { %v2352_v39 = vcombine.low %v2327_v19, %v2335_v20  ;;  %v2353_v21 = vcombine.high %v2327_v19, %v2335_v20  ;;  %v3641_v10 = vrot.slane %v3633_v9, %v6870_v18  ;;  %v3649_v52 = vcombine.low %v7395_v33, %v3190_v42  ;;  %v7455_v19 = vpop.permute.xlu0 %696 }
 0x1e0   : > { %v2368_v13 = vcombine.low %v2343_v22, %v2351_v29  ;;  %v2369_v36 = vcombine.high %v2343_v22, %v2351_v29  ;;  %v3733_v24 = vcombine.low %v3709_v12, %v3725_v32  ;;  %v3734_v38 = vcombine.high %v3709_v12, %v3725_v32 }
 0x1e1   : > { %v3749_v37 = vcombine.low %v3716_v48, %v3732_v34  ;;  %v3750_v27 = vcombine.high %v3716_v48, %v3732_v34  ;;  %v2360_v31 = vrot.slane %v2352_v39, %v6880_v40  ;;  %v2367_v46 = vrot.slane %v2353_v21, %v6880_v40 }
 0x1e2   : > { %v2376_v57 = vrot.slane %v2368_v13, %v6880_v40  ;;  %v2383_v7 = vrot.slane %v2369_v36, %v6880_v40  ;;  %v3741_v47 = vrot.slane %v3733_v24, %v6880_v40  ;;  %v3748_v4 = vrot.slane %v3734_v38, %v6880_v40 }
 0x1e3   : > { %v3757_v2 = vrot.slane %v3749_v37, %v6880_v40  ;;  %v3764_v3 = vrot.slane %v3750_v27, %v6880_v40  ;;  %v3648_v49 = vrot.slane %v3634_v28, %v6870_v18  ;;  %v3650_v44 = vcombine.high %v7395_v33, %v3190_v42  ;;  %v795_v37 = vpop.permute.xlu1 %794 }
 0x1e4   : > { %v2384_v63 = vcombine.low %v2360_v31, %v2376_v57  ;;  %v2385_v5 = vcombine.high %v2360_v31, %v2376_v57  ;;  %v2386_v56 = vcombine.low %v2367_v46, %v2383_v7  ;;  %v2387_v6 = vcombine.high %v2367_v46, %v2383_v7 }
 0x1e5   : > { %v4789_v53 = vcombine.low %v3741_v47, %v3748_v4  ;;  %v6251_v43 = vcombine.high %v3741_v47, %v3748_v4  ;;  %v4805_v41 = vcombine.low %v3757_v2, %v3764_v3  ;;  %v6252_v30 = vcombine.high %v3757_v2, %v3764_v3 }
 0x1e6   : > { %3007 = vst.msk [vmem:[%s6972_s20 + $0x30] sm:$0xff] %vm3000_vm1, %v2384_v63  ;;  %3023 = vst.msk [vmem:[%s6972_s20 + $0xb0] sm:$0xff] %vm3000_vm1, %v2385_v5  ;;  %v3657_v50 = vrot.slane %v3649_v52, %v6870_v18  ;;  %v3664_v62 = vrot.slane %v3650_v44, %v6870_v18  ;;  %v1436_v20 = vcombine.low %v6835_v60, %v747_v51  ;;  %v745_v5 = vpop.permute.xlu0 %744 }
 0x1e7   : > { %3039 = vst.msk [vmem:[%s6972_s20 + $0x130] sm:$0xff] %vm3000_vm1, %v2386_v56  ;;  %3055 = vst.msk [vmem:[%s6972_s20 + $0x1b0] sm:$0xff] %vm3000_vm1, %v2387_v6  ;;  %v4796_v45 = vrot.slane %v4789_v53, %v6870_v18  ;;  %v4804_v11 = vrot.slane %v6251_v43, %v6870_v18  ;;  %v4812_v12 = vrot.slane %v4805_v41, %v6870_v18 }
 0x1e8   : > { %v4820_v48 = vrot.slane %v6252_v30, %v6870_v18  ;;  %v1437_v22 = vcombine.high %v6835_v60, %v747_v51  ;;  %v3665_v32 = vcombine.low %v3641_v10, %v3657_v50  ;;  %v3666_v34 = vcombine.high %v3641_v10, %v3657_v50 }
 0x1e9   : > { %v4821_v29 = vcombine.low %v4796_v45, %v4804_v11  ;;  %v4822_v33 = vcombine.high %v4796_v45, %v4804_v11  ;;  %v3681_v39 = vcombine.low %v3648_v49, %v3664_v62  ;;  %v3682_v21 = vcombine.high %v3648_v49, %v3664_v62  ;;  %v7487_v11 = vpop.permute.xlu1 %3099 }
 0x1ea   : > { %v4837_v9 = vcombine.low %v4812_v12, %v4820_v48  ;;  %v4838_v28 = vcombine.high %v4812_v12, %v4820_v48  ;;  %v3673_v60 = vrot.slane %v3665_v32, %v6880_v40  ;;  %v3680_v27 = vrot.slane %v3666_v34, %v6880_v40  ;;  %v793_v32 = vpop.permute.xlu0 %792 }
 0x1eb   : > { %v4829_v13 = vrot.slane %v4821_v29, %v6880_v40  ;;  %v4836_v36 = vrot.slane %v4822_v33, %v6880_v40  ;;  %v3689_v31 = vrot.slane %v3681_v39, %v6880_v40  ;;  %v3696_v46 = vrot.slane %v3682_v21, %v6880_v40 }
 0x1ec   : > { %v4845_v24 = vrot.slane %v4837_v9, %v6880_v40  ;;  %v4852_v38 = vrot.slane %v4838_v28, %v6880_v40  ;;  %v4721_v4 = vcombine.low %v3673_v60, %v3680_v27  ;;  %v6249_v2 = vcombine.high %v3673_v60, %v3680_v27 }
 0x1ed   : > { %v4737_v3 = vcombine.low %v3689_v31, %v3696_v46  ;;  %v6250_v63 = vcombine.high %v3689_v31, %v3696_v46  ;;  %v1444_v56 = vrot.slane %v1436_v20, %v6870_v18  ;;  %v1451_v6 = vrot.slane %v1437_v22, %v6870_v18 }
 0x1ee   : > { %v4853_v57 = vcombine.low %v4829_v13, %v4845_v24  ;;  %v4854_v7 = vcombine.high %v4829_v13, %v4845_v24  ;;  %v4855_v42 = vcombine.low %v4836_v36, %v4852_v38  ;;  %v4856_v47 = vcombine.high %v4836_v36, %v4852_v38 }
 0x1ef   : > { %v1452_v53 = vcombine.low %v7427_v35, %v795_v37  ;;  %v1453_v43 = vcombine.high %v7427_v35, %v795_v37  ;;  %v4728_v41 = vrot.slane %v4721_v4, %v6870_v18  ;;  %v4736_v30 = vrot.slane %v6249_v2, %v6870_v18 }
 0x1f0   : > { %5408 = vst.msk [vmem:[%s7059_s30 + $0x38] sm:$0xff] %vm3000_vm1, %v4853_v57  ;;  %5424 = vst.msk [vmem:[%s7059_s30 + $0xb8] sm:$0xff] %vm3000_vm1, %v4854_v7  ;;  %v4744_v51 = vrot.slane %v4737_v3, %v6870_v18  ;;  %v4752_v10 = vrot.slane %v6250_v63, %v6870_v18  ;;  %v1368_v49 = vcombine.low %v6838_v61, %v745_v5  ;;  %v3148_v57 = vpop.permute.xlu1 %3147 }
 0x1f1   : > { %5440 = vst.msk [vmem:[%s7059_s30 + $0x138] sm:$0xff] %vm3000_vm1, %v4855_v42  ;;  %5456 = vst.msk [vmem:[%s7059_s30 + $0x1b8] sm:$0xff] %vm3000_vm1, %v4856_v47  ;;  %v1369_v52 = vcombine.high %v6838_v61, %v745_v5  ;;  %v1460_v44 = vrot.slane %v1452_v53, %v6870_v18  ;;  %v1467_v45 = vrot.slane %v1453_v43, %v6870_v18  ;;  %v7515_v53 = vpop.permute.xlu0 %3097 }
 0x1f2   : > { %v4753_v12 = vcombine.low %v4728_v41, %v4736_v30  ;;  %v4754_v35 = vcombine.high %v4728_v41, %v4736_v30  ;;  %v4769_v48 = vcombine.low %v4744_v51, %v4752_v10  ;;  %v4770_v50 = vcombine.high %v4744_v51, %v4752_v10 }
 0x1f3   : > { %v1468_v62 = vcombine.low %v1444_v56, %v1460_v44  ;;  %v1469_v20 = vcombine.high %v1444_v56, %v1460_v44  ;;  %v1484_v22 = vcombine.low %v1451_v6, %v1467_v45  ;;  %v1485_v29 = vcombine.high %v1451_v6, %v1467_v45 }
 0x1f4   : > { %v4761_v33 = vrot.slane %v4753_v12, %v6880_v40  ;;  %v4768_v9 = vrot.slane %v4754_v35, %v6880_v40  ;;  %v4777_v61 = vrot.slane %v4769_v48, %v6880_v40  ;;  %v4784_v28 = vrot.slane %v4770_v50, %v6880_v40 }
 0x1f5   : > { %v1476_v34 = vrot.slane %v1468_v62, %v6880_v40  ;;  %v1483_v39 = vrot.slane %v1469_v20, %v6880_v40  ;;  %v1492_v21 = vrot.slane %v1484_v22, %v6880_v40  ;;  %v1499_v13 = vrot.slane %v1485_v29, %v6880_v40  ;;  %v3196_v62 = vpop.permute.xlu1 %3195 }
 0x1f6   : > { %v4785_v36 = vcombine.low %v4761_v33, %v4777_v61  ;;  %v4786_v24 = vcombine.high %v4761_v33, %v4777_v61  ;;  %v4787_v38 = vcombine.low %v4768_v9, %v4784_v28  ;;  %v4788_v37 = vcombine.high %v4768_v9, %v4784_v28 }
 0x1f7   : > { %v2524_v60 = vcombine.low %v1476_v34, %v1483_v39  ;;  %v6223_v27 = vcombine.high %v1476_v34, %v1483_v39  ;;  %v2540_v31 = vcombine.low %v1492_v21, %v1499_v13  ;;  %v6224_v46 = vcombine.high %v1492_v21, %v1499_v13  ;;  %v3146_v13 = vpop.permute.xlu0 %3145 }
 0x1f8   : > { %5407 = vst.msk [vmem:[%s7059_s30 + $0x30] sm:$0xff] %vm3000_vm1, %v4785_v36  ;;  %5423 = vst.msk [vmem:[%s7059_s30 + $0xb0] sm:$0xff] %vm3000_vm1, %v4786_v24  ;;  %v1376_v7 = vrot.slane %v1368_v49, %v6870_v18  ;;  %v1383_v42 = vrot.slane %v1369_v52, %v6870_v18  ;;  %v1384_v47 = vcombine.low %v7455_v19, %v793_v32 }
 0x1f9   : > { %5439 = vst.msk [vmem:[%s7059_s30 + $0x130] sm:$0xff] %vm3000_vm1, %v4787_v38  ;;  %5455 = vst.msk [vmem:[%s7059_s30 + $0x1b0] sm:$0xff] %vm3000_vm1, %v4788_v37  ;;  %v1385_v4 = vcombine.high %v7455_v19, %v793_v32  ;;  %v2531_v2 = vrot.slane %v2524_v60, %v6870_v18  ;;  %v2539_v3 = vrot.slane %v6223_v27, %v6870_v18 }
 0x1fa   : > { %v2547_v63 = vrot.slane %v2540_v31, %v6870_v18  ;;  %v2555_v5 = vrot.slane %v6224_v46, %v6870_v18  ;;  %v1392_v56 = vrot.slane %v1384_v47, %v6870_v18  ;;  %v3837_v43 = vcombine.low %v6853_v0, %v3148_v57 }
 0x1fb   : > { %v1399_v6 = vrot.slane %v1385_v4, %v6870_v18  ;;  %v3838_v41 = vcombine.high %v6853_v0, %v3148_v57  ;;  %v2556_v30 = vcombine.low %v2531_v2, %v2539_v3  ;;  %v2557_v19 = vcombine.high %v2531_v2, %v2539_v3  ;;  %v7547_v4 = vpop.permute.xlu1 %702 }
 0x1fc   : > { %v2572_v51 = vcombine.low %v2547_v63, %v2555_v5  ;;  %v2573_v10 = vcombine.high %v2547_v63, %v2555_v5  ;;  %v1400_v49 = vcombine.low %v1376_v7, %v1392_v56  ;;  %v1401_v52 = vcombine.high %v1376_v7, %v1392_v56 }
 0x1fd   : > { %v1416_v44 = vcombine.low %v1383_v42, %v1399_v6  ;;  %v1417_v45 = vcombine.high %v1383_v42, %v1399_v6  ;;  %v2564_v12 = vrot.slane %v2556_v30, %v6880_v40  ;;  %v2571_v35 = vrot.slane %v2557_v19, %v6880_v40 }
 0x1fe   : > { %v2580_v48 = vrot.slane %v2572_v51, %v6880_v40  ;;  %v2587_v50 = vrot.slane %v2573_v10, %v6880_v40  ;;  %v1408_v0 = vrot.slane %v1400_v49, %v6880_v40  ;;  %v1415_v20 = vrot.slane %v1401_v52, %v6880_v40  ;;  %v3194_v51 = vpop.permute.xlu0 %3193 }
 0x1ff   : > { %v1424_v22 = vrot.slane %v1416_v44, %v6880_v40  ;;  %v1431_v29 = vrot.slane %v1417_v45, %v6880_v40  ;;  %v3845_v36 = vrot.slane %v3837_v43, %v6870_v18  ;;  %v3852_v24 = vrot.slane %v3838_v41, %v6870_v18 }
 0x200   : > { %v2588_v33 = vcombine.low %v2564_v12, %v2580_v48  ;;  %v2589_v9 = vcombine.high %v2564_v12, %v2580_v48  ;;  %v2590_v61 = vcombine.low %v2571_v35, %v2587_v50  ;;  %v2591_v28 = vcombine.high %v2571_v35, %v2587_v50 }
 0x201   : > { %v2456_v32 = vcombine.low %v1408_v0, %v1415_v20  ;;  %v6221_v34 = vcombine.high %v1408_v0, %v1415_v20  ;;  %v2472_v39 = vcombine.low %v1424_v22, %v1431_v29  ;;  %v6222_v21 = vcombine.high %v1424_v22, %v1431_v29  ;;  %v751_v22 = vpop.permute.xlu1 %750 }
 0x202   : > { %3010 = vst.msk [vmem:[%s6972_s20 + $0x48] sm:$0xff] %vm3000_vm1, %v2588_v33  ;;  %3026 = vst.msk [vmem:[%s6972_s20 + $0xc8] sm:$0xff] %vm3000_vm1, %v2589_v9  ;;  %v3853_v38 = vcombine.low %v7487_v11, %v3196_v62  ;;  %v3854_v37 = vcombine.high %v7487_v11, %v3196_v62  ;;  %v3769_v57 = vcombine.low %v6856_v1, %v3146_v13 }
 0x203   : > { %3042 = vst.msk [vmem:[%s6972_s20 + $0x148] sm:$0xff] %vm3000_vm1, %v2590_v61  ;;  %3058 = vst.msk [vmem:[%s6972_s20 + $0x1c8] sm:$0xff] %vm3000_vm1, %v2591_v28  ;;  %v2463_v60 = vrot.slane %v2456_v32, %v6870_v18  ;;  %v2471_v27 = vrot.slane %v6221_v34, %v6870_v18  ;;  %v2479_v31 = vrot.slane %v2472_v39, %v6870_v18 }
 0x204   : > { %v2487_v46 = vrot.slane %v6222_v21, %v6870_v18  ;;  %v3770_v7 = vcombine.high %v6856_v1, %v3146_v13  ;;  %v3861_v42 = vrot.slane %v3853_v38, %v6870_v18  ;;  %v3868_v47 = vrot.slane %v3854_v37, %v6870_v18 }
 0x205   : > { %v2488_v2 = vcombine.low %v2463_v60, %v2471_v27  ;;  %v2489_v11 = vcombine.high %v2463_v60, %v2471_v27  ;;  %v3777_v29 = vrot.slane %v3769_v57, %v6870_v18  ;;  %v3785_v9 = vcombine.low %v7515_v53, %v3194_v51 }
 0x206   : > { %v2504_v3 = vcombine.low %v2479_v31, %v2487_v46  ;;  %v2505_v63 = vcombine.high %v2479_v31, %v2487_v46  ;;  %v3869_v5 = vcombine.low %v3845_v36, %v3861_v42  ;;  %v3870_v56 = vcombine.high %v3845_v36, %v3861_v42  ;;  %v7575_v36 = vpop.permute.xlu0 %700 }
 0x207   : > { %v3885_v6 = vcombine.low %v3852_v24, %v3868_v47  ;;  %v3886_v43 = vcombine.high %v3852_v24, %v3868_v47  ;;  %v2496_v41 = vrot.slane %v2488_v2, %v6880_v40  ;;  %v2503_v30 = vrot.slane %v2489_v11, %v6880_v40 }
 0x208   : > { %v2512_v1 = vrot.slane %v2504_v3, %v6880_v40  ;;  %v2519_v19 = vrot.slane %v2505_v63, %v6880_v40  ;;  %v3877_v10 = vrot.slane %v3869_v5, %v6880_v40  ;;  %v3884_v49 = vrot.slane %v3870_v56, %v6880_v40  ;;  %v799_v3 = vpop.permute.xlu1 %798 }
 0x209   : > { %v3893_v52 = vrot.slane %v3885_v6, %v6880_v40  ;;  %v3900_v44 = vrot.slane %v3886_v43, %v6880_v40  ;;  %v3784_v33 = vrot.slane %v3770_v7, %v6870_v18  ;;  %v3786_v61 = vcombine.high %v7515_v53, %v3194_v51 }
 0x20a   : > { %v2520_v45 = vcombine.low %v2496_v41, %v2512_v1  ;;  %v2521_v12 = vcombine.high %v2496_v41, %v2512_v1  ;;  %v2522_v35 = vcombine.low %v2503_v30, %v2519_v19  ;;  %v2523_v48 = vcombine.high %v2503_v30, %v2519_v19 }
 0x20b   : > { %v4925_v50 = vcombine.low %v3877_v10, %v3884_v49  ;;  %v6255_v62 = vcombine.high %v3877_v10, %v3884_v49  ;;  %v4941_v0 = vcombine.low %v3893_v52, %v3900_v44  ;;  %v6256_v20 = vcombine.high %v3893_v52, %v3900_v44  ;;  %v749_v49 = vpop.permute.xlu0 %748 }
 0x20c   : > { %3009 = vst.msk [vmem:[%s6972_s20 + $0x40] sm:$0xff] %vm3000_vm1, %v2520_v45  ;;  %3025 = vst.msk [vmem:[%s6972_s20 + $0xc0] sm:$0xff] %vm3000_vm1, %v2521_v12  ;;  %v3793_v21 = vrot.slane %v3785_v9, %v6870_v18  ;;  %v3800_v13 = vrot.slane %v3786_v61, %v6870_v18  ;;  %v1572_v24 = vcombine.low %v6875_v23, %v751_v22 }
 0x20d   : > { %3041 = vst.msk [vmem:[%s6972_s20 + $0x140] sm:$0xff] %vm3000_vm1, %v2522_v35  ;;  %3057 = vst.msk [vmem:[%s6972_s20 + $0x1c0] sm:$0xff] %vm3000_vm1, %v2523_v48  ;;  %v4932_v28 = vrot.slane %v4925_v50, %v6870_v18  ;;  %v4940_v32 = vrot.slane %v6255_v62, %v6870_v18  ;;  %v4948_v34 = vrot.slane %v4941_v0, %v6870_v18 }
 0x20e   : > { %v4956_v39 = vrot.slane %v6256_v20, %v6870_v18  ;;  %v1573_v38 = vcombine.high %v6875_v23, %v751_v22  ;;  %v3801_v31 = vcombine.low %v3777_v29, %v3793_v21  ;;  %v3802_v46 = vcombine.high %v3777_v29, %v3793_v21 }
 0x20f   : > { %v4957_v37 = vcombine.low %v4932_v28, %v4940_v32  ;;  %v4958_v53 = vcombine.high %v4932_v28, %v4940_v32  ;;  %v3817_v57 = vcombine.low %v3784_v33, %v3800_v13  ;;  %v3818_v7 = vcombine.high %v3784_v33, %v3800_v13  ;;  %v7607_v33 = vpop.permute.xlu1 %3103 }
 0x210   : > { %v4973_v60 = vcombine.low %v4948_v34, %v4956_v39  ;;  %v4974_v27 = vcombine.high %v4948_v34, %v4956_v39  ;;  %v3809_v23 = vrot.slane %v3801_v31, %v6880_v40  ;;  %v3816_v63 = vrot.slane %v3802_v46, %v6880_v40 }
 0x211   : > { %v4965_v42 = vrot.slane %v4957_v37, %v6880_v40  ;;  %v4972_v47 = vrot.slane %v4958_v53, %v6880_v40  ;;  %v3825_v5 = vrot.slane %v3817_v57, %v6880_v40  ;;  %v3832_v56 = vrot.slane %v3818_v7, %v6880_v40  ;;  %v797_v37 = vpop.permute.xlu0 %796 }
 0x212   : > { %v4981_v2 = vrot.slane %v4973_v60, %v6880_v40  ;;  %v4988_v11 = vrot.slane %v4974_v27, %v6880_v40  ;;  %v4857_v1 = vcombine.low %v3809_v23, %v3816_v63  ;;  %v6253_v19 = vcombine.high %v3809_v23, %v3816_v63 }
 0x213   : > { %v4873_v51 = vcombine.low %v3825_v5, %v3832_v56  ;;  %v6254_v10 = vcombine.high %v3825_v5, %v3832_v56  ;;  %v1580_v52 = vrot.slane %v1572_v24, %v6870_v18  ;;  %v1587_v44 = vrot.slane %v1573_v38, %v6870_v18  ;;  %v3152_v23 = vpop.permute.xlu1 %3151 }
 0x214   : > { %v4989_v6 = vcombine.low %v4965_v42, %v4981_v2  ;;  %v4990_v43 = vcombine.high %v4965_v42, %v4981_v2  ;;  %v4991_v41 = vcombine.low %v4972_v47, %v4988_v11  ;;  %v4992_v30 = vcombine.high %v4972_v47, %v4988_v11 }
 0x215   : > { %v1588_v45 = vcombine.low %v7547_v4, %v799_v3  ;;  %v1589_v12 = vcombine.high %v7547_v4, %v799_v3  ;;  %v4864_v35 = vrot.slane %v4857_v1, %v6870_v18  ;;  %v4872_v48 = vrot.slane %v6253_v19, %v6870_v18 }
 0x216   : > { %5410 = vst.msk [vmem:[%s7059_s30 + $0x48] sm:$0xff] %vm3000_vm1, %v4989_v6  ;;  %5426 = vst.msk [vmem:[%s7059_s30 + $0xc8] sm:$0xff] %vm3000_vm1, %v4990_v43  ;;  %v4880_v50 = vrot.slane %v4873_v51, %v6870_v18  ;;  %v4888_v62 = vrot.slane %v6254_v10, %v6870_v18  ;;  %v1504_v0 = vcombine.low %v6878_v25, %v749_v49  ;;  %v7635_v10 = vpop.permute.xlu0 %3101 }
 0x217   : > { %5442 = vst.msk [vmem:[%s7059_s30 + $0x148] sm:$0xff] %vm3000_vm1, %v4991_v41  ;;  %5458 = vst.msk [vmem:[%s7059_s30 + $0x1c8] sm:$0xff] %vm3000_vm1, %v4992_v30  ;;  %v1505_v20 = vcombine.high %v6878_v25, %v749_v49  ;;  %v1596_v22 = vrot.slane %v1588_v45, %v6870_v18  ;;  %v1603_v29 = vrot.slane %v1589_v12, %v6870_v18 }
 0x218   : > { %v4889_v9 = vcombine.low %v4864_v35, %v4872_v48  ;;  %v4890_v4 = vcombine.high %v4864_v35, %v4872_v48  ;;  %v4905_v61 = vcombine.low %v4880_v50, %v4888_v62  ;;  %v4906_v28 = vcombine.high %v4880_v50, %v4888_v62 }
 0x219   : > { %v1604_v32 = vcombine.low %v1580_v52, %v1596_v22  ;;  %v1605_v34 = vcombine.high %v1580_v52, %v1596_v22  ;;  %v1620_v39 = vcombine.low %v1587_v44, %v1603_v29  ;;  %v1621_v21 = vcombine.high %v1587_v44, %v1603_v29 }
 0x21a   : > { %v4897_v13 = vrot.slane %v4889_v9, %v6880_v40  ;;  %v4904_v24 = vrot.slane %v4890_v4, %v6880_v40  ;;  %v4913_v25 = vrot.slane %v4905_v61, %v6880_v40  ;;  %v4920_v38 = vrot.slane %v4906_v28, %v6880_v40  ;;  %v3200_v9 = vpop.permute.xlu1 %3199 }
 0x21b   : > { %v1612_v53 = vrot.slane %v1604_v32, %v6880_v40  ;;  %v1619_v60 = vrot.slane %v1605_v34, %v6880_v40  ;;  %v1628_v27 = vrot.slane %v1620_v39, %v6880_v40  ;;  %v1635_v31 = vrot.slane %v1621_v21, %v6880_v40 }
 0x21c   : > { %v4921_v46 = vcombine.low %v4897_v13, %v4913_v25  ;;  %v4922_v57 = vcombine.high %v4897_v13, %v4913_v25  ;;  %v4923_v7 = vcombine.low %v4904_v24, %v4920_v38  ;;  %v4924_v42 = vcombine.high %v4904_v24, %v4920_v38 }
 0x21d   : > { %v2660_v47 = vcombine.low %v1612_v53, %v1619_v60  ;;  %v6227_v2 = vcombine.high %v1612_v53, %v1619_v60  ;;  %v2676_v11 = vcombine.low %v1628_v27, %v1635_v31  ;;  %v6228_v3 = vcombine.high %v1628_v27, %v1635_v31 }
 0x21e   : > { %5409 = vst.msk [vmem:[%s7059_s30 + $0x40] sm:$0xff] %vm3000_vm1, %v4921_v46  ;;  %5425 = vst.msk [vmem:[%s7059_s30 + $0xc0] sm:$0xff] %vm3000_vm1, %v4922_v57  ;;  %v1512_v63 = vrot.slane %v1504_v0, %v6870_v18  ;;  %v1519_v5 = vrot.slane %v1505_v20, %v6870_v18  ;;  %v1520_v56 = vcombine.low %v7575_v36, %v797_v37 }
 0x21f   : > { %5441 = vst.msk [vmem:[%s7059_s30 + $0x140] sm:$0xff] %vm3000_vm1, %v4923_v7  ;;  %5457 = vst.msk [vmem:[%s7059_s30 + $0x1c0] sm:$0xff] %vm3000_vm1, %v4924_v42  ;;  %v1521_v6 = vcombine.high %v7575_v36, %v797_v37  ;;  %v2667_v43 = vrot.slane %v2660_v47, %v6870_v18  ;;  %v2675_v41 = vrot.slane %v6227_v2, %v6870_v18  ;;  %v3150_v37 = vpop.permute.xlu0 %3149 }
 0x220   : > { %v2683_v30 = vrot.slane %v2676_v11, %v6870_v18  ;;  %v2691_v1 = vrot.slane %v6228_v3, %v6870_v18  ;;  %v1528_v19 = vrot.slane %v1520_v56, %v6870_v18  ;;  %v3973_v49 = vcombine.low %v6887_v26, %v3152_v23 }
 0x221   : > { %v1535_v51 = vrot.slane %v1521_v6, %v6870_v18  ;;  %v3974_v52 = vcombine.high %v6887_v26, %v3152_v23  ;;  %v2692_v44 = vcombine.low %v2667_v43, %v2675_v41  ;;  %v2693_v36 = vcombine.high %v2667_v43, %v2675_v41  ;;  %v7667_v23 = vpop.permute.xlu1 %706 }
 0x222   : > { %v2708_v45 = vcombine.low %v2683_v30, %v2691_v1  ;;  %v2709_v12 = vcombine.high %v2683_v30, %v2691_v1  ;;  %v1536_v35 = vcombine.low %v1512_v63, %v1528_v19  ;;  %v1537_v48 = vcombine.high %v1512_v63, %v1528_v19 }
 0x223   : > { %v1552_v50 = vcombine.low %v1519_v5, %v1535_v51  ;;  %v1553_v62 = vcombine.high %v1519_v5, %v1535_v51  ;;  %v2700_v0 = vrot.slane %v2692_v44, %v6880_v40  ;;  %v2707_v20 = vrot.slane %v2693_v36, %v6880_v40 }
 0x224   : > { %v2716_v22 = vrot.slane %v2708_v45, %v6880_v40  ;;  %v2723_v29 = vrot.slane %v2709_v12, %v6880_v40  ;;  %v1544_v26 = vrot.slane %v1536_v35, %v6880_v40  ;;  %v1551_v4 = vrot.slane %v1537_v48, %v6880_v40 }
 0x225   : > { %v1560_v61 = vrot.slane %v1552_v50, %v6880_v40  ;;  %v1567_v28 = vrot.slane %v1553_v62, %v6880_v40  ;;  %v3981_v53 = vrot.slane %v3973_v49, %v6870_v18  ;;  %v3988_v60 = vrot.slane %v3974_v52, %v6870_v18  ;;  %v3198_v49 = vpop.permute.xlu0 %3197 }
 0x226   : > { %v2724_v32 = vcombine.low %v2700_v0, %v2716_v22  ;;  %v2725_v34 = vcombine.high %v2700_v0, %v2716_v22  ;;  %v2726_v39 = vcombine.low %v2707_v20, %v2723_v29  ;;  %v2727_v21 = vcombine.high %v2707_v20, %v2723_v29  ;;  %v755_v29 = vpop.permute.xlu1 %754 }
 0x227   : > { %v2592_v13 = vcombine.low %v1544_v26, %v1551_v4  ;;  %v6225_v24 = vcombine.high %v1544_v26, %v1551_v4  ;;  %v2608_v25 = vcombine.low %v1560_v61, %v1567_v28  ;;  %v6226_v38 = vcombine.high %v1560_v61, %v1567_v28 }
 0x228   : > { %3012 = vst.msk [vmem:[%s6972_s20 + $0x58] sm:$0xff] %vm3000_vm1, %v2724_v32  ;;  %3028 = vst.msk [vmem:[%s6972_s20 + $0xd8] sm:$0xff] %vm3000_vm1, %v2725_v34  ;;  %v3989_v27 = vcombine.low %v7607_v33, %v3200_v9  ;;  %v3990_v31 = vcombine.high %v7607_v33, %v3200_v9  ;;  %v3905_v47 = vcombine.low %v6896_v54, %v3150_v37 }
 0x229   : > { %3044 = vst.msk [vmem:[%s6972_s20 + $0x158] sm:$0xff] %vm3000_vm1, %v2726_v39  ;;  %3060 = vst.msk [vmem:[%s6972_s20 + $0x1d8] sm:$0xff] %vm3000_vm1, %v2727_v21  ;;  %v2599_v46 = vrot.slane %v2592_v13, %v6870_v18  ;;  %v2607_v57 = vrot.slane %v6225_v24, %v6870_v18  ;;  %v2615_v7 = vrot.slane %v2608_v25, %v6870_v18  ;;  %v7695_v24 = vpop.permute.xlu0 %704 }
 0x22a   : > { %v2623_v42 = vrot.slane %v6226_v38, %v6870_v18  ;;  %v3906_v2 = vcombine.high %v6896_v54, %v3150_v37  ;;  %v3997_v11 = vrot.slane %v3989_v27, %v6870_v18  ;;  %v4004_v3 = vrot.slane %v3990_v31, %v6870_v18 }
 0x22b   : > { %v2624_v63 = vcombine.low %v2599_v46, %v2607_v57  ;;  %v2625_v33 = vcombine.high %v2599_v46, %v2607_v57  ;;  %v3913_v9 = vrot.slane %v3905_v47, %v6870_v18  ;;  %v3921_v4 = vcombine.low %v7635_v10, %v3198_v49 }
 0x22c   : > { %v2640_v5 = vcombine.low %v2615_v7, %v2623_v42  ;;  %v2641_v56 = vcombine.high %v2615_v7, %v2623_v42  ;;  %v4005_v6 = vcombine.low %v3981_v53, %v3997_v11  ;;  %v4006_v43 = vcombine.high %v3981_v53, %v3997_v11  ;;  %v803_v11 = vpop.permute.xlu1 %802 }
 0x22d   : > { %v4021_v41 = vcombine.low %v3988_v60, %v4004_v3  ;;  %v4022_v30 = vcombine.high %v3988_v60, %v4004_v3  ;;  %v2632_v1 = vrot.slane %v2624_v63, %v6880_v40  ;;  %v2639_v19 = vrot.slane %v2625_v33, %v6880_v40 }
 0x22e   : > { %v2648_v54 = vrot.slane %v2640_v5, %v6880_v40  ;;  %v2655_v51 = vrot.slane %v2641_v56, %v6880_v40  ;;  %v4013_v52 = vrot.slane %v4005_v6, %v6880_v40  ;;  %v4020_v44 = vrot.slane %v4006_v43, %v6880_v40 }
 0x22f   : > { %v4029_v36 = vrot.slane %v4021_v41, %v6880_v40  ;;  %v4036_v45 = vrot.slane %v4022_v30, %v6880_v40  ;;  %v3920_v26 = vrot.slane %v3906_v2, %v6870_v18  ;;  %v3922_v61 = vcombine.high %v7635_v10, %v3198_v49 }
 0x230   : > { %v2656_v12 = vcombine.low %v2632_v1, %v2648_v54  ;;  %v2657_v35 = vcombine.high %v2632_v1, %v2648_v54  ;;  %v2658_v48 = vcombine.low %v2639_v19, %v2655_v51  ;;  %v2659_v50 = vcombine.high %v2639_v19, %v2655_v51  ;;  %v753_v54 = vpop.permute.xlu0 %752 }
 0x231   : > { %v5061_v62 = vcombine.low %v4013_v52, %v4020_v44  ;;  %v6259_v0 = vcombine.high %v4013_v52, %v4020_v44  ;;  %v5077_v20 = vcombine.low %v4029_v36, %v4036_v45  ;;  %v6260_v22 = vcombine.high %v4029_v36, %v4036_v45 }
 0x232   : > { %3011 = vst.msk [vmem:[%s6972_s20 + $0x50] sm:$0xff] %vm3000_vm1, %v2656_v12  ;;  %3027 = vst.msk [vmem:[%s6972_s20 + $0xd0] sm:$0xff] %vm3000_vm1, %v2657_v35  ;;  %v3929_v21 = vrot.slane %v3921_v4, %v6870_v18  ;;  %v3936_v13 = vrot.slane %v3922_v61, %v6870_v18  ;;  %v1708_v25 = vcombine.low %v6899_v55, %v755_v29 }
 0x233   : > { %3043 = vst.msk [vmem:[%s6972_s20 + $0x150] sm:$0xff] %vm3000_vm1, %v2658_v48  ;;  %3059 = vst.msk [vmem:[%s6972_s20 + $0x1d0] sm:$0xff] %vm3000_vm1, %v2659_v50  ;;  %v5068_v28 = vrot.slane %v5061_v62, %v6870_v18  ;;  %v5076_v32 = vrot.slane %v6259_v0, %v6870_v18  ;;  %v5084_v34 = vrot.slane %v5077_v20, %v6870_v18  ;;  %v7727_v20 = vpop.permute.xlu1 %3107 }
 0x234   : > { %v5092_v39 = vrot.slane %v6260_v22, %v6870_v18  ;;  %v1709_v38 = vcombine.high %v6899_v55, %v755_v29  ;;  %v3937_v27 = vcombine.low %v3913_v9, %v3929_v21  ;;  %v3938_v31 = vcombine.high %v3913_v9, %v3929_v21  ;;  %v801_v21 = vpop.permute.xlu0 %800 }
 0x235   : > { %v5093_v37 = vcombine.low %v5068_v28, %v5076_v32  ;;  %v5094_v10 = vcombine.high %v5068_v28, %v5076_v32  ;;  %v3953_v46 = vcombine.low %v3920_v26, %v3936_v13  ;;  %v3954_v57 = vcombine.high %v3920_v26, %v3936_v13 }
 0x236   : > { %v5109_v53 = vcombine.low %v5084_v34, %v5092_v39  ;;  %v5110_v60 = vcombine.high %v5084_v34, %v5092_v39  ;;  %v3945_v55 = vrot.slane %v3937_v27, %v6880_v40  ;;  %v3952_v3 = vrot.slane %v3938_v31, %v6880_v40 }
 0x237   : > { %v5101_v7 = vrot.slane %v5093_v37, %v6880_v40  ;;  %v5108_v42 = vrot.slane %v5094_v10, %v6880_v40  ;;  %v3961_v63 = vrot.slane %v3953_v46, %v6880_v40  ;;  %v3968_v33 = vrot.slane %v3954_v57, %v6880_v40 }
 0x238   : > { %v5117_v47 = vrot.slane %v5109_v53, %v6880_v40  ;;  %v5124_v2 = vrot.slane %v5110_v60, %v6880_v40  ;;  %v4993_v41 = vcombine.low %v3945_v55, %v3952_v3  ;;  %v6257_v30 = vcombine.high %v3945_v55, %v3952_v3 }
 0x239   : > { %v5009_v1 = vcombine.low %v3961_v63, %v3968_v33  ;;  %v6258_v19 = vcombine.high %v3961_v63, %v3968_v33  ;;  %v1716_v51 = vrot.slane %v1708_v25, %v6870_v18  ;;  %v1723_v49 = vrot.slane %v1709_v38, %v6870_v18 }
 0x23a   : > { %v5125_v5 = vcombine.low %v5101_v7, %v5117_v47  ;;  %v5126_v56 = vcombine.high %v5101_v7, %v5117_v47  ;;  %v5127_v6 = vcombine.low %v5108_v42, %v5124_v2  ;;  %v5128_v43 = vcombine.high %v5108_v42, %v5124_v2  ;;  %v3156_v42 = vpop.permute.xlu1 %3155 }
 0x23b   : > { %v1724_v52 = vcombine.low %v7667_v23, %v803_v11  ;;  %v1725_v44 = vcombine.high %v7667_v23, %v803_v11  ;;  %v5000_v36 = vrot.slane %v4993_v41, %v6870_v18  ;;  %v5008_v45 = vrot.slane %v6257_v30, %v6870_v18 }
 0x23c   : > { %5412 = vst.msk [vmem:[%s7059_s30 + $0x58] sm:$0xff] %vm3000_vm1, %v5125_v5  ;;  %5428 = vst.msk [vmem:[%s7059_s30 + $0xd8] sm:$0xff] %vm3000_vm1, %v5126_v56  ;;  %v5016_v12 = vrot.slane %v5009_v1, %v6870_v18  ;;  %v5024_v35 = vrot.slane %v6258_v19, %v6870_v18  ;;  %v1640_v48 = vcombine.low %v6902_v58, %v753_v54 }
 0x23d   : > { %5444 = vst.msk [vmem:[%s7059_s30 + $0x158] sm:$0xff] %vm3000_vm1, %v5127_v6  ;;  %5460 = vst.msk [vmem:[%s7059_s30 + $0x1d8] sm:$0xff] %vm3000_vm1, %v5128_v43  ;;  %v1641_v50 = vcombine.high %v6902_v58, %v753_v54  ;;  %v1732_v62 = vrot.slane %v1724_v52, %v6870_v18  ;;  %v1739_v0 = vrot.slane %v1725_v44, %v6870_v18  ;;  %v7755_v43 = vpop.permute.xlu0 %3105 }
 0x23e   : > { %v5025_v22 = vcombine.low %v5000_v36, %v5008_v45  ;;  %v5026_v23 = vcombine.high %v5000_v36, %v5008_v45  ;;  %v5041_v29 = vcombine.low %v5016_v12, %v5024_v35  ;;  %v5042_v9 = vcombine.high %v5016_v12, %v5024_v35 }
 0x23f   : > { %v1740_v26 = vcombine.low %v1716_v51, %v1732_v62  ;;  %v1741_v4 = vcombine.high %v1716_v51, %v1732_v62  ;;  %v1756_v61 = vcombine.low %v1723_v49, %v1739_v0  ;;  %v1757_v28 = vcombine.high %v1723_v49, %v1739_v0 }
 0x240   : > { %v5033_v32 = vrot.slane %v5025_v22, %v6880_v40  ;;  %v5040_v34 = vrot.slane %v5026_v23, %v6880_v40  ;;  %v5049_v58 = vrot.slane %v5041_v29, %v6880_v40  ;;  %v5056_v39 = vrot.slane %v5042_v9, %v6880_v40 }
 0x241   : > { %v1748_v13 = vrot.slane %v1740_v26, %v6880_v40  ;;  %v1755_v25 = vrot.slane %v1741_v4, %v6880_v40  ;;  %v1764_v38 = vrot.slane %v1756_v61, %v6880_v40  ;;  %v1771_v37 = vrot.slane %v1757_v28, %v6880_v40 }
 0x242   : > { %v5057_v10 = vcombine.low %v5033_v32, %v5049_v58  ;;  %v5058_v53 = vcombine.high %v5033_v32, %v5049_v58  ;;  %v5059_v60 = vcombine.low %v5040_v34, %v5056_v39  ;;  %v5060_v27 = vcombine.high %v5040_v34, %v5056_v39  ;;  %v3154_v32 = vpop.permute.xlu0 %3153 }
 0x243   : > { %v2796_v31 = vcombine.low %v1748_v13, %v1755_v25  ;;  %v6231_v46 = vcombine.high %v1748_v13, %v1755_v25  ;;  %v2812_v57 = vcombine.low %v1764_v38, %v1771_v37  ;;  %v6232_v7 = vcombine.high %v1764_v38, %v1771_v37 }
 0x244   : > { %5411 = vst.msk [vmem:[%s7059_s30 + $0x50] sm:$0xff] %vm3000_vm1, %v5057_v10  ;;  %5427 = vst.msk [vmem:[%s7059_s30 + $0xd0] sm:$0xff] %vm3000_vm1, %v5058_v53  ;;  %v1648_v47 = vrot.slane %v1640_v48, %v6870_v18  ;;  %v1655_v2 = vrot.slane %v1641_v50, %v6870_v18  ;;  %v1656_v11 = vcombine.low %v7695_v24, %v801_v21  ;;  %v3204_v48 = vpop.permute.xlu1 %3203 }
 0x245   : > { %5443 = vst.msk [vmem:[%s7059_s30 + $0x150] sm:$0xff] %vm3000_vm1, %v5059_v60  ;;  %5459 = vst.msk [vmem:[%s7059_s30 + $0x1d0] sm:$0xff] %vm3000_vm1, %v5060_v27  ;;  %v1657_v55 = vcombine.high %v7695_v24, %v801_v21  ;;  %v2803_v3 = vrot.slane %v2796_v31, %v6870_v18  ;;  %v2811_v63 = vrot.slane %v6231_v46, %v6870_v18 }
 0x246   : > { %v2819_v33 = vrot.slane %v2812_v57, %v6870_v18  ;;  %v2827_v5 = vrot.slane %v6232_v7, %v6870_v18  ;;  %v1664_v56 = vrot.slane %v1656_v11, %v6870_v18  ;;  %v4109_v41 = vcombine.low %v6905_v59, %v3156_v42 }
 0x247   : > { %v1671_v6 = vrot.slane %v1657_v55, %v6870_v18  ;;  %v4110_v30 = vcombine.high %v6905_v59, %v3156_v42  ;;  %v2828_v1 = vcombine.low %v2803_v3, %v2811_v63  ;;  %v2829_v24 = vcombine.high %v2803_v3, %v2811_v63 }
 0x248   : > { %v2844_v19 = vcombine.low %v2819_v33, %v2827_v5  ;;  %v2845_v54 = vcombine.high %v2819_v33, %v2827_v5  ;;  %v1672_v51 = vcombine.low %v1648_v47, %v1664_v56  ;;  %v1673_v49 = vcombine.high %v1648_v47, %v1664_v56  ;;  %v7787_v31 = vpop.permute.xlu1 %710  ;;  %v3202_v33 = vpop.permute.xlu0 %3201 }
 0x249   : > { %v1688_v52 = vcombine.low %v1655_v2, %v1671_v6  ;;  %v1689_v44 = vcombine.high %v1655_v2, %v1671_v6  ;;  %v2836_v36 = vrot.slane %v2828_v1, %v6880_v40  ;;  %v2843_v45 = vrot.slane %v2829_v24, %v6880_v40 }
 0x24a   : > { %v2852_v12 = vrot.slane %v2844_v19, %v6880_v40  ;;  %v2859_v35 = vrot.slane %v2845_v54, %v6880_v40  ;;  %v1680_v59 = vrot.slane %v1672_v51, %v6880_v40  ;;  %v1687_v50 = vrot.slane %v1673_v49, %v6880_v40 }
 0x24b   : > { %v1696_v62 = vrot.slane %v1688_v52, %v6880_v40  ;;  %v1703_v0 = vrot.slane %v1689_v44, %v6880_v40  ;;  %v4117_v34 = vrot.slane %v4109_v41, %v6870_v18  ;;  %v4124_v58 = vrot.slane %v4110_v30, %v6870_v18 }
 0x24c   : > { %v2860_v22 = vcombine.low %v2836_v36, %v2852_v12  ;;  %v2861_v23 = vcombine.high %v2836_v36, %v2852_v12  ;;  %v2862_v29 = vcombine.low %v2843_v45, %v2859_v35  ;;  %v2863_v9 = vcombine.high %v2843_v45, %v2859_v35  ;;  %v759_v44 = vpop.permute.xlu1 %758 }
 0x24d   : > { %v2728_v26 = vcombine.low %v1680_v59, %v1687_v50  ;;  %v6229_v4 = vcombine.high %v1680_v59, %v1687_v50  ;;  %v2744_v61 = vcombine.low %v1696_v62, %v1703_v0  ;;  %v6230_v28 = vcombine.high %v1696_v62, %v1703_v0 }
 0x24e   : > { %3014 = vst.msk [vmem:[%s6972_s20 + $0x68] sm:$0xff] %vm3000_vm1, %v2860_v22  ;;  %3030 = vst.msk [vmem:[%s6972_s20 + $0xe8] sm:$0xff] %vm3000_vm1, %v2861_v23  ;;  %v4125_v39 = vcombine.low %v7727_v20, %v3204_v48  ;;  %v4126_v21 = vcombine.high %v7727_v20, %v3204_v48  ;;  %v4041_v10 = vcombine.low %v6914_v8, %v3154_v32  ;;  %v7815_v23 = vpop.permute.xlu0 %708 }
 0x24f   : > { %3046 = vst.msk [vmem:[%s6972_s20 + $0x168] sm:$0xff] %vm3000_vm1, %v2862_v29  ;;  %3062 = vst.msk [vmem:[%s6972_s20 + $0x1e8] sm:$0xff] %vm3000_vm1, %v2863_v9  ;;  %v2735_v13 = vrot.slane %v2728_v26, %v6870_v18  ;;  %v2743_v25 = vrot.slane %v6229_v4, %v6870_v18  ;;  %v2751_v38 = vrot.slane %v2744_v61, %v6870_v18 }
 0x250   : > { %v2759_v37 = vrot.slane %v6230_v28, %v6870_v18  ;;  %v4042_v53 = vcombine.high %v6914_v8, %v3154_v32  ;;  %v4133_v60 = vrot.slane %v4125_v39, %v6870_v18  ;;  %v4140_v27 = vrot.slane %v4126_v21, %v6870_v18 }
 0x251   : > { %v2760_v46 = vcombine.low %v2735_v13, %v2743_v25  ;;  %v2761_v20 = vcombine.high %v2735_v13, %v2743_v25  ;;  %v4049_v36 = vrot.slane %v4041_v10, %v6870_v18  ;;  %v4057_v12 = vcombine.low %v7755_v43, %v3202_v33 }
 0x252   : > { %v2776_v57 = vcombine.low %v2751_v38, %v2759_v37  ;;  %v2777_v7 = vcombine.high %v2751_v38, %v2759_v37  ;;  %v4141_v42 = vcombine.low %v4117_v34, %v4133_v60  ;;  %v4142_v47 = vcombine.high %v4117_v34, %v4133_v60  ;;  %v807_v38 = vpop.permute.xlu1 %806 }
 0x253   : > { %v4157_v2 = vcombine.low %v4124_v58, %v4140_v27  ;;  %v4158_v11 = vcombine.high %v4124_v58, %v4140_v27  ;;  %v2768_v55 = vrot.slane %v2760_v46, %v6880_v40  ;;  %v2775_v3 = vrot.slane %v2761_v20, %v6880_v40 }
 0x254   : > { %v2784_v8 = vrot.slane %v2776_v57, %v6880_v40  ;;  %v2791_v63 = vrot.slane %v2777_v7, %v6880_v40  ;;  %v4149_v5 = vrot.slane %v4141_v42, %v6880_v40  ;;  %v4156_v56 = vrot.slane %v4142_v47, %v6880_v40 }
 0x255   : > { %v4165_v6 = vrot.slane %v4157_v2, %v6880_v40  ;;  %v4172_v41 = vrot.slane %v4158_v11, %v6880_v40  ;;  %v4056_v45 = vrot.slane %v4042_v53, %v6870_v18  ;;  %v4058_v35 = vcombine.high %v7755_v43, %v3202_v33  ;;  %v757_v2 = vpop.permute.xlu0 %756 }
 0x256   : > { %v2792_v30 = vcombine.low %v2768_v55, %v2784_v8  ;;  %v2793_v1 = vcombine.high %v2768_v55, %v2784_v8  ;;  %v2794_v24 = vcombine.low %v2775_v3, %v2791_v63  ;;  %v2795_v19 = vcombine.high %v2775_v3, %v2791_v63 }
 0x257   : > { %v5197_v54 = vcombine.low %v4149_v5, %v4156_v56  ;;  %v6263_v51 = vcombine.high %v4149_v5, %v4156_v56  ;;  %v5213_v49 = vcombine.low %v4165_v6, %v4172_v41  ;;  %v6264_v52 = vcombine.high %v4165_v6, %v4172_v41 }
 0x258   : > { %3013 = vst.msk [vmem:[%s6972_s20 + $0x60] sm:$0xff] %vm3000_vm1, %v2792_v30  ;;  %3029 = vst.msk [vmem:[%s6972_s20 + $0xe0] sm:$0xff] %vm3000_vm1, %v2793_v1  ;;  %v4065_v0 = vrot.slane %v4057_v12, %v6870_v18  ;;  %v4072_v22 = vrot.slane %v4058_v35, %v6870_v18  ;;  %v1844_v29 = vcombine.low %v6923_v14, %v759_v44 }
 0x259   : > { %3045 = vst.msk [vmem:[%s6972_s20 + $0x160] sm:$0xff] %vm3000_vm1, %v2794_v24  ;;  %3061 = vst.msk [vmem:[%s6972_s20 + $0x1e0] sm:$0xff] %vm3000_vm1, %v2795_v19  ;;  %v5204_v48 = vrot.slane %v5197_v54, %v6870_v18  ;;  %v5212_v59 = vrot.slane %v6263_v51, %v6870_v18  ;;  %v5220_v50 = vrot.slane %v5213_v49, %v6870_v18  ;;  %v7847_v24 = vpop.permute.xlu1 %3111 }
 0x25a   : > { %v5228_v62 = vrot.slane %v6264_v52, %v6870_v18  ;;  %v1845_v9 = vcombine.high %v6923_v14, %v759_v44  ;;  %v4073_v28 = vcombine.low %v4049_v36, %v4065_v0  ;;  %v4074_v32 = vcombine.high %v4049_v36, %v4065_v0 }
 0x25b   : > { %v5229_v26 = vcombine.low %v5204_v48, %v5212_v59  ;;  %v5230_v43 = vcombine.high %v5204_v48, %v5212_v59  ;;  %v4089_v34 = vcombine.low %v4056_v45, %v4072_v22  ;;  %v4090_v58 = vcombine.high %v4056_v45, %v4072_v22  ;;  %v805_v48 = vpop.permute.xlu0 %804 }
 0x25c   : > { %v5245_v4 = vcombine.low %v5220_v50, %v5228_v62  ;;  %v5246_v61 = vcombine.high %v5220_v50, %v5228_v62  ;;  %v4081_v14 = vrot.slane %v4073_v28, %v6880_v40  ;;  %v4088_v37 = vrot.slane %v4074_v32, %v6880_v40 }
 0x25d   : > { %v5237_v39 = vrot.slane %v5229_v26, %v6880_v40  ;;  %v5244_v21 = vrot.slane %v5230_v43, %v6880_v40  ;;  %v4097_v10 = vrot.slane %v4089_v34, %v6880_v40  ;;  %v4104_v53 = vrot.slane %v4090_v58, %v6880_v40  ;;  %v3160_v32 = vpop.permute.xlu1 %3159 }
 0x25e   : > { %v5253_v13 = vrot.slane %v5245_v4, %v6880_v40  ;;  %v5260_v25 = vrot.slane %v5246_v61, %v6880_v40  ;;  %v5129_v57 = vcombine.low %v4081_v14, %v4088_v37  ;;  %v6261_v7 = vcombine.high %v4081_v14, %v4088_v37 }
 0x25f   : > { %v5145_v42 = vcombine.low %v4097_v10, %v4104_v53  ;;  %v6262_v47 = vcombine.high %v4097_v10, %v4104_v53  ;;  %v1852_v11 = vrot.slane %v1844_v29, %v6870_v18  ;;  %v1859_v55 = vrot.slane %v1845_v9, %v6870_v18  ;;  %v7875_v53 = vpop.permute.xlu0 %3109 }
 0x260   : > { %v5261_v60 = vcombine.low %v5237_v39, %v5253_v13  ;;  %v5262_v27 = vcombine.high %v5237_v39, %v5253_v13  ;;  %v5263_v46 = vcombine.low %v5244_v21, %v5260_v25  ;;  %v5264_v20 = vcombine.high %v5244_v21, %v5260_v25 }
 0x261   : > { %v1860_v3 = vcombine.low %v7787_v31, %v807_v38  ;;  %v1861_v8 = vcombine.high %v7787_v31, %v807_v38  ;;  %v5136_v63 = vrot.slane %v5129_v57, %v6870_v18  ;;  %v5144_v33 = vrot.slane %v6261_v7, %v6870_v18 }
 0x262   : > { %5414 = vst.msk [vmem:[%s7059_s30 + $0x68] sm:$0xff] %vm3000_vm1, %v5261_v60  ;;  %5430 = vst.msk [vmem:[%s7059_s30 + $0xe8] sm:$0xff] %vm3000_vm1, %v5262_v27  ;;  %v5152_v5 = vrot.slane %v5145_v42, %v6870_v18  ;;  %v5160_v56 = vrot.slane %v6262_v47, %v6870_v18  ;;  %v1776_v6 = vcombine.low %v6926_v15, %v757_v2 }
 0x263   : > { %5446 = vst.msk [vmem:[%s7059_s30 + $0x168] sm:$0xff] %vm3000_vm1, %v5263_v46  ;;  %5462 = vst.msk [vmem:[%s7059_s30 + $0x1e8] sm:$0xff] %vm3000_vm1, %v5264_v20  ;;  %v1777_v41 = vcombine.high %v6926_v15, %v757_v2  ;;  %v1868_v30 = vrot.slane %v1860_v3, %v6870_v18  ;;  %v1875_v1 = vrot.slane %v1861_v8, %v6870_v18 }
 0x264   : > { %v5161_v19 = vcombine.low %v5136_v63, %v5144_v33  ;;  %v5162_v31 = vcombine.high %v5136_v63, %v5144_v33  ;;  %v5177_v54 = vcombine.low %v5152_v5, %v5160_v56  ;;  %v5178_v51 = vcombine.high %v5152_v5, %v5160_v56  ;;  %v3208_v56 = vpop.permute.xlu1 %3207 }
 0x265   : > { %v1876_v49 = vcombine.low %v1852_v11, %v1868_v30  ;;  %v1877_v52 = vcombine.high %v1852_v11, %v1868_v30  ;;  %v1892_v44 = vcombine.low %v1859_v55, %v1875_v1  ;;  %v1893_v36 = vcombine.high %v1859_v55, %v1875_v1 }
 0x266   : > { %v5169_v45 = vrot.slane %v5161_v19, %v6880_v40  ;;  %v5176_v12 = vrot.slane %v5162_v31, %v6880_v40  ;;  %v5185_v15 = vrot.slane %v5177_v54, %v6880_v40  ;;  %v5192_v35 = vrot.slane %v5178_v51, %v6880_v40 }
 0x267   : > { %v1884_v59 = vrot.slane %v1876_v49, %v6880_v40  ;;  %v1891_v50 = vrot.slane %v1877_v52, %v6880_v40  ;;  %v1900_v62 = vrot.slane %v1892_v44, %v6880_v40  ;;  %v1907_v0 = vrot.slane %v1893_v36, %v6880_v40  ;;  %v3158_v49 = vpop.permute.xlu0 %3157 }
 0x268   : > { %v5193_v22 = vcombine.low %v5169_v45, %v5185_v15  ;;  %v5194_v29 = vcombine.high %v5169_v45, %v5185_v15  ;;  %v5195_v9 = vcombine.low %v5176_v12, %v5192_v35  ;;  %v5196_v26 = vcombine.high %v5176_v12, %v5192_v35 }
 0x269   : > { %v2932_v43 = vcombine.low %v1884_v59, %v1891_v50  ;;  %v6235_v4 = vcombine.high %v1884_v59, %v1891_v50  ;;  %v2948_v61 = vcombine.low %v1900_v62, %v1907_v0  ;;  %v6236_v28 = vcombine.high %v1900_v62, %v1907_v0 }
 0x26a   : > { %5413 = vst.msk [vmem:[%s7059_s30 + $0x60] sm:$0xff] %vm3000_vm1, %v5193_v22  ;;  %5429 = vst.msk [vmem:[%s7059_s30 + $0xe0] sm:$0xff] %vm3000_vm1, %v5194_v29  ;;  %v1784_v34 = vrot.slane %v1776_v6, %v6870_v18  ;;  %v1791_v58 = vrot.slane %v1777_v41, %v6870_v18  ;;  %v1792_v39 = vcombine.low %v7815_v23, %v805_v48 }
 0x26b   : > { %5445 = vst.msk [vmem:[%s7059_s30 + $0x160] sm:$0xff] %vm3000_vm1, %v5195_v9  ;;  %5461 = vst.msk [vmem:[%s7059_s30 + $0x1e0] sm:$0xff] %vm3000_vm1, %v5196_v26  ;;  %v1793_v21 = vcombine.high %v7815_v23, %v805_v48  ;;  %v2939_v13 = vrot.slane %v2932_v43, %v6870_v18  ;;  %v2947_v25 = vrot.slane %v6235_v4, %v6870_v18 }
 0x26c   : > { %v2955_v38 = vrot.slane %v2948_v61, %v6870_v18  ;;  %v2963_v14 = vrot.slane %v6236_v28, %v6870_v18  ;;  %v1800_v37 = vrot.slane %v1792_v39, %v6870_v18  ;;  %v4245_v60 = vcombine.low %v6929_v16, %v3160_v32 }
 0x26d   : > { %v1807_v10 = vrot.slane %v1793_v21, %v6870_v18  ;;  %v4246_v27 = vcombine.high %v6929_v16, %v3160_v32  ;;  %v2964_v46 = vcombine.low %v2939_v13, %v2947_v25  ;;  %v2965_v23 = vcombine.high %v2939_v13, %v2947_v25  ;;  %v3206_v25 = vpop.permute.xlu0 %3205 }
 0x26e   : > { %v2980_v20 = vcombine.low %v2955_v38, %v2963_v14  ;;  %v2981_v57 = vcombine.high %v2955_v38, %v2963_v14  ;;  %v1808_v7 = vcombine.low %v1784_v34, %v1800_v37  ;;  %v1809_v42 = vcombine.high %v1784_v34, %v1800_v37 }
 0x26f   : > { %v1824_v47 = vcombine.low %v1791_v58, %v1807_v10  ;;  %v1825_v2 = vcombine.high %v1791_v58, %v1807_v10  ;;  %v2972_v11 = vrot.slane %v2964_v46, %v6880_v40  ;;  %v2979_v55 = vrot.slane %v2965_v23, %v6880_v40 }
 0x270   : > { %v2988_v3 = vrot.slane %v2980_v20, %v6880_v40  ;;  %v2995_v8 = vrot.slane %v2981_v57, %v6880_v40  ;;  %v1816_v16 = vrot.slane %v1808_v7, %v6880_v40  ;;  %v1823_v63 = vrot.slane %v1809_v42, %v6880_v40 }
 0x271   : > { %v1832_v33 = vrot.slane %v1824_v47, %v6880_v40  ;;  %v1839_v5 = vrot.slane %v1825_v2, %v6880_v40  ;;  %v4253_v52 = vrot.slane %v4245_v60, %v6870_v18  ;;  %v4260_v44 = vrot.slane %v4246_v27, %v6870_v18 }
 0x272   : > { %v2996_v6 = vcombine.low %v2972_v11, %v2988_v3  ;;  %v2997_v41 = vcombine.high %v2972_v11, %v2988_v3  ;;  %v2998_v30 = vcombine.low %v2979_v55, %v2995_v8  ;;  %v2999_v1 = vcombine.high %v2979_v55, %v2995_v8 }
 0x273   : > { %v2864_v19 = vcombine.low %v1816_v16, %v1823_v63  ;;  %v6233_v31 = vcombine.high %v1816_v16, %v1823_v63  ;;  %v2880_v54 = vcombine.low %v1832_v33, %v1839_v5  ;;  %v6234_v51 = vcombine.high %v1832_v33, %v1839_v5 }
 0x274   : > { %3016 = vst.msk [vmem:[%s6972_s20 + $0x78] sm:$0xff] %vm3000_vm1, %v2996_v6  ;;  %3032 = vst.msk [vmem:[%s6972_s20 + $0xf8] sm:$0xff] %vm3000_vm1, %v2997_v41  ;;  %v4261_v36 = vcombine.low %v7847_v24, %v3208_v56  ;;  %v4262_v45 = vcombine.high %v7847_v24, %v3208_v56  ;;  %v4177_v59 = vcombine.low %v6932_v17, %v3158_v49 }
 0x275   : > { %3048 = vst.msk [vmem:[%s6972_s20 + $0x178] sm:$0xff] %vm3000_vm1, %v2998_v30  ;;  %3064 = vst.msk [vmem:[%s6972_s20 + $0x1f8] sm:$0xff] %vm3000_vm1, %v2999_v1  ;;  %v2871_v12 = vrot.slane %v2864_v19, %v6870_v18  ;;  %v2879_v15 = vrot.slane %v6233_v31, %v6870_v18  ;;  %v2887_v35 = vrot.slane %v2880_v54, %v6870_v18 }
 0x276   : > { %v2895_v48 = vrot.slane %v6234_v51, %v6870_v18  ;;  %v4178_v50 = vcombine.high %v6932_v17, %v3158_v49  ;;  %v4269_v62 = vrot.slane %v4261_v36, %v6870_v18  ;;  %v4276_v0 = vrot.slane %v4262_v45, %v6870_v18 }
 0x277   : > { %v2896_v22 = vcombine.low %v2871_v12, %v2879_v15  ;;  %v2897_v29 = vcombine.high %v2871_v12, %v2879_v15  ;;  %v4193_v20 = vcombine.low %v7875_v53, %v3206_v25  ;;  %v4194_v57 = vcombine.high %v7875_v53, %v3206_v25  ;;  %v5645_v25 = vld [vmem:[%s6972_s20 + $0x28] sm:$0xff] (%p6584_p5) }
 0x278   : > { %v2912_v9 = vcombine.low %v2887_v35, %v2895_v48  ;;  %v2913_v24 = vcombine.high %v2887_v35, %v2895_v48  ;;  %v4277_v26 = vcombine.low %v4253_v52, %v4269_v62  ;;  %v4278_v43 = vcombine.high %v4253_v52, %v4269_v62  ;;  %5646 = vst [vmem:[%s7981_s13 + $0x28] sm:$0xff] (%p6584_p5), %v5645_v25 }
 0x279   : > { %v4293_v4 = vcombine.low %v4260_v44, %v4276_v0  ;;  %v4294_v61 = vcombine.high %v4260_v44, %v4276_v0  ;;  %v2904_v28 = vrot.slane %v2896_v22, %v6880_v40  ;;  %v2911_v32 = vrot.slane %v2897_v29, %v6880_v40 }
 0x27a   : > { %v2920_v34 = vrot.slane %v2912_v9, %v6880_v40  ;;  %v2927_v17 = vrot.slane %v2913_v24, %v6880_v40  ;;  %v4285_v58 = vrot.slane %v4277_v26, %v6880_v40  ;;  %v4292_v39 = vrot.slane %v4278_v43, %v6880_v40 }
 0x27b   : > { %v4301_v21 = vrot.slane %v4293_v4, %v6880_v40  ;;  %v4308_v13 = vrot.slane %v4294_v61, %v6880_v40  ;;  %v4185_v11 = vrot.slane %v4177_v59, %v6870_v18  ;;  %v4192_v55 = vrot.slane %v4178_v50, %v6870_v18 }
 0x27c   : > { %v2928_v38 = vcombine.low %v2904_v28, %v2920_v34  ;;  %v2929_v14 = vcombine.high %v2904_v28, %v2920_v34  ;;  %v2930_v37 = vcombine.low %v2911_v32, %v2927_v17  ;;  %v2931_v10 = vcombine.high %v2911_v32, %v2927_v17 }
 0x27d   : > { %v5333_v60 = vcombine.low %v4285_v58, %v4292_v39  ;;  %v6267_v27 = vcombine.high %v4285_v58, %v4292_v39  ;;  %v5349_v46 = vcombine.low %v4301_v21, %v4308_v13  ;;  %v6268_v23 = vcombine.high %v4301_v21, %v4308_v13  ;;  %v5639_v39 = vld [vmem:[%s6972_s20 + $0x10] sm:$0xff] (%p6584_p5)  ;;  %v5641_v21 = vld [vmem:[%s6972_s20 + $0x18] sm:$0xff] (%p6584_p5)  ;;  %v5643_v13 = vld [vmem:[%s6972_s20 + $0x20] sm:$0xff] (%p6584_p5) }
 0x27e   : > { %3015 = vst.msk [vmem:[%s6972_s20 + $0x70] sm:$0xff] %vm3000_vm1, %v2928_v38  ;;  %3031 = vst.msk [vmem:[%s6972_s20 + $0xf0] sm:$0xff] %vm3000_vm1, %v2929_v14  ;;  %v4201_v3 = vrot.slane %v4193_v20, %v6870_v18  ;;  %v4208_v8 = vrot.slane %v4194_v57, %v6870_v18  ;;  %v5647_v38 = vld [vmem:[%s6972_s20 + $0x30] sm:$0xff] (%p6584_p5)  ;;  %v5649_v14 = vld [vmem:[%s6972_s20 + $0x38] sm:$0xff] (%p6584_p5) }
 0x27f   : > { %3047 = vst.msk [vmem:[%s6972_s20 + $0x170] sm:$0xff] %vm3000_vm1, %v2930_v37  ;;  %3063 = vst.msk [vmem:[%s6972_s20 + $0x1f0] sm:$0xff] %vm3000_vm1, %v2931_v10  ;;  %v5340_v7 = vrot.slane %v5333_v60, %v6870_v18  ;;  %v5348_v42 = vrot.slane %v6267_v27, %v6870_v18  ;;  %v5356_v47 = vrot.slane %v5349_v46, %v6870_v18  ;;  %v5651_v37 = vld [vmem:[%s6972_s20 + $0x40] sm:$0xff] (%p6584_p5)  ;;  %v5653_v10 = vld [vmem:[%s6972_s20 + $0x48] sm:$0xff] (%p6584_p5) }
 0x280   : > { %v5364_v2 = vrot.slane %v6268_v23, %v6870_v18  ;;  %v4209_v5 = vcombine.low %v4185_v11, %v4201_v3  ;;  %v4210_v56 = vcombine.high %v4185_v11, %v4201_v3  ;;  %v4225_v6 = vcombine.low %v4192_v55, %v4208_v8  ;;  %v5655_v60 = vld [vmem:[%s6972_s20 + $0x50] sm:$0xff] (%p6584_p5)  ;;  %v5657_v27 = vld [vmem:[%s6972_s20 + $0x58] sm:$0xff] (%p6584_p5)  ;;  %5640 = vst [vmem:[%s7981_s13 + $0x10] sm:$0xff] (%p6584_p5), %v5639_v39  ;;  %v5659_v46 = vld [vmem:[%s6972_s20 + $0x60] sm:$0xff] (%p6584_p5) }
 0x281   : > { %v5365_v16 = vcombine.low %v5340_v7, %v5348_v42  ;;  %v5366_v63 = vcombine.high %v5340_v7, %v5348_v42  ;;  %v4226_v41 = vcombine.high %v4192_v55, %v4208_v8  ;;  %5642 = vst [vmem:[%s7981_s13 + $0x18] sm:$0xff] (%p6584_p5), %v5641_v21  ;;  %5644 = vst [vmem:[%s7981_s13 + $0x20] sm:$0xff] (%p6584_p5), %v5643_v13  ;;  %v5661_v23 = vld [vmem:[%s6972_s20 + $0x68] sm:$0xff] (%p6584_p5)  ;;  %v5665_v57 = vld [vmem:[%s6972_s20 + $0x78] sm:$0xff] (%p6584_p5) }
 0x282   : > { %v5381_v33 = vcombine.low %v5356_v47, %v5364_v2  ;;  %v5382_v53 = vcombine.high %v5356_v47, %v5364_v2  ;;  %v4217_v54 = vrot.slane %v4209_v5, %v6880_v40  ;;  %v4224_v51 = vrot.slane %v4210_v56, %v6880_v40  ;;  %5648 = vst [vmem:[%s7981_s13 + $0x30] sm:$0xff] (%p6584_p5), %v5647_v38  ;;  %v5667_v7 = vld [vmem:[%s6972_s20 + $0x80] sm:$0xff] (%p6584_p5)  ;;  %v5669_v42 = vld [vmem:[%s6972_s20 + $0x88] sm:$0xff] (%p6584_p5)  ;;  %v5671_v47 = vld [vmem:[%s6972_s20 + $0x90] sm:$0xff] (%p6584_p5) }
 0x283   : > { %v5373_v30 = vrot.slane %v5365_v16, %v6880_v40  ;;  %v5380_v1 = vrot.slane %v5366_v63, %v6880_v40  ;;  %v4233_v49 = vrot.slane %v4225_v6, %v6880_v40  ;;  %v4240_v52 = vrot.slane %v4226_v41, %v6880_v40  ;;  %5650 = vst [vmem:[%s7981_s13 + $0x38] sm:$0xff] (%p6584_p5), %v5649_v14  ;;  %v5673_v2 = vld [vmem:[%s6972_s20 + $0x98] sm:$0xff] (%p6584_p5)  ;;  %v5675_v11 = vld [vmem:[%s6972_s20 + $0xa0] sm:$0xff] (%p6584_p5)  ;;  %v5677_v55 = vld [vmem:[%s6972_s20 + $0xa8] sm:$0xff] (%p6584_p5) }
 0x284   : > { %v5389_v19 = vrot.slane %v5381_v33, %v6880_v40  ;;  %v5396_v31 = vrot.slane %v5382_v53, %v6880_v40  ;;  %v5265_v15 = vcombine.low %v4217_v54, %v4224_v51  ;;  %v6265_v35 = vcombine.high %v4217_v54, %v4224_v51  ;;  %5652 = vst [vmem:[%s7981_s13 + $0x40] sm:$0xff] (%p6584_p5), %v5651_v37  ;;  %v5679_v3 = vld [vmem:[%s6972_s20 + $0xb0] sm:$0xff] (%p6584_p5)  ;;  %v5681_v8 = vld [vmem:[%s6972_s20 + $0xb8] sm:$0xff] (%p6584_p5)  ;;  %v5683_v16 = vld [vmem:[%s6972_s20 + $0xc0] sm:$0xff] (%p6584_p5) }
 0x285   : > { %v5281_v48 = vcombine.low %v4233_v49, %v4240_v52  ;;  %v6266_v59 = vcombine.high %v4233_v49, %v4240_v52  ;;  %5654 = vst [vmem:[%s7981_s13 + $0x48] sm:$0xff] (%p6584_p5), %v5653_v10  ;;  %5656 = vst [vmem:[%s7981_s13 + $0x50] sm:$0xff] (%p6584_p5), %v5655_v60  ;;  %v5663_v20 = vld [vmem:[%s6972_s20 + $0x70] sm:$0xff] (%p6584_p5)  ;;  %v5685_v63 = vld [vmem:[%s6972_s20 + $0xc8] sm:$0xff] (%p6584_p5) }
 0x286   : > { %v5397_v44 = vcombine.low %v5373_v30, %v5389_v19  ;;  %v5398_v36 = vcombine.high %v5373_v30, %v5389_v19  ;;  %v5399_v45 = vcombine.low %v5380_v1, %v5396_v31  ;;  %v5400_v12 = vcombine.high %v5380_v1, %v5396_v31  ;;  %5658 = vst [vmem:[%s7981_s13 + $0x58] sm:$0xff] (%p6584_p5), %v5657_v27  ;;  %v5687_v33 = vld [vmem:[%s6972_s20 + $0xd0] sm:$0xff] (%p6584_p5)  ;;  %v5689_v53 = vld [vmem:[%s6972_s20 + $0xd8] sm:$0xff] (%p6584_p5)  ;;  %v5691_v5 = vld [vmem:[%s6972_s20 + $0xe0] sm:$0xff] (%p6584_p5) }
 0x287   : > { %v5272_v50 = vrot.slane %v5265_v15, %v6870_v18  ;;  %v5280_v62 = vrot.slane %v6265_v35, %v6870_v18  ;;  %v5288_v0 = vrot.slane %v5281_v48, %v6870_v18  ;;  %v5296_v22 = vrot.slane %v6266_v59, %v6870_v18  ;;  %v5635_v18 = vld [vmem:[%s6972_s20] sm:$0xff] (%p6584_p5)  ;;  %5660 = vst [vmem:[%s7981_s13 + $0x60] sm:$0xff] (%p6584_p5), %v5659_v46  ;;  %v5693_v56 = vld [vmem:[%s6972_s20 + $0xe8] sm:$0xff] (%p6584_p5)  ;;  %v5695_v6 = vld [vmem:[%s6972_s20 + $0xf0] sm:$0xff] (%p6584_p5) }
 0x288   : > { %5416 = vst.msk [vmem:[%s7059_s30 + $0x78] sm:$0xff] %vm3000_vm1, %v5397_v44  ;;  %5432 = vst.msk [vmem:[%s7059_s30 + $0xf8] sm:$0xff] %vm3000_vm1, %v5398_v36  ;;  %v5697_v41 = vld [vmem:[%s6972_s20 + $0xf8] sm:$0xff] (%p6584_p5)  ;;  %v5699_v30 = vld [vmem:[%s6972_s20 + $0x100] sm:$0xff] (%p6584_p5) }
 0x289   : > { %5448 = vst.msk [vmem:[%s7059_s30 + $0x178] sm:$0xff] %vm3000_vm1, %v5399_v45  ;;  %5464 = vst.msk [vmem:[%s7059_s30 + $0x1f8] sm:$0xff] %vm3000_vm1, %v5400_v12  ;;  %v5297_v29 = vcombine.low %v5272_v50, %v5280_v62  ;;  %v5298_v9 = vcombine.high %v5272_v50, %v5280_v62  ;;  %v5313_v24 = vcombine.low %v5288_v0, %v5296_v22  ;;  %v5701_v1 = vld [vmem:[%s6972_s20 + $0x108] sm:$0xff] (%p6584_p5)  ;;  %v5703_v19 = vld [vmem:[%s6972_s20 + $0x110] sm:$0xff] (%p6584_p5) }
 0x28a   : > { %v5314_v26 = vcombine.high %v5288_v0, %v5296_v22  ;;  %5636 = vst [vmem:[%s7981_s13] sm:$0xff] (%p6584_p5), %v5635_v18  ;;  %5662 = vst [vmem:[%s7981_s13 + $0x68] sm:$0xff] (%p6584_p5), %v5661_v23  ;;  %v5705_v31 = vld [vmem:[%s6972_s20 + $0x118] sm:$0xff] (%p6584_p5)  ;;  %v5707_v54 = vld [vmem:[%s6972_s20 + $0x120] sm:$0xff] (%p6584_p5) }
 0x28b   : > { %v5305_v43 = vrot.slane %v5297_v29, %v6880_v40  ;;  %v5312_v4 = vrot.slane %v5298_v9, %v6880_v40  ;;  %v5321_v61 = vrot.slane %v5313_v24, %v6880_v40  ;;  %5664 = vst [vmem:[%s7981_s13 + $0x70] sm:$0xff] (%p6584_p5), %v5663_v20  ;;  %5666 = vst [vmem:[%s7981_s13 + $0x78] sm:$0xff] (%p6584_p5), %v5665_v57  ;;  %v5709_v51 = vld [vmem:[%s6972_s20 + $0x128] sm:$0xff] (%p6584_p5)  ;;  %v5711_v49 = vld [vmem:[%s6972_s20 + $0x130] sm:$0xff] (%p6584_p5) }
 0x28c   : > { %v5328_v28 = vrot.slane %v5314_v26, %v6880_v40  ;;  %5475 = sbr.rel (!%p6584_p5) target bundleno = 679 (0x2a7), region = 44  ;;  %v5637_v40 = vld [vmem:[%s6972_s20 + $0x8] sm:$0xff] (%p6584_p5)  ;;  %5668 = vst [vmem:[%s7981_s13 + $0x100] sm:$0xff] (%p6584_p5), %v5667_v7  ;;  %5670 = vst [vmem:[%s7981_s13 + $0x108] sm:$0xff] (%p6584_p5), %v5669_v42  ;;  %v5713_v52 = vld [vmem:[%s6972_s20 + $0x138] sm:$0xff] (%p6584_p5) }
 0x28d   : > { %v5329_v32 = vcombine.low %v5305_v43, %v5321_v61  ;;  %v5330_v34 = vcombine.high %v5305_v43, %v5321_v61  ;;  %5638 = vst [vmem:[%s7981_s13 + $0x8] sm:$0xff] (%p6584_p5), %v5637_v40  ;;  %5672 = vst [vmem:[%s7981_s13 + $0x110] sm:$0xff] (%p6584_p5), %v5671_v47  ;;  %v5715_v44 = vld [vmem:[%s6972_s20 + $0x140] sm:$0xff] (%p6584_p5)  ;;  %v5717_v36 = vld [vmem:[%s6972_s20 + $0x148] sm:$0xff] (%p6584_p5) }
 0x28e   : > { %v5331_v17 = vcombine.low %v5312_v4, %v5328_v28  ;;  %v5332_v58 = vcombine.high %v5312_v4, %v5328_v28  ;;  %5674 = vst [vmem:[%s7981_s13 + $0x118] sm:$0xff] (%p6584_p5), %v5673_v2  ;;  %5676 = vst [vmem:[%s7981_s13 + $0x120] sm:$0xff] (%p6584_p5), %v5675_v11  ;;  %v5719_v45 = vld [vmem:[%s6972_s20 + $0x150] sm:$0xff] (%p6584_p5)  ;;  %v5721_v12 = vld [vmem:[%s6972_s20 + $0x158] sm:$0xff] (%p6584_p5) }
 0x28f   : > { %5415 = vst.msk [vmem:[%s7059_s30 + $0x70] sm:$0xff] %vm3000_vm1, %v5329_v32  ;;  %5431 = vst.msk [vmem:[%s7059_s30 + $0xf0] sm:$0xff] %vm3000_vm1, %v5330_v34  ;;  %v5723_v15 = vld [vmem:[%s6972_s20 + $0x160] sm:$0xff] (%p6584_p5)  ;;  %v5725_v35 = vld [vmem:[%s6972_s20 + $0x168] sm:$0xff] (%p6584_p5) }
 0x290   : > { %5447 = vst.msk [vmem:[%s7059_s30 + $0x170] sm:$0xff] %vm3000_vm1, %v5331_v17  ;;  %5463 = vst.msk [vmem:[%s7059_s30 + $0x1f0] sm:$0xff] %vm3000_vm1, %v5332_v58  ;;  %v5727_v48 = vld [vmem:[%s6972_s20 + $0x170] sm:$0xff] (%p6584_p5)  ;;  %v5729_v59 = vld [vmem:[%s6972_s20 + $0x178] sm:$0xff] (%p6584_p5) }
 0x291   : > { %5678 = vst [vmem:[%s7981_s13 + $0x128] sm:$0xff] %v5677_v55  ;;  %5680 = vst [vmem:[%s7981_s13 + $0x130] sm:$0xff] %v5679_v3  ;;  %v5731_v50 = vld [vmem:[%s6972_s20 + $0x180] sm:$0xff]  ;;  %v5733_v62 = vld [vmem:[%s6972_s20 + $0x188] sm:$0xff] }
 0x292   : > { %5682 = vst [vmem:[%s7981_s13 + $0x138] sm:$0xff] %v5681_v8  ;;  %5684 = vst [vmem:[%s7981_s13 + $0x140] sm:$0xff] %v5683_v16  ;;  %v5735_v0 = vld [vmem:[%s6972_s20 + $0x190] sm:$0xff]  ;;  %v5737_v22 = vld [vmem:[%s6972_s20 + $0x198] sm:$0xff] }
 0x293   : > { %5686 = vst [vmem:[%s7981_s13 + $0x148] sm:$0xff] %v5685_v63  ;;  %5688 = vst [vmem:[%s7981_s13 + $0x150] sm:$0xff] %v5687_v33  ;;  %v5739_v29 = vld [vmem:[%s6972_s20 + $0x1a0] sm:$0xff]  ;;  %v5741_v9 = vld [vmem:[%s6972_s20 + $0x1a8] sm:$0xff] }
 0x294   : > { %5690 = vst [vmem:[%s7981_s13 + $0x158] sm:$0xff] %v5689_v53  ;;  %5692 = vst [vmem:[%s7981_s13 + $0x160] sm:$0xff] %v5691_v5  ;;  %v5743_v24 = vld [vmem:[%s6972_s20 + $0x1b0] sm:$0xff]  ;;  %v5745_v26 = vld [vmem:[%s6972_s20 + $0x1b8] sm:$0xff] }
 0x295   : > { %5694 = vst [vmem:[%s7981_s13 + $0x168] sm:$0xff] %v5693_v56  ;;  %5696 = vst [vmem:[%s7981_s13 + $0x170] sm:$0xff] %v5695_v6  ;;  %v5747_v43 = vld [vmem:[%s6972_s20 + $0x1c0] sm:$0xff]  ;;  %v5749_v4 = vld [vmem:[%s6972_s20 + $0x1c8] sm:$0xff] }
 0x296   : > { %5698 = vst [vmem:[%s7981_s13 + $0x178] sm:$0xff] %v5697_v41  ;;  %5700 = vst [vmem:[%s7981_s13 + $0x200] sm:$0xff] %v5699_v30  ;;  %v5751_v61 = vld [vmem:[%s6972_s20 + $0x1d0] sm:$0xff]  ;;  %v5753_v28 = vld [vmem:[%s6972_s20 + $0x1d8] sm:$0xff] }
 0x297   : > { %5702 = vst [vmem:[%s7981_s13 + $0x208] sm:$0xff] %v5701_v1  ;;  %5704 = vst [vmem:[%s7981_s13 + $0x210] sm:$0xff] %v5703_v19  ;;  %v5755_v32 = vld [vmem:[%s6972_s20 + $0x1e0] sm:$0xff]  ;;  %v5757_v34 = vld [vmem:[%s6972_s20 + $0x1e8] sm:$0xff] }
 0x298   : > { %5706 = vst [vmem:[%s7981_s13 + $0x218] sm:$0xff] %v5705_v31  ;;  %5708 = vst [vmem:[%s7981_s13 + $0x220] sm:$0xff] %v5707_v54  ;;  %v5759_v17 = vld [vmem:[%s6972_s20 + $0x1f0] sm:$0xff]  ;;  %v5761_v58 = vld [vmem:[%s6972_s20 + $0x1f8] sm:$0xff] }
 0x299   : > { %5710 = vst [vmem:[%s7981_s13 + $0x228] sm:$0xff] %v5709_v51  ;;  %5712 = vst [vmem:[%s7981_s13 + $0x230] sm:$0xff] %v5711_v49 }
 0x29a   : > { %5714 = vst [vmem:[%s7981_s13 + $0x238] sm:$0xff] %v5713_v52  ;;  %5716 = vst [vmem:[%s7981_s13 + $0x240] sm:$0xff] %v5715_v44 }
 0x29b   : > { %5718 = vst [vmem:[%s7981_s13 + $0x248] sm:$0xff] %v5717_v36  ;;  %5720 = vst [vmem:[%s7981_s13 + $0x250] sm:$0xff] %v5719_v45 }
 0x29c   : > { %5722 = vst [vmem:[%s7981_s13 + $0x258] sm:$0xff] %v5721_v12  ;;  %5724 = vst [vmem:[%s7981_s13 + $0x260] sm:$0xff] %v5723_v15 }
 0x29d   : > { %5726 = vst [vmem:[%s7981_s13 + $0x268] sm:$0xff] %v5725_v35  ;;  %5728 = vst [vmem:[%s7981_s13 + $0x270] sm:$0xff] %v5727_v48 }
 0x29e   : > { %5730 = vst [vmem:[%s7981_s13 + $0x278] sm:$0xff] %v5729_v59  ;;  %5732 = vst [vmem:[%s7981_s13 + $0x300] sm:$0xff] %v5731_v50 }
 0x29f   : > { %5734 = vst [vmem:[%s7981_s13 + $0x308] sm:$0xff] %v5733_v62  ;;  %5736 = vst [vmem:[%s7981_s13 + $0x310] sm:$0xff] %v5735_v0 }
 0x2a0   : > { %5738 = vst [vmem:[%s7981_s13 + $0x318] sm:$0xff] %v5737_v22  ;;  %5740 = vst [vmem:[%s7981_s13 + $0x320] sm:$0xff] %v5739_v29 }
 0x2a1   : > { %5742 = vst [vmem:[%s7981_s13 + $0x328] sm:$0xff] %v5741_v9  ;;  %5744 = vst [vmem:[%s7981_s13 + $0x330] sm:$0xff] %v5743_v24 }
 0x2a2   : > { %5746 = vst [vmem:[%s7981_s13 + $0x338] sm:$0xff] %v5745_v26  ;;  %5748 = vst [vmem:[%s7981_s13 + $0x340] sm:$0xff] %v5747_v43 }
 0x2a3   : > { %5750 = vst [vmem:[%s7981_s13 + $0x348] sm:$0xff] %v5749_v4  ;;  %5752 = vst [vmem:[%s7981_s13 + $0x350] sm:$0xff] %v5751_v61 }
 0x2a4   : > { %5754 = vst [vmem:[%s7981_s13 + $0x358] sm:$0xff] %v5753_v28  ;;  %5756 = vst [vmem:[%s7981_s13 + $0x360] sm:$0xff] %v5755_v32 }
 0x2a5   : > { %5758 = vst [vmem:[%s7981_s13 + $0x368] sm:$0xff] %v5757_v34  ;;  %5760 = vst [vmem:[%s7981_s13 + $0x370] sm:$0xff] %v5759_v17 }
 0x2a6   : > { %5762 = vst [vmem:[%s7981_s13 + $0x378] sm:$0xff] %v5761_v58 }
 0x2a7 PF: > { %5768 = sbr.rel (!%p6584_p5) target bundleno = 715 (0x2cb), region = 82  ;;  %s6275_s14 = sshll.u32 (%p6584_p5), %s6486_s24, 7  ;;  %v5928_v18 = vld [vmem:[%s7059_s30] sm:$0xff] (%p6584_p5)  ;;  %v5930_v40 = vld [vmem:[%s7059_s30 + $0x8] sm:$0xff] (%p6584_p5)  ;;  %v5932_v39 = vld [vmem:[%s7059_s30 + $0x10] sm:$0xff] (%p6584_p5) }
 0x2a8   : > { %s5771_s8 = sadd.s32 (%p6584_p5), %s6275_s14, %s6603_s17  ;;  %v5934_v21 = vld [vmem:[%s7059_s30 + $0x18] sm:$0xff] (%p6584_p5)  ;;  %v5936_v13 = vld [vmem:[%s7059_s30 + $0x20] sm:$0xff] (%p6584_p5)  ;;  %v5938_v25 = vld [vmem:[%s7059_s30 + $0x28] sm:$0xff] (%p6584_p5) }
 0x2a9   : > { %s6276_s15 = sshll.u32 (%p6584_p5), %s5771_s8, 3  ;;  %v5940_v38 = vld [vmem:[%s7059_s30 + $0x30] sm:$0xff] (%p6584_p5)  ;;  %v5942_v14 = vld [vmem:[%s7059_s30 + $0x38] sm:$0xff] (%p6584_p5)  ;;  %v5944_v37 = vld [vmem:[%s7059_s30 + $0x40] sm:$0xff] (%p6584_p5) }
 0x2aa   : > { %s8118_s19 = scalar_lea.vmem (%p6584_p5), %s8266_s6, %s6276_s15  ;;  %v5946_v10 = vld [vmem:[%s7059_s30 + $0x48] sm:$0xff] (%p6584_p5)  ;;  %v5948_v60 = vld [vmem:[%s7059_s30 + $0x50] sm:$0xff] (%p6584_p5)  ;;  %v5950_v27 = vld [vmem:[%s7059_s30 + $0x58] sm:$0xff] (%p6584_p5) }
 0x2ab   : > { %5929 = vst [vmem:[%s8118_s19] sm:$0xff] (%p6584_p5), %v5928_v18  ;;  %5931 = vst [vmem:[%s8118_s19 + $0x8] sm:$0xff] (%p6584_p5), %v5930_v40  ;;  %v5952_v46 = vld [vmem:[%s7059_s30 + $0x60] sm:$0xff] (%p6584_p5)  ;;  %v5954_v23 = vld [vmem:[%s7059_s30 + $0x68] sm:$0xff] (%p6584_p5) }
 0x2ac   : > { %5933 = vst [vmem:[%s8118_s19 + $0x10] sm:$0xff] %v5932_v39  ;;  %5935 = vst [vmem:[%s8118_s19 + $0x18] sm:$0xff] %v5934_v21  ;;  %v5956_v20 = vld [vmem:[%s7059_s30 + $0x70] sm:$0xff]  ;;  %v5958_v57 = vld [vmem:[%s7059_s30 + $0x78] sm:$0xff] }
 0x2ad   : > { %5937 = vst [vmem:[%s8118_s19 + $0x20] sm:$0xff] %v5936_v13  ;;  %5939 = vst [vmem:[%s8118_s19 + $0x28] sm:$0xff] %v5938_v25  ;;  %v5960_v7 = vld [vmem:[%s7059_s30 + $0x80] sm:$0xff]  ;;  %v5962_v42 = vld [vmem:[%s7059_s30 + $0x88] sm:$0xff] }
 0x2ae   : > { %5941 = vst [vmem:[%s8118_s19 + $0x30] sm:$0xff] %v5940_v38  ;;  %5943 = vst [vmem:[%s8118_s19 + $0x38] sm:$0xff] %v5942_v14  ;;  %v5964_v47 = vld [vmem:[%s7059_s30 + $0x90] sm:$0xff]  ;;  %v5966_v2 = vld [vmem:[%s7059_s30 + $0x98] sm:$0xff] }
 0x2af   : > { %5945 = vst [vmem:[%s8118_s19 + $0x40] sm:$0xff] %v5944_v37  ;;  %5947 = vst [vmem:[%s8118_s19 + $0x48] sm:$0xff] %v5946_v10  ;;  %v5968_v11 = vld [vmem:[%s7059_s30 + $0xa0] sm:$0xff]  ;;  %v5970_v55 = vld [vmem:[%s7059_s30 + $0xa8] sm:$0xff] }
 0x2b0   : > { %5949 = vst [vmem:[%s8118_s19 + $0x50] sm:$0xff] %v5948_v60  ;;  %5951 = vst [vmem:[%s8118_s19 + $0x58] sm:$0xff] %v5950_v27  ;;  %v5972_v3 = vld [vmem:[%s7059_s30 + $0xb0] sm:$0xff]  ;;  %v5974_v8 = vld [vmem:[%s7059_s30 + $0xb8] sm:$0xff] }
 0x2b1   : > { %5953 = vst [vmem:[%s8118_s19 + $0x60] sm:$0xff] %v5952_v46  ;;  %5955 = vst [vmem:[%s8118_s19 + $0x68] sm:$0xff] %v5954_v23  ;;  %v5976_v16 = vld [vmem:[%s7059_s30 + $0xc0] sm:$0xff]  ;;  %v5978_v63 = vld [vmem:[%s7059_s30 + $0xc8] sm:$0xff] }
 0x2b2   : > { %5957 = vst [vmem:[%s8118_s19 + $0x70] sm:$0xff] %v5956_v20  ;;  %5959 = vst [vmem:[%s8118_s19 + $0x78] sm:$0xff] %v5958_v57  ;;  %v5980_v33 = vld [vmem:[%s7059_s30 + $0xd0] sm:$0xff]  ;;  %v5982_v53 = vld [vmem:[%s7059_s30 + $0xd8] sm:$0xff] }
 0x2b3   : > { %5961 = vst [vmem:[%s8118_s19 + $0x100] sm:$0xff] %v5960_v7  ;;  %5963 = vst [vmem:[%s8118_s19 + $0x108] sm:$0xff] %v5962_v42  ;;  %v5984_v5 = vld [vmem:[%s7059_s30 + $0xe0] sm:$0xff]  ;;  %v5986_v56 = vld [vmem:[%s7059_s30 + $0xe8] sm:$0xff] }
 0x2b4   : > { %5965 = vst [vmem:[%s8118_s19 + $0x110] sm:$0xff] %v5964_v47  ;;  %5967 = vst [vmem:[%s8118_s19 + $0x118] sm:$0xff] %v5966_v2  ;;  %v5988_v6 = vld [vmem:[%s7059_s30 + $0xf0] sm:$0xff]  ;;  %v5990_v41 = vld [vmem:[%s7059_s30 + $0xf8] sm:$0xff] }
 0x2b5   : > { %5969 = vst [vmem:[%s8118_s19 + $0x120] sm:$0xff] %v5968_v11  ;;  %5971 = vst [vmem:[%s8118_s19 + $0x128] sm:$0xff] %v5970_v55  ;;  %v5992_v30 = vld [vmem:[%s7059_s30 + $0x100] sm:$0xff]  ;;  %v5994_v1 = vld [vmem:[%s7059_s30 + $0x108] sm:$0xff] }
 0x2b6   : > { %5973 = vst [vmem:[%s8118_s19 + $0x130] sm:$0xff] %v5972_v3  ;;  %5975 = vst [vmem:[%s8118_s19 + $0x138] sm:$0xff] %v5974_v8  ;;  %v5996_v19 = vld [vmem:[%s7059_s30 + $0x110] sm:$0xff]  ;;  %v5998_v31 = vld [vmem:[%s7059_s30 + $0x118] sm:$0xff] }
 0x2b7   : > { %5977 = vst [vmem:[%s8118_s19 + $0x140] sm:$0xff] %v5976_v16  ;;  %5979 = vst [vmem:[%s8118_s19 + $0x148] sm:$0xff] %v5978_v63  ;;  %v6000_v54 = vld [vmem:[%s7059_s30 + $0x120] sm:$0xff]  ;;  %v6002_v51 = vld [vmem:[%s7059_s30 + $0x128] sm:$0xff] }
 0x2b8   : > { %5981 = vst [vmem:[%s8118_s19 + $0x150] sm:$0xff] %v5980_v33  ;;  %5983 = vst [vmem:[%s8118_s19 + $0x158] sm:$0xff] %v5982_v53  ;;  %v6004_v49 = vld [vmem:[%s7059_s30 + $0x130] sm:$0xff]  ;;  %v6006_v52 = vld [vmem:[%s7059_s30 + $0x138] sm:$0xff] }
 0x2b9   : > { %5985 = vst [vmem:[%s8118_s19 + $0x160] sm:$0xff] %v5984_v5  ;;  %5987 = vst [vmem:[%s8118_s19 + $0x168] sm:$0xff] %v5986_v56  ;;  %v6008_v44 = vld [vmem:[%s7059_s30 + $0x140] sm:$0xff]  ;;  %v6010_v36 = vld [vmem:[%s7059_s30 + $0x148] sm:$0xff] }
 0x2ba   : > { %5989 = vst [vmem:[%s8118_s19 + $0x170] sm:$0xff] %v5988_v6  ;;  %5991 = vst [vmem:[%s8118_s19 + $0x178] sm:$0xff] %v5990_v41  ;;  %v6012_v45 = vld [vmem:[%s7059_s30 + $0x150] sm:$0xff]  ;;  %v6014_v12 = vld [vmem:[%s7059_s30 + $0x158] sm:$0xff] }
 0x2bb   : > { %5993 = vst [vmem:[%s8118_s19 + $0x200] sm:$0xff] %v5992_v30  ;;  %5995 = vst [vmem:[%s8118_s19 + $0x208] sm:$0xff] %v5994_v1  ;;  %v6016_v15 = vld [vmem:[%s7059_s30 + $0x160] sm:$0xff]  ;;  %v6018_v35 = vld [vmem:[%s7059_s30 + $0x168] sm:$0xff] }
 0x2bc   : > { %5997 = vst [vmem:[%s8118_s19 + $0x210] sm:$0xff] %v5996_v19  ;;  %5999 = vst [vmem:[%s8118_s19 + $0x218] sm:$0xff] %v5998_v31  ;;  %v6020_v48 = vld [vmem:[%s7059_s30 + $0x170] sm:$0xff]  ;;  %v6022_v59 = vld [vmem:[%s7059_s30 + $0x178] sm:$0xff] }
 0x2bd   : > { %6001 = vst [vmem:[%s8118_s19 + $0x220] sm:$0xff] %v6000_v54  ;;  %6003 = vst [vmem:[%s8118_s19 + $0x228] sm:$0xff] %v6002_v51  ;;  %v6024_v50 = vld [vmem:[%s7059_s30 + $0x180] sm:$0xff]  ;;  %v6026_v62 = vld [vmem:[%s7059_s30 + $0x188] sm:$0xff] }
 0x2be   : > { %6005 = vst [vmem:[%s8118_s19 + $0x230] sm:$0xff] %v6004_v49  ;;  %6007 = vst [vmem:[%s8118_s19 + $0x238] sm:$0xff] %v6006_v52  ;;  %v6028_v0 = vld [vmem:[%s7059_s30 + $0x190] sm:$0xff]  ;;  %v6030_v22 = vld [vmem:[%s7059_s30 + $0x198] sm:$0xff] }
 0x2bf   : > { %6009 = vst [vmem:[%s8118_s19 + $0x240] sm:$0xff] %v6008_v44  ;;  %6011 = vst [vmem:[%s8118_s19 + $0x248] sm:$0xff] %v6010_v36  ;;  %v6032_v29 = vld [vmem:[%s7059_s30 + $0x1a0] sm:$0xff]  ;;  %v6034_v9 = vld [vmem:[%s7059_s30 + $0x1a8] sm:$0xff] }
 0x2c0   : > { %6013 = vst [vmem:[%s8118_s19 + $0x250] sm:$0xff] %v6012_v45  ;;  %6015 = vst [vmem:[%s8118_s19 + $0x258] sm:$0xff] %v6014_v12  ;;  %v6036_v24 = vld [vmem:[%s7059_s30 + $0x1b0] sm:$0xff]  ;;  %v6038_v26 = vld [vmem:[%s7059_s30 + $0x1b8] sm:$0xff] }
 0x2c1   : > { %6017 = vst [vmem:[%s8118_s19 + $0x260] sm:$0xff] %v6016_v15  ;;  %6019 = vst [vmem:[%s8118_s19 + $0x268] sm:$0xff] %v6018_v35  ;;  %v6040_v43 = vld [vmem:[%s7059_s30 + $0x1c0] sm:$0xff]  ;;  %v6042_v4 = vld [vmem:[%s7059_s30 + $0x1c8] sm:$0xff] }
 0x2c2   : > { %6021 = vst [vmem:[%s8118_s19 + $0x270] sm:$0xff] %v6020_v48  ;;  %6023 = vst [vmem:[%s8118_s19 + $0x278] sm:$0xff] %v6022_v59  ;;  %v6044_v61 = vld [vmem:[%s7059_s30 + $0x1d0] sm:$0xff]  ;;  %v6046_v28 = vld [vmem:[%s7059_s30 + $0x1d8] sm:$0xff] }
 0x2c3   : > { %6025 = vst [vmem:[%s8118_s19 + $0x300] sm:$0xff] %v6024_v50  ;;  %6027 = vst [vmem:[%s8118_s19 + $0x308] sm:$0xff] %v6026_v62  ;;  %v6048_v32 = vld [vmem:[%s7059_s30 + $0x1e0] sm:$0xff]  ;;  %v6050_v34 = vld [vmem:[%s7059_s30 + $0x1e8] sm:$0xff] }
 0x2c4   : > { %6029 = vst [vmem:[%s8118_s19 + $0x310] sm:$0xff] %v6028_v0  ;;  %6031 = vst [vmem:[%s8118_s19 + $0x318] sm:$0xff] %v6030_v22  ;;  %v6052_v17 = vld [vmem:[%s7059_s30 + $0x1f0] sm:$0xff]  ;;  %v6054_v58 = vld [vmem:[%s7059_s30 + $0x1f8] sm:$0xff] }
 0x2c5   : > { %6033 = vst [vmem:[%s8118_s19 + $0x320] sm:$0xff] %v6032_v29  ;;  %6035 = vst [vmem:[%s8118_s19 + $0x328] sm:$0xff] %v6034_v9 }
 0x2c6   : > { %6037 = vst [vmem:[%s8118_s19 + $0x330] sm:$0xff] %v6036_v24  ;;  %6039 = vst [vmem:[%s8118_s19 + $0x338] sm:$0xff] %v6038_v26 }
 0x2c7   : > { %6041 = vst [vmem:[%s8118_s19 + $0x340] sm:$0xff] %v6040_v43  ;;  %6043 = vst [vmem:[%s8118_s19 + $0x348] sm:$0xff] %v6042_v4 }
 0x2c8   : > { %6045 = vst [vmem:[%s8118_s19 + $0x350] sm:$0xff] %v6044_v61  ;;  %6047 = vst [vmem:[%s8118_s19 + $0x358] sm:$0xff] %v6046_v28 }
 0x2c9   : > { %6049 = vst [vmem:[%s8118_s19 + $0x360] sm:$0xff] %v6048_v32  ;;  %6051 = vst [vmem:[%s8118_s19 + $0x368] sm:$0xff] %v6050_v34 }
 0x2ca   : > { %6053 = vst [vmem:[%s8118_s19 + $0x370] sm:$0xff] %v6052_v17  ;;  %6055 = vst [vmem:[%s8118_s19 + $0x378] sm:$0xff] %v6054_v58 }
 0x2cb PF: > { %s17_s27 = sadd.s32 1, %s6498_s27   ;;  %s8268_s21 = smov %s6478_s22 }
 0x2cc   : > { %p14_p11 = scmp.ge.s32.totalorder %s17_s27, 6   ;;  %s8269_s22 = smov %s6595_s12 }
 0x2cd   : > { %s8270_s23 = smov %s6490_s25  ;;  %s8271_s24 = smov %s6494_s26 }
 0x2ce   : > { %s8272_s25 = smov %s8275_s28  ;;  %s8273_s26 = smov %s8279_s29 }
 0x2cf   :  { %16 = sbr.rel (!%p14_p11) target bundleno = 4 (0x4), region = 158 }

</bundles_post_ra>
